<compile_context>
chip_gen: v5e
topology: v5e:2x2
jax: 0.10.0
libtpu: 0.0.40
codegen_flags: <defaults>
</compile_context>

<pallas_src>
import jax
import jax.numpy as jnp
from jax import lax
from jax.experimental import pallas as pl
from jax.experimental.pallas import tpu as pltpu


CHAR_FEAT = 300          # nn.LSTM(300, char_hidden_dim) input size
CHAR_FEAT_PAD = 384      # padded to a multiple of 128 lanes
BLK = 8                  # recurrence steps per full-sublane block
SEQ_ALIGN = 16           # bf16 sublane packing


def tagger_kernel(char_x_ref, emb_ref,
                  wih_l_ref, whh_l_ref, b_l_ref,
                  wemb_g_ref, wch_g_ref, whh_g_ref, big_ref, bhn_ref,
                  wout_ref, bout_ref,
                  out_ref,
                  xgl_ref, xgg_ref, gru_out_ref):
    s_pad = char_x_ref.shape[0]
    ch = whh_l_ref.shape[0]          # char_hidden_dim
    hd = whh_g_ref.shape[0]          # hidden_dim
    n_blk = s_pad // BLK

    # ---- batched input-side pre-activations (bf16 in, f32 accumulate) ----
    # char-LSTM gates for every timestep in one MXU matmul (g cols pre-scaled).
    xgl_ref[...] = (jnp.dot(char_x_ref[...], wih_l_ref[...],
                            preferred_element_type=jnp.float32) + b_l_ref[...])
    # emb-side GRU gates do not depend on the char LSTM -> issue them up front.
    xgg_ref[...] = (jnp.dot(emb_ref[...], wemb_g_ref[...],
                            preferred_element_type=jnp.float32) + big_ref[...])

    whh_l = whh_l_ref[...]           # (ch, 4ch)  bf16, g cols pre-scaled x2
    whh_g = whh_g_ref[...]           # (hd, 3hd)  bf16
    wch_g = wch_g_ref[...]           # (ch, 3hd)  bf16
    bhn = bhn_ref[...]               # (1, hd)    f32

    # ---------------- char LSTM block (gate order i, f, o, g) --------------
    def lstm_blk(base, h, c):
        xg_blk = xgl_ref[pl.ds(base, BLK), :]            # (8, 4*ch), one load
        hs = []
        for r in range(BLK):
            g = xg_blk[r:r + 1, :] + jnp.dot(
                h.astype(jnp.bfloat16), whh_l,
                preferred_element_type=jnp.float32)
            s = jax.nn.sigmoid(g)                        # ONE EUP call, all gates
            i_g = s[:, 0 * ch:1 * ch]
            f_g = s[:, 1 * ch:2 * ch]
            o_g = s[:, 2 * ch:3 * ch]
            g_g = 2.0 * s[:, 3 * ch:] - 1.0              # == tanh(orig pre-act)
            c = f_g * c + i_g * g_g
            h = o_g * jnp.tanh(c)
            hs.append(h)
        blk = jnp.concatenate(hs, axis=0)                # (8, ch) f32
        # per-block GRU input-gate contribution (replaces bulk concat matmul)
        xgg_ref[pl.ds(base, BLK), :] = (
            xgg_ref[pl.ds(base, BLK), :]
            + jnp.dot(blk.astype(jnp.bfloat16), wch_g,
                      preferred_element_type=jnp.float32))
        return h, c

    # ---------------- GRU block (gate order r, z, n) ------------------------
    def gru_blk(base, h):
        xg_blk = xgg_ref[pl.ds(base, BLK), :]            # (8, 3*hd)
        hs = []
        for r in range(BLK):
            xg = xg_blk[r:r + 1, :]
            hg = jnp.dot(h.astype(jnp.bfloat16), whh_g,
                         preferred_element_type=jnp.float32)
            rz = jax.nn.sigmoid(xg[:, :2 * hd] + hg[:, :2 * hd])
            r_g = rz[:, :hd]
            z_g = rz[:, hd:]
            n_g = jnp.tanh(xg[:, 2 * hd:] + r_g * (hg[:, 2 * hd:] + bhn))
            h = (1.0 - z_g) * n_g + z_g * h
            hs.append(h)
        gru_out_ref[pl.ds(base, BLK), :] = jnp.concatenate(hs, axis=0)
        return h

    zero_ch = jnp.zeros((1, ch), jnp.float32)
    zero_hd = jnp.zeros((1, hd), jnp.float32)

    # prologue: LSTM block 0 alone (completes xgg block 0)
    h_l, c_l = lstm_blk(0, zero_ch, zero_ch)

    # skewed steady state: GRU consumes block b while LSTM produces block b+1.
    # (GRU's xgg read is traced first so the LSTM's xgg write on a different
    #  slice cannot force a conservative ordering onto the GRU chain.)
    def body(b, carry):
        h_l, c_l, h_g = carry
        h_g = gru_blk(pl.multiple_of(b * BLK, BLK), h_g)
        h_l, c_l = lstm_blk(pl.multiple_of((b + 1) * BLK, BLK), h_l, c_l)
        return (h_l, c_l, h_g)

    h_l, c_l, h_g = lax.fori_loop(0, n_blk - 1, body, (h_l, c_l, zero_hd))

    # epilogue: last GRU block
    gru_blk((n_blk - 1) * BLK, h_g)

    # -------- hidden2tag + log_softmax over lane-dense (padded) tag axis ----
    tag = (jnp.dot(gru_out_ref[...], wout_ref[...],
                   preferred_element_type=jnp.float32) + bout_ref[...])
    m = jnp.max(tag, axis=1, keepdims=True)
    shifted = tag - m
    lse = jnp.log(jnp.sum(jnp.exp(shifted), axis=1, keepdims=True))
    out_ref[...] = shifted - lse


def _reorder_lstm_gates(x):
    """PyTorch LSTM gate blocks (i, f, g, o) -> (i, f, o, g) along axis 0."""
    i, f, g, o = jnp.split(x, 4, axis=0)
    return jnp.concatenate([i, f, o, g], axis=0)


def char_gru_tagger_forward(sentence, char_rep, params):
    # Embedding gather stays in plain JAX; everything else runs in the kernel.
    seq = sentence.shape[0]
    ch = params["w_hh_l"].shape[1]       # char_hidden_dim
    hd = params["w_hh_g"].shape[1]       # hidden_dim
    emb_dim = params["embedding"].shape[1]
    tagset = params["w_out"].shape[0]
    tag_pad = ((tagset + 127) // 128) * 128

    s_pad = ((seq + SEQ_ALIGN - 1) // SEQ_ALIGN) * SEQ_ALIGN

    # --- pad char features: rows -> s_pad, lanes 300 -> 384 (zeros) ---------
    char_x = jnp.zeros((s_pad, CHAR_FEAT_PAD), jnp.float32)
    char_x = char_x.at[:seq, :CHAR_FEAT].set(char_rep.astype(jnp.float32))

    emb = jnp.take(params["embedding"], sentence, axis=0)        # (seq, E)
    emb_p = jnp.zeros((s_pad, emb_dim), jnp.float32).at[:seq].set(emb)

    # --- LSTM weights: reorder gates, pre-scale g-gate by 2 (tanh(x) ==
    #     2*sigmoid(2x)-1), pad contraction dim, transpose, cast bf16 --------
    wih_l = _reorder_lstm_gates(params["w_ih_l"]).at[3 * ch:].multiply(2.0)
    wih_l = jnp.zeros((4 * ch, CHAR_FEAT_PAD), jnp.float32).at[:, :CHAR_FEAT].set(wih_l)
    wih_l_t = wih_l.T.astype(jnp.bfloat16)                       # (384, 4CH)
    whh_l_t = (_reorder_lstm_gates(params["w_hh_l"]).at[3 * ch:].multiply(2.0)
               ).T.astype(jnp.bfloat16)                          # (CH, 4CH)
    b_l = _reorder_lstm_gates(params["b_ih_l"] + params["b_hh_l"]
                              ).at[3 * ch:].multiply(2.0)[None, :]

    # --- GRU weights: split input matrix, fold r/z hidden bias --------------
    wemb_g = params["w_ih_g"][:, :emb_dim].T.astype(jnp.bfloat16)  # (E, 3H)
    wch_g = params["w_ih_g"][:, emb_dim:].T.astype(jnp.bfloat16)   # (CH, 3H)
    whh_g_t = params["w_hh_g"].T.astype(jnp.bfloat16)              # (H, 3H)
    big = (params["b_ih_g"] + jnp.concatenate(
        [params["b_hh_g"][:2 * hd], jnp.zeros((hd,), jnp.float32)]))[None, :]
    bhn = params["b_hh_g"][2 * hd:][None, :]                       # (1, H)

    # --- hidden2tag padded lane-dense; padded logits get bias -1e30 ---------
    wout = jnp.zeros((hd, tag_pad), jnp.float32).at[:, :tagset].set(params["w_out"].T)
    bout = jnp.full((1, tag_pad), -1e30, jnp.float32).at[0, :tagset].set(params["b_out"])

    ins = (
        char_x.astype(jnp.bfloat16),   # (S_pad, 384)   bf16 MXU input
        emb_p.astype(jnp.bfloat16),    # (S_pad, E)     bf16 MXU input
        wih_l_t,                       # (384, 4CH)     bf16
        whh_l_t,                       # (CH, 4CH)      bf16
        b_l,                           # (1, 4CH)       f32
        wemb_g,                        # (E, 3H)        bf16
        wch_g,                         # (CH, 3H)       bf16
        whh_g_t,                       # (H, 3H)        bf16
        big,                           # (1, 3H)        f32 (b_ih + b_hh[r,z])
        bhn,                           # (1, H)         f32 (b_hn)
        wout,                          # (H, Tpad)      f32
        bout,                          # (1, Tpad)      f32 (-1e30 on pad cols)
    )

    # explicit VMEM budget: whole-array-resident bytes + margin
    est = s_pad * (2 * CHAR_FEAT_PAD + 2 * emb_dim + 4 * (4 * ch)
                   + 4 * (3 * hd) + 4 * hd + 4 * tag_pad)
    vmem_limit = int(max(est + (4 << 20), 16 << 20))

    vmem = pl.BlockSpec(memory_space=pltpu.MemorySpace.VMEM)
    out = pl.pallas_call(
        tagger_kernel,
        out_shape=jax.ShapeDtypeStruct((s_pad, tag_pad), jnp.float32),
        in_specs=[vmem] * len(ins),
        out_specs=vmem,
        scratch_shapes=[
            pltpu.VMEM((s_pad, 4 * ch), jnp.float32),   # LSTM input-gate pre-acts
            pltpu.VMEM((s_pad, 3 * hd), jnp.float32),   # GRU input-gate pre-acts
            pltpu.VMEM((s_pad, hd), jnp.float32),       # GRU outputs
        ],
        compiler_params=pltpu.CompilerParams(vmem_limit_bytes=vmem_limit),
    )(*ins)
    return out[:seq, :tagset]


def init_params(key, embedding_dim, hidden_dim, char_hidden_dim,
                vocab_size, tagset_size):
    ks = jax.random.split(key, 12)
    s_l = 1.0 / jnp.sqrt(char_hidden_dim)
    s_g = 1.0 / jnp.sqrt(hidden_dim)
    u = lambda k, shape, s: jax.random.uniform(k, shape, jnp.float32, -s, s)
    return {
        "embedding": jax.random.normal(ks[0], (vocab_size, embedding_dim),
                                       jnp.float32),
        # nn.LSTM(300, char_hidden_dim)   — PyTorch gate order (i, f, g, o)
        "w_ih_l": u(ks[1], (4 * char_hidden_dim, CHAR_FEAT), s_l),
        "w_hh_l": u(ks[2], (4 * char_hidden_dim, char_hidden_dim), s_l),
        "b_ih_l": u(ks[3], (4 * char_hidden_dim,), s_l),
        "b_hh_l": u(ks[4], (4 * char_hidden_dim,), s_l),
        # nn.GRU(embedding_dim + char_hidden_dim, hidden_dim) — gate order (r, z, n)
        "w_ih_g": u(ks[5], (3 * hidden_dim, embedding_dim + char_hidden_dim), s_g),
        "w_hh_g": u(ks[6], (3 * hidden_dim, hidden_dim), s_g),
        "b_ih_g": u(ks[7], (3 * hidden_dim,), s_g),
        "b_hh_g": u(ks[8], (3 * hidden_dim,), s_g),
        # nn.Linear(hidden_dim, tagset_size)
        "w_out": u(ks[9], (tagset_size, hidden_dim), s_g),
        "b_out": u(ks[10], (tagset_size,), s_g),
    }


if __name__ == "__main__":
    EMB_DIM, HID_DIM, CHAR_HID = 32, 32, 16
    VOCAB, TAGSET, SEQ = 50, 8, 12        # SEQ=12 exercises the pad-to-16 path

    key = jax.random.PRNGKey(0)
    k_par, k_sent, k_char = jax.random.split(key, 3)

    params = init_params(k_par, EMB_DIM, HID_DIM, CHAR_HID, VOCAB, TAGSET)
    sentence = jax.random.randint(k_sent, (SEQ,), 0, VOCAB, dtype=jnp.int32)
    char_rep = jax.random.normal(k_char, (SEQ, CHAR_FEAT), jnp.float32)

    out = char_gru_tagger_forward(sentence, char_rep, params)
    jax.block_until_ready(out)
    assert out.shape == (SEQ, TAGSET)
    assert bool(jnp.all(jnp.isfinite(out)))
    # log_softmax self-consistency: rows of exp(out) must sum to ~1
    assert bool(jnp.allclose(jnp.sum(jnp.exp(out), axis=1), 1.0, atol=1e-2))
    print("KERNEL_OK")
</pallas_src>

<mosaic_0001>
module attributes {stable_mosaic.version = 11 : i64} {
  func.func @tagger_kernel(%arg0: memref<16x384xbf16, #tpu.memory_space<vmem>>, %arg1: memref<16x32xbf16, #tpu.memory_space<vmem>>, %arg2: memref<384x64xbf16, #tpu.memory_space<vmem>>, %arg3: memref<16x64xbf16, #tpu.memory_space<vmem>>, %arg4: memref<1x64xf32, #tpu.memory_space<vmem>>, %arg5: memref<32x96xbf16, #tpu.memory_space<vmem>>, %arg6: memref<16x96xbf16, #tpu.memory_space<vmem>>, %arg7: memref<32x96xbf16, #tpu.memory_space<vmem>>, %arg8: memref<1x96xf32, #tpu.memory_space<vmem>>, %arg9: memref<1x32xf32, #tpu.memory_space<vmem>>, %arg10: memref<32x128xf32, #tpu.memory_space<vmem>>, %arg11: memref<1x128xf32, #tpu.memory_space<vmem>>, %arg12: memref<16x128xf32, #tpu.memory_space<vmem>>, %arg13: memref<16x64xf32, #tpu.memory_space<vmem>>, %arg14: memref<16x96xf32, #tpu.memory_space<vmem>>, %arg15: memref<16x32xf32, #tpu.memory_space<vmem>>) attributes {dimension_semantics = [], scalar_prefetch = 0 : i64, scratch_operands = 3 : i64, tpu.core_type = #tpu.core_type<tc>} {
    %c0 = arith.constant 0 : index
    %c0_0 = arith.constant 0 : index
    %0 = vector.load %arg0[%c0, %c0_0] : memref<16x384xbf16, #tpu.memory_space<vmem>>, vector<16x384xbf16>
    %c0_1 = arith.constant 0 : index
    %c0_2 = arith.constant 0 : index
    %1 = vector.load %arg2[%c0_1, %c0_2] : memref<384x64xbf16, #tpu.memory_space<vmem>>, vector<384x64xbf16>
    %cst = arith.constant dense<0.000000e+00> : vector<16x64xf32>
    %2 = tpu.matmul %0, %1, %cst {dimension_numbers = #tpu.dot_dimension_numbers<[1], [0], [0], [1], [0, 0, 1, 1], [], []>} : vector<16x384xbf16>, vector<384x64xbf16>, vector<16x64xf32> -> vector<16x64xf32>
    %c0_3 = arith.constant 0 : index
    %c0_4 = arith.constant 0 : index
    %3 = vector.load %arg4[%c0_3, %c0_4] : memref<1x64xf32, #tpu.memory_space<vmem>>, vector<1x64xf32>
    %4 = vector.broadcast %3 : vector<1x64xf32> to vector<16x64xf32>
    %5 = arith.addf %2, %4 : vector<16x64xf32>
    %c0_5 = arith.constant 0 : index
    %c0_6 = arith.constant 0 : index
    %6 = vector.load %arg13[%c0_5, %c0_6] : memref<16x64xf32, #tpu.memory_space<vmem>>, vector<16x64xf32>
    tpu.vector_store %arg13[%c0_5, %c0_6], %5 {strides = array<i32>} : memref<16x64xf32, #tpu.memory_space<vmem>>, vector<16x64xf32>,
    %c0_7 = arith.constant 0 : index
    %c0_8 = arith.constant 0 : index
    %7 = vector.load %arg1[%c0_7, %c0_8] : memref<16x32xbf16, #tpu.memory_space<vmem>>, vector<16x32xbf16>
    %c0_9 = arith.constant 0 : index
    %c0_10 = arith.constant 0 : index
    %8 = vector.load %arg5[%c0_9, %c0_10] : memref<32x96xbf16, #tpu.memory_space<vmem>>, vector<32x96xbf16>
    %cst_11 = arith.constant dense<0.000000e+00> : vector<16x96xf32>
    %9 = tpu.matmul %7, %8, %cst_11 {dimension_numbers = #tpu.dot_dimension_numbers<[1], [0], [0], [1], [0, 0, 1, 1], [], []>} : vector<16x32xbf16>, vector<32x96xbf16>, vector<16x96xf32> -> vector<16x96xf32>
    %c0_12 = arith.constant 0 : index
    %c0_13 = arith.constant 0 : index
    %10 = vector.load %arg8[%c0_12, %c0_13] : memref<1x96xf32, #tpu.memory_space<vmem>>, vector<1x96xf32>
    %11 = vector.broadcast %10 : vector<1x96xf32> to vector<16x96xf32>
    %12 = arith.addf %9, %11 : vector<16x96xf32>
    %c0_14 = arith.constant 0 : index
    %c0_15 = arith.constant 0 : index
    %13 = vector.load %arg14[%c0_14, %c0_15] : memref<16x96xf32, #tpu.memory_space<vmem>>, vector<16x96xf32>
    tpu.vector_store %arg14[%c0_14, %c0_15], %12 {strides = array<i32>} : memref<16x96xf32, #tpu.memory_space<vmem>>, vector<16x96xf32>,
    %c0_16 = arith.constant 0 : index
    %c0_17 = arith.constant 0 : index
    %14 = vector.load %arg3[%c0_16, %c0_17] : memref<16x64xbf16, #tpu.memory_space<vmem>>, vector<16x64xbf16>
    %c0_18 = arith.constant 0 : index
    %c0_19 = arith.constant 0 : index
    %15 = vector.load %arg7[%c0_18, %c0_19] : memref<32x96xbf16, #tpu.memory_space<vmem>>, vector<32x96xbf16>
    %c0_20 = arith.constant 0 : index
    %c0_21 = arith.constant 0 : index
    %16 = vector.load %arg6[%c0_20, %c0_21] : memref<16x96xbf16, #tpu.memory_space<vmem>>, vector<16x96xbf16>
    %c0_22 = arith.constant 0 : index
    %c0_23 = arith.constant 0 : index
    %17 = vector.load %arg9[%c0_22, %c0_23] : memref<1x32xf32, #tpu.memory_space<vmem>>, vector<1x32xf32>
    %cst_24 = arith.constant 0.000000e+00 : f32
    %18 = vector.broadcast %cst_24 : f32 to vector<1x16xf32>
    %cst_25 = arith.constant 0.000000e+00 : f32
    %19 = vector.broadcast %cst_25 : f32 to vector<1x32xf32>
    %c0_26 = arith.constant 0 : index
    %c0_27 = arith.constant 0 : index
    %20 = vector.load %arg13[%c0_26, %c0_27] : memref<16x64xf32, #tpu.memory_space<vmem>>, vector<8x64xf32>
    %21 = vector.extract_strided_slice %20 {offsets = [0, 0], sizes = [1, 64], strides = [1, 1]} : vector<8x64xf32> to vector<1x64xf32>
    %22 = arith.truncf %18 : vector<1x16xf32> to vector<1x16xbf16>
    %cst_28 = arith.constant dense<0.000000e+00> : vector<1x64xf32>
    %23 = tpu.matmul %22, %14, %cst_28 {dimension_numbers = #tpu.dot_dimension_numbers<[1], [0], [0], [1], [0, 0, 1, 1], [], []>} : vector<1x16xbf16>, vector<16x64xbf16>, vector<1x64xf32> -> vector<1x64xf32>
    %24 = arith.addf %21, %23 : vector<1x64xf32>
    %25 = arith.negf %24 : vector<1x64xf32>
    %26 = math.exp %25 : vector<1x64xf32>
    %cst_29 = arith.constant 1.000000e+00 : f32
    %27 = vector.broadcast %cst_29 : f32 to vector<1x64xf32>
    %28 = arith.addf %27, %26 : vector<1x64xf32>
    %29 = arith.divf %27, %28 : vector<1x64xf32>
    %30 = vector.extract_strided_slice %29 {offsets = [0, 0], sizes = [1, 16], strides = [1, 1]} : vector<1x64xf32> to vector<1x16xf32>
    %31 = vector.extract_strided_slice %29 {offsets = [0, 16], sizes = [1, 16], strides = [1, 1]} : vector<1x64xf32> to vector<1x16xf32>
    %32 = vector.extract_strided_slice %29 {offsets = [0, 32], sizes = [1, 16], strides = [1, 1]} : vector<1x64xf32> to vector<1x16xf32>
    %33 = vector.extract_strided_slice %29 {offsets = [0, 48], sizes = [1, 16], strides = [1, 1]} : vector<1x64xf32> to vector<1x16xf32>
    %cst_30 = arith.constant 2.000000e+00 : f32
    %34 = vector.broadcast %cst_30 : f32 to vector<1x16xf32>
    %35 = arith.mulf %34, %33 : vector<1x16xf32>
    %cst_31 = arith.constant 1.000000e+00 : f32
    %36 = vector.broadcast %cst_31 : f32 to vector<1x16xf32>
    %37 = arith.subf %35, %36 : vector<1x16xf32>
    %38 = arith.mulf %31, %18 : vector<1x16xf32>
    %39 = arith.mulf %30, %37 : vector<1x16xf32>
    %40 = arith.addf %38, %39 : vector<1x16xf32>
    %41 = math.tanh %40 : vector<1x16xf32>
    %42 = arith.mulf %32, %41 : vector<1x16xf32>
    %43 = vector.extract_strided_slice %20 {offsets = [1, 0], sizes = [1, 64], strides = [1, 1]} : vector<8x64xf32> to vector<1x64xf32>
    %44 = arith.truncf %42 : vector<1x16xf32> to vector<1x16xbf16>
    %cst_32 = arith.constant dense<0.000000e+00> : vector<1x64xf32>
    %45 = tpu.matmul %44, %14, %cst_32 {dimension_numbers = #tpu.dot_dimension_numbers<[1], [0], [0], [1], [0, 0, 1, 1], [], []>} : vector<1x16xbf16>, vector<16x64xbf16>, vector<1x64xf32> -> vector<1x64xf32>
    %46 = arith.addf %43, %45 : vector<1x64xf32>
    %47 = arith.negf %46 : vector<1x64xf32>
    %48 = math.exp %47 : vector<1x64xf32>
    %cst_33 = arith.constant 1.000000e+00 : f32
    %49 = vector.broadcast %cst_33 : f32 to vector<1x64xf32>
    %50 = arith.addf %49, %48 : vector<1x64xf32>
    %51 = arith.divf %49, %50 : vector<1x64xf32>
    %52 = vector.extract_strided_slice %51 {offsets = [0, 0], sizes = [1, 16], strides = [1, 1]} : vector<1x64xf32> to vector<1x16xf32>
    %53 = vector.extract_strided_slice %51 {offsets = [0, 16], sizes = [1, 16], strides = [1, 1]} : vector<1x64xf32> to vector<1x16xf32>
    %54 = vector.extract_strided_slice %51 {offsets = [0, 32], sizes = [1, 16], strides = [1, 1]} : vector<1x64xf32> to vector<1x16xf32>
    %55 = vector.extract_strided_slice %51 {offsets = [0, 48], sizes = [1, 16], strides = [1, 1]} : vector<1x64xf32> to vector<1x16xf32>
    %cst_34 = arith.constant 2.000000e+00 : f32
    %56 = vector.broadcast %cst_34 : f32 to vector<1x16xf32>
    %57 = arith.mulf %56, %55 : vector<1x16xf32>
    %cst_35 = arith.constant 1.000000e+00 : f32
    %58 = vector.broadcast %cst_35 : f32 to vector<1x16xf32>
    %59 = arith.subf %57, %58 : vector<1x16xf32>
    %60 = arith.mulf %53, %40 : vector<1x16xf32>
    %61 = arith.mulf %52, %59 : vector<1x16xf32>
    %62 = arith.addf %60, %61 : vector<1x16xf32>
    %63 = math.tanh %62 : vector<1x16xf32>
    %64 = arith.mulf %54, %63 : vector<1x16xf32>
    %65 = vector.extract_strided_slice %20 {offsets = [2, 0], sizes = [1, 64], strides = [1, 1]} : vector<8x64xf32> to vector<1x64xf32>
    %66 = arith.truncf %64 : vector<1x16xf32> to vector<1x16xbf16>
    %cst_36 = arith.constant dense<0.000000e+00> : vector<1x64xf32>
    %67 = tpu.matmul %66, %14, %cst_36 {dimension_numbers = #tpu.dot_dimension_numbers<[1], [0], [0], [1], [0, 0, 1, 1], [], []>} : vector<1x16xbf16>, vector<16x64xbf16>, vector<1x64xf32> -> vector<1x64xf32>
    %68 = arith.addf %65, %67 : vector<1x64xf32>
    %69 = arith.negf %68 : vector<1x64xf32>
    %70 = math.exp %69 : vector<1x64xf32>
    %cst_37 = arith.constant 1.000000e+00 : f32
    %71 = vector.broadcast %cst_37 : f32 to vector<1x64xf32>
    %72 = arith.addf %71, %70 : vector<1x64xf32>
    %73 = arith.divf %71, %72 : vector<1x64xf32>
    %74 = vector.extract_strided_slice %73 {offsets = [0, 0], sizes = [1, 16], strides = [1, 1]} : vector<1x64xf32> to vector<1x16xf32>
    %75 = vector.extract_strided_slice %73 {offsets = [0, 16], sizes = [1, 16], strides = [1, 1]} : vector<1x64xf32> to vector<1x16xf32>
    %76 = vector.extract_strided_slice %73 {offsets = [0, 32], sizes = [1, 16], strides = [1, 1]} : vector<1x64xf32> to vector<1x16xf32>
    %77 = vector.extract_strided_slice %73 {offsets = [0, 48], sizes = [1, 16], strides = [1, 1]} : vector<1x64xf32> to vector<1x16xf32>
    %cst_38 = arith.constant 2.000000e+00 : f32
    %78 = vector.broadcast %cst_38 : f32 to vector<1x16xf32>
    %79 = arith.mulf %78, %77 : vector<1x16xf32>
    %cst_39 = arith.constant 1.000000e+00 : f32
    %80 = vector.broadcast %cst_39 : f32 to vector<1x16xf32>
    %81 = arith.subf %79, %80 : vector<1x16xf32>
    %82 = arith.mulf %75, %62 : vector<1x16xf32>
    %83 = arith.mulf %74, %81 : vector<1x16xf32>
    %84 = arith.addf %82, %83 : vector<1x16xf32>
    %85 = math.tanh %84 : vector<1x16xf32>
    %86 = arith.mulf %76, %85 : vector<1x16xf32>
    %87 = vector.extract_strided_slice %20 {offsets = [3, 0], sizes = [1, 64], strides = [1, 1]} : vector<8x64xf32> to vector<1x64xf32>
    %88 = arith.truncf %86 : vector<1x16xf32> to vector<1x16xbf16>
    %cst_40 = arith.constant dense<0.000000e+00> : vector<1x64xf32>
    %89 = tpu.matmul %88, %14, %cst_40 {dimension_numbers = #tpu.dot_dimension_numbers<[1], [0], [0], [1], [0, 0, 1, 1], [], []>} : vector<1x16xbf16>, vector<16x64xbf16>, vector<1x64xf32> -> vector<1x64xf32>
    %90 = arith.addf %87, %89 : vector<1x64xf32>
    %91 = arith.negf %90 : vector<1x64xf32>
    %92 = math.exp %91 : vector<1x64xf32>
    %cst_41 = arith.constant 1.000000e+00 : f32
    %93 = vector.broadcast %cst_41 : f32 to vector<1x64xf32>
    %94 = arith.addf %93, %92 : vector<1x64xf32>
    %95 = arith.divf %93, %94 : vector<1x64xf32>
    %96 = vector.extract_strided_slice %95 {offsets = [0, 0], sizes = [1, 16], strides = [1, 1]} : vector<1x64xf32> to vector<1x16xf32>
    %97 = vector.extract_strided_slice %95 {offsets = [0, 16], sizes = [1, 16], strides = [1, 1]} : vector<1x64xf32> to vector<1x16xf32>
    %98 = vector.extract_strided_slice %95 {offsets = [0, 32], sizes = [1, 16], strides = [1, 1]} : vector<1x64xf32> to vector<1x16xf32>
    %99 = vector.extract_strided_slice %95 {offsets = [0, 48], sizes = [1, 16], strides = [1, 1]} : vector<1x64xf32> to vector<1x16xf32>
    %cst_42 = arith.constant 2.000000e+00 : f32
    %100 = vector.broadcast %cst_42 : f32 to vector<1x16xf32>
    %101 = arith.mulf %100, %99 : vector<1x16xf32>
    %cst_43 = arith.constant 1.000000e+00 : f32
    %102 = vector.broadcast %cst_43 : f32 to vector<1x16xf32>
    %103 = arith.subf %101, %102 : vector<1x16xf32>
    %104 = arith.mulf %97, %84 : vector<1x16xf32>
    %105 = arith.mulf %96, %103 : vector<1x16xf32>
    %106 = arith.addf %104, %105 : vector<1x16xf32>
    %107 = math.tanh %106 : vector<1x16xf32>
    %108 = arith.mulf %98, %107 : vector<1x16xf32>
    %109 = vector.extract_strided_slice %20 {offsets = [4, 0], sizes = [1, 64], strides = [1, 1]} : vector<8x64xf32> to vector<1x64xf32>
    %110 = arith.truncf %108 : vector<1x16xf32> to vector<1x16xbf16>
    %cst_44 = arith.constant dense<0.000000e+00> : vector<1x64xf32>
    %111 = tpu.matmul %110, %14, %cst_44 {dimension_numbers = #tpu.dot_dimension_numbers<[1], [0], [0], [1], [0, 0, 1, 1], [], []>} : vector<1x16xbf16>, vector<16x64xbf16>, vector<1x64xf32> -> vector<1x64xf32>
    %112 = arith.addf %109, %111 : vector<1x64xf32>
    %113 = arith.negf %112 : vector<1x64xf32>
    %114 = math.exp %113 : vector<1x64xf32>
    %cst_45 = arith.constant 1.000000e+00 : f32
    %115 = vector.broadcast %cst_45 : f32 to vector<1x64xf32>
    %116 = arith.addf %115, %114 : vector<1x64xf32>
    %117 = arith.divf %115, %116 : vector<1x64xf32>
    %118 = vector.extract_strided_slice %117 {offsets = [0, 0], sizes = [1, 16], strides = [1, 1]} : vector<1x64xf32> to vector<1x16xf32>
    %119 = vector.extract_strided_slice %117 {offsets = [0, 16], sizes = [1, 16], strides = [1, 1]} : vector<1x64xf32> to vector<1x16xf32>
    %120 = vector.extract_strided_slice %117 {offsets = [0, 32], sizes = [1, 16], strides = [1, 1]} : vector<1x64xf32> to vector<1x16xf32>
    %121 = vector.extract_strided_slice %117 {offsets = [0, 48], sizes = [1, 16], strides = [1, 1]} : vector<1x64xf32> to vector<1x16xf32>
    %cst_46 = arith.constant 2.000000e+00 : f32
    %122 = vector.broadcast %cst_46 : f32 to vector<1x16xf32>
    %123 = arith.mulf %122, %121 : vector<1x16xf32>
    %cst_47 = arith.constant 1.000000e+00 : f32
    %124 = vector.broadcast %cst_47 : f32 to vector<1x16xf32>
    %125 = arith.subf %123, %124 : vector<1x16xf32>
    %126 = arith.mulf %119, %106 : vector<1x16xf32>
    %127 = arith.mulf %118, %125 : vector<1x16xf32>
    %128 = arith.addf %126, %127 : vector<1x16xf32>
    %129 = math.tanh %128 : vector<1x16xf32>
    %130 = arith.mulf %120, %129 : vector<1x16xf32>
    %131 = vector.extract_strided_slice %20 {offsets = [5, 0], sizes = [1, 64], strides = [1, 1]} : vector<8x64xf32> to vector<1x64xf32>
    %132 = arith.truncf %130 : vector<1x16xf32> to vector<1x16xbf16>
    %cst_48 = arith.constant dense<0.000000e+00> : vector<1x64xf32>
    %133 = tpu.matmul %132, %14, %cst_48 {dimension_numbers = #tpu.dot_dimension_numbers<[1], [0], [0], [1], [0, 0, 1, 1], [], []>} : vector<1x16xbf16>, vector<16x64xbf16>, vector<1x64xf32> -> vector<1x64xf32>
    %134 = arith.addf %131, %133 : vector<1x64xf32>
    %135 = arith.negf %134 : vector<1x64xf32>
    %136 = math.exp %135 : vector<1x64xf32>
    %cst_49 = arith.constant 1.000000e+00 : f32
    %137 = vector.broadcast %cst_49 : f32 to vector<1x64xf32>
    %138 = arith.addf %137, %136 : vector<1x64xf32>
    %139 = arith.divf %137, %138 : vector<1x64xf32>
    %140 = vector.extract_strided_slice %139 {offsets = [0, 0], sizes = [1, 16], strides = [1, 1]} : vector<1x64xf32> to vector<1x16xf32>
    %141 = vector.extract_strided_slice %139 {offsets = [0, 16], sizes = [1, 16], strides = [1, 1]} : vector<1x64xf32> to vector<1x16xf32>
    %142 = vector.extract_strided_slice %139 {offsets = [0, 32], sizes = [1, 16], strides = [1, 1]} : vector<1x64xf32> to vector<1x16xf32>
    %143 = vector.extract_strided_slice %139 {offsets = [0, 48], sizes = [1, 16], strides = [1, 1]} : vector<1x64xf32> to vector<1x16xf32>
    %cst_50 = arith.constant 2.000000e+00 : f32
    %144 = vector.broadcast %cst_50 : f32 to vector<1x16xf32>
    %145 = arith.mulf %144, %143 : vector<1x16xf32>
    %cst_51 = arith.constant 1.000000e+00 : f32
    %146 = vector.broadcast %cst_51 : f32 to vector<1x16xf32>
    %147 = arith.subf %145, %146 : vector<1x16xf32>
    %148 = arith.mulf %141, %128 : vector<1x16xf32>
    %149 = arith.mulf %140, %147 : vector<1x16xf32>
    %150 = arith.addf %148, %149 : vector<1x16xf32>
    %151 = math.tanh %150 : vector<1x16xf32>
    %152 = arith.mulf %142, %151 : vector<1x16xf32>
    %153 = vector.extract_strided_slice %20 {offsets = [6, 0], sizes = [1, 64], strides = [1, 1]} : vector<8x64xf32> to vector<1x64xf32>
    %154 = arith.truncf %152 : vector<1x16xf32> to vector<1x16xbf16>
    %cst_52 = arith.constant dense<0.000000e+00> : vector<1x64xf32>
    %155 = tpu.matmul %154, %14, %cst_52 {dimension_numbers = #tpu.dot_dimension_numbers<[1], [0], [0], [1], [0, 0, 1, 1], [], []>} : vector<1x16xbf16>, vector<16x64xbf16>, vector<1x64xf32> -> vector<1x64xf32>
    %156 = arith.addf %153, %155 : vector<1x64xf32>
    %157 = arith.negf %156 : vector<1x64xf32>
    %158 = math.exp %157 : vector<1x64xf32>
    %cst_53 = arith.constant 1.000000e+00 : f32
    %159 = vector.broadcast %cst_53 : f32 to vector<1x64xf32>
    %160 = arith.addf %159, %158 : vector<1x64xf32>
    %161 = arith.divf %159, %160 : vector<1x64xf32>
    %162 = vector.extract_strided_slice %161 {offsets = [0, 0], sizes = [1, 16], strides = [1, 1]} : vector<1x64xf32> to vector<1x16xf32>
    %163 = vector.extract_strided_slice %161 {offsets = [0, 16], sizes = [1, 16], strides = [1, 1]} : vector<1x64xf32> to vector<1x16xf32>
    %164 = vector.extract_strided_slice %161 {offsets = [0, 32], sizes = [1, 16], strides = [1, 1]} : vector<1x64xf32> to vector<1x16xf32>
    %165 = vector.extract_strided_slice %161 {offsets = [0, 48], sizes = [1, 16], strides = [1, 1]} : vector<1x64xf32> to vector<1x16xf32>
    %cst_54 = arith.constant 2.000000e+00 : f32
    %166 = vector.broadcast %cst_54 : f32 to vector<1x16xf32>
    %167 = arith.mulf %166, %165 : vector<1x16xf32>
    %cst_55 = arith.constant 1.000000e+00 : f32
    %168 = vector.broadcast %cst_55 : f32 to vector<1x16xf32>
    %169 = arith.subf %167, %168 : vector<1x16xf32>
    %170 = arith.mulf %163, %150 : vector<1x16xf32>
    %171 = arith.mulf %162, %169 : vector<1x16xf32>
    %172 = arith.addf %170, %171 : vector<1x16xf32>
    %173 = math.tanh %172 : vector<1x16xf32>
    %174 = arith.mulf %164, %173 : vector<1x16xf32>
    %175 = vector.extract_strided_slice %20 {offsets = [7, 0], sizes = [1, 64], strides = [1, 1]} : vector<8x64xf32> to vector<1x64xf32>
    %176 = arith.truncf %174 : vector<1x16xf32> to vector<1x16xbf16>
    %cst_56 = arith.constant dense<0.000000e+00> : vector<1x64xf32>
    %177 = tpu.matmul %176, %14, %cst_56 {dimension_numbers = #tpu.dot_dimension_numbers<[1], [0], [0], [1], [0, 0, 1, 1], [], []>} : vector<1x16xbf16>, vector<16x64xbf16>, vector<1x64xf32> -> vector<1x64xf32>
    %178 = arith.addf %175, %177 : vector<1x64xf32>
    %179 = arith.negf %178 : vector<1x64xf32>
    %180 = math.exp %179 : vector<1x64xf32>
    %cst_57 = arith.constant 1.000000e+00 : f32
    %181 = vector.broadcast %cst_57 : f32 to vector<1x64xf32>
    %182 = arith.addf %181, %180 : vector<1x64xf32>
    %183 = arith.divf %181, %182 : vector<1x64xf32>
    %184 = vector.extract_strided_slice %183 {offsets = [0, 0], sizes = [1, 16], strides = [1, 1]} : vector<1x64xf32> to vector<1x16xf32>
    %185 = vector.extract_strided_slice %183 {offsets = [0, 16], sizes = [1, 16], strides = [1, 1]} : vector<1x64xf32> to vector<1x16xf32>
    %186 = vector.extract_strided_slice %183 {offsets = [0, 32], sizes = [1, 16], strides = [1, 1]} : vector<1x64xf32> to vector<1x16xf32>
    %187 = vector.extract_strided_slice %183 {offsets = [0, 48], sizes = [1, 16], strides = [1, 1]} : vector<1x64xf32> to vector<1x16xf32>
    %cst_58 = arith.constant 2.000000e+00 : f32
    %188 = vector.broadcast %cst_58 : f32 to vector<1x16xf32>
    %189 = arith.mulf %188, %187 : vector<1x16xf32>
    %cst_59 = arith.constant 1.000000e+00 : f32
    %190 = vector.broadcast %cst_59 : f32 to vector<1x16xf32>
    %191 = arith.subf %189, %190 : vector<1x16xf32>
    %192 = arith.mulf %185, %172 : vector<1x16xf32>
    %193 = arith.mulf %184, %191 : vector<1x16xf32>
    %194 = arith.addf %192, %193 : vector<1x16xf32>
    %195 = math.tanh %194 : vector<1x16xf32>
    %196 = arith.mulf %186, %195 : vector<1x16xf32>
    %197 = tpu.concatenate %42, %64, %86, %108, %130, %152, %174, %196 in 0 : vector<1x16xf32>, vector<1x16xf32>, vector<1x16xf32>, vector<1x16xf32>, vector<1x16xf32>, vector<1x16xf32>, vector<1x16xf32>, vector<1x16xf32> -> vector<8x16xf32>
    %c0_60 = arith.constant 0 : index
    %c0_61 = arith.constant 0 : index
    %198 = vector.load %arg14[%c0_60, %c0_61] : memref<16x96xf32, #tpu.memory_space<vmem>>, vector<8x96xf32>
    %199 = arith.truncf %197 : vector<8x16xf32> to vector<8x16xbf16>
    %cst_62 = arith.constant dense<0.000000e+00> : vector<8x96xf32>
    %200 = tpu.matmul %199, %16, %cst_62 {dimension_numbers = #tpu.dot_dimension_numbers<[1], [0], [0], [1], [0, 0, 1, 1], [], []>} : vector<8x16xbf16>, vector<16x96xbf16>, vector<8x96xf32> -> vector<8x96xf32>
    %201 = arith.addf %198, %200 : vector<8x96xf32>
    %c0_63 = arith.constant 0 : index
    %c0_64 = arith.constant 0 : index
    %202 = vector.load %arg14[%c0_63, %c0_64] : memref<16x96xf32, #tpu.memory_space<vmem>>, vector<8x96xf32>
    tpu.vector_store %arg14[%c0_63, %c0_64], %201 {strides = array<i32>} : memref<16x96xf32, #tpu.memory_space<vmem>>, vector<8x96xf32>,
    %c0_i32 = arith.constant 0 : i32
    %c8_i32 = arith.constant 8 : i32
    %203 = arith.muli %c0_i32, %c8_i32 : i32
    %204 = tpu.assume_multiple %203, 8 : i32
    %205 = arith.index_cast %204 : i32 to index
    %c0_65 = arith.constant 0 : index
    %206 = vector.load %arg14[%205, %c0_65] : memref<16x96xf32, #tpu.memory_space<vmem>>, vector<8x96xf32>
    %207 = vector.extract_strided_slice %206 {offsets = [0, 0], sizes = [1, 96], strides = [1, 1]} : vector<8x96xf32> to vector<1x96xf32>
    %208 = arith.truncf %19 : vector<1x32xf32> to vector<1x32xbf16>
    %cst_66 = arith.constant dense<0.000000e+00> : vector<1x96xf32>
    %209 = tpu.matmul %208, %15, %cst_66 {dimension_numbers = #tpu.dot_dimension_numbers<[1], [0], [0], [1], [0, 0, 1, 1], [], []>} : vector<1x32xbf16>, vector<32x96xbf16>, vector<1x96xf32> -> vector<1x96xf32>
    %210 = vector.extract_strided_slice %207 {offsets = [0, 0], sizes = [1, 64], strides = [1, 1]} : vector<1x96xf32> to vector<1x64xf32>
    %211 = vector.extract_strided_slice %209 {offsets = [0, 0], sizes = [1, 64], strides = [1, 1]} : vector<1x96xf32> to vector<1x64xf32>
    %212 = arith.addf %210, %211 : vector<1x64xf32>
    %213 = arith.negf %212 : vector<1x64xf32>
    %214 = math.exp %213 : vector<1x64xf32>
    %cst_67 = arith.constant 1.000000e+00 : f32
    %215 = vector.broadcast %cst_67 : f32 to vector<1x64xf32>
    %216 = arith.addf %215, %214 : vector<1x64xf32>
    %217 = arith.divf %215, %216 : vector<1x64xf32>
    %218 = vector.extract_strided_slice %217 {offsets = [0, 0], sizes = [1, 32], strides = [1, 1]} : vector<1x64xf32> to vector<1x32xf32>
    %219 = vector.extract_strided_slice %217 {offsets = [0, 32], sizes = [1, 32], strides = [1, 1]} : vector<1x64xf32> to vector<1x32xf32>
    %220 = vector.extract_strided_slice %207 {offsets = [0, 64], sizes = [1, 32], strides = [1, 1]} : vector<1x96xf32> to vector<1x32xf32>
    %221 = vector.extract_strided_slice %209 {offsets = [0, 64], sizes = [1, 32], strides = [1, 1]} : vector<1x96xf32> to vector<1x32xf32>
    %222 = arith.addf %221, %17 : vector<1x32xf32>
    %223 = arith.mulf %218, %222 : vector<1x32xf32>
    %224 = arith.addf %220, %223 : vector<1x32xf32>
    %225 = math.tanh %224 : vector<1x32xf32>
    %cst_68 = arith.constant 1.000000e+00 : f32
    %226 = vector.broadcast %cst_68 : f32 to vector<1x32xf32>
    %227 = arith.subf %226, %219 : vector<1x32xf32>
    %228 = arith.mulf %227, %225 : vector<1x32xf32>
    %229 = arith.mulf %219, %19 : vector<1x32xf32>
    %230 = arith.addf %228, %229 : vector<1x32xf32>
    %231 = vector.extract_strided_slice %206 {offsets = [1, 0], sizes = [1, 96], strides = [1, 1]} : vector<8x96xf32> to vector<1x96xf32>
    %232 = arith.truncf %230 : vector<1x32xf32> to vector<1x32xbf16>
    %cst_69 = arith.constant dense<0.000000e+00> : vector<1x96xf32>
    %233 = tpu.matmul %232, %15, %cst_69 {dimension_numbers = #tpu.dot_dimension_numbers<[1], [0], [0], [1], [0, 0, 1, 1], [], []>} : vector<1x32xbf16>, vector<32x96xbf16>, vector<1x96xf32> -> vector<1x96xf32>
    %234 = vector.extract_strided_slice %231 {offsets = [0, 0], sizes = [1, 64], strides = [1, 1]} : vector<1x96xf32> to vector<1x64xf32>
    %235 = vector.extract_strided_slice %233 {offsets = [0, 0], sizes = [1, 64], strides = [1, 1]} : vector<1x96xf32> to vector<1x64xf32>
    %236 = arith.addf %234, %235 : vector<1x64xf32>
    %237 = arith.negf %236 : vector<1x64xf32>
    %238 = math.exp %237 : vector<1x64xf32>
    %cst_70 = arith.constant 1.000000e+00 : f32
    %239 = vector.broadcast %cst_70 : f32 to vector<1x64xf32>
    %240 = arith.addf %239, %238 : vector<1x64xf32>
    %241 = arith.divf %239, %240 : vector<1x64xf32>
    %242 = vector.extract_strided_slice %241 {offsets = [0, 0], sizes = [1, 32], strides = [1, 1]} : vector<1x64xf32> to vector<1x32xf32>
    %243 = vector.extract_strided_slice %241 {offsets = [0, 32], sizes = [1, 32], strides = [1, 1]} : vector<1x64xf32> to vector<1x32xf32>
    %244 = vector.extract_strided_slice %231 {offsets = [0, 64], sizes = [1, 32], strides = [1, 1]} : vector<1x96xf32> to vector<1x32xf32>
    %245 = vector.extract_strided_slice %233 {offsets = [0, 64], sizes = [1, 32], strides = [1, 1]} : vector<1x96xf32> to vector<1x32xf32>
    %246 = arith.addf %245, %17 : vector<1x32xf32>
    %247 = arith.mulf %242, %246 : vector<1x32xf32>
    %248 = arith.addf %244, %247 : vector<1x32xf32>
    %249 = math.tanh %248 : vector<1x32xf32>
    %cst_71 = arith.constant 1.000000e+00 : f32
    %250 = vector.broadcast %cst_71 : f32 to vector<1x32xf32>
    %251 = arith.subf %250, %243 : vector<1x32xf32>
    %252 = arith.mulf %251, %249 : vector<1x32xf32>
    %253 = arith.mulf %243, %230 : vector<1x32xf32>
    %254 = arith.addf %252, %253 : vector<1x32xf32>
    %255 = vector.extract_strided_slice %206 {offsets = [2, 0], sizes = [1, 96], strides = [1, 1]} : vector<8x96xf32> to vector<1x96xf32>
    %256 = arith.truncf %254 : vector<1x32xf32> to vector<1x32xbf16>
    %cst_72 = arith.constant dense<0.000000e+00> : vector<1x96xf32>
    %257 = tpu.matmul %256, %15, %cst_72 {dimension_numbers = #tpu.dot_dimension_numbers<[1], [0], [0], [1], [0, 0, 1, 1], [], []>} : vector<1x32xbf16>, vector<32x96xbf16>, vector<1x96xf32> -> vector<1x96xf32>
    %258 = vector.extract_strided_slice %255 {offsets = [0, 0], sizes = [1, 64], strides = [1, 1]} : vector<1x96xf32> to vector<1x64xf32>
    %259 = vector.extract_strided_slice %257 {offsets = [0, 0], sizes = [1, 64], strides = [1, 1]} : vector<1x96xf32> to vector<1x64xf32>
    %260 = arith.addf %258, %259 : vector<1x64xf32>
    %261 = arith.negf %260 : vector<1x64xf32>
    %262 = math.exp %261 : vector<1x64xf32>
    %cst_73 = arith.constant 1.000000e+00 : f32
    %263 = vector.broadcast %cst_73 : f32 to vector<1x64xf32>
    %264 = arith.addf %263, %262 : vector<1x64xf32>
    %265 = arith.divf %263, %264 : vector<1x64xf32>
    %266 = vector.extract_strided_slice %265 {offsets = [0, 0], sizes = [1, 32], strides = [1, 1]} : vector<1x64xf32> to vector<1x32xf32>
    %267 = vector.extract_strided_slice %265 {offsets = [0, 32], sizes = [1, 32], strides = [1, 1]} : vector<1x64xf32> to vector<1x32xf32>
    %268 = vector.extract_strided_slice %255 {offsets = [0, 64], sizes = [1, 32], strides = [1, 1]} : vector<1x96xf32> to vector<1x32xf32>
    %269 = vector.extract_strided_slice %257 {offsets = [0, 64], sizes = [1, 32], strides = [1, 1]} : vector<1x96xf32> to vector<1x32xf32>
    %270 = arith.addf %269, %17 : vector<1x32xf32>
    %271 = arith.mulf %266, %270 : vector<1x32xf32>
    %272 = arith.addf %268, %271 : vector<1x32xf32>
    %273 = math.tanh %272 : vector<1x32xf32>
    %cst_74 = arith.constant 1.000000e+00 : f32
    %274 = vector.broadcast %cst_74 : f32 to vector<1x32xf32>
    %275 = arith.subf %274, %267 : vector<1x32xf32>
    %276 = arith.mulf %275, %273 : vector<1x32xf32>
    %277 = arith.mulf %267, %254 : vector<1x32xf32>
    %278 = arith.addf %276, %277 : vector<1x32xf32>
    %279 = vector.extract_strided_slice %206 {offsets = [3, 0], sizes = [1, 96], strides = [1, 1]} : vector<8x96xf32> to vector<1x96xf32>
    %280 = arith.truncf %278 : vector<1x32xf32> to vector<1x32xbf16>
    %cst_75 = arith.constant dense<0.000000e+00> : vector<1x96xf32>
    %281 = tpu.matmul %280, %15, %cst_75 {dimension_numbers = #tpu.dot_dimension_numbers<[1], [0], [0], [1], [0, 0, 1, 1], [], []>} : vector<1x32xbf16>, vector<32x96xbf16>, vector<1x96xf32> -> vector<1x96xf32>
    %282 = vector.extract_strided_slice %279 {offsets = [0, 0], sizes = [1, 64], strides = [1, 1]} : vector<1x96xf32> to vector<1x64xf32>
    %283 = vector.extract_strided_slice %281 {offsets = [0, 0], sizes = [1, 64], strides = [1, 1]} : vector<1x96xf32> to vector<1x64xf32>
    %284 = arith.addf %282, %283 : vector<1x64xf32>
    %285 = arith.negf %284 : vector<1x64xf32>
    %286 = math.exp %285 : vector<1x64xf32>
    %cst_76 = arith.constant 1.000000e+00 : f32
    %287 = vector.broadcast %cst_76 : f32 to vector<1x64xf32>
    %288 = arith.addf %287, %286 : vector<1x64xf32>
    %289 = arith.divf %287, %288 : vector<1x64xf32>
    %290 = vector.extract_strided_slice %289 {offsets = [0, 0], sizes = [1, 32], strides = [1, 1]} : vector<1x64xf32> to vector<1x32xf32>
    %291 = vector.extract_strided_slice %289 {offsets = [0, 32], sizes = [1, 32], strides = [1, 1]} : vector<1x64xf32> to vector<1x32xf32>
    %292 = vector.extract_strided_slice %279 {offsets = [0, 64], sizes = [1, 32], strides = [1, 1]} : vector<1x96xf32> to vector<1x32xf32>
    %293 = vector.extract_strided_slice %281 {offsets = [0, 64], sizes = [1, 32], strides = [1, 1]} : vector<1x96xf32> to vector<1x32xf32>
    %294 = arith.addf %293, %17 : vector<1x32xf32>
    %295 = arith.mulf %290, %294 : vector<1x32xf32>
    %296 = arith.addf %292, %295 : vector<1x32xf32>
    %297 = math.tanh %296 : vector<1x32xf32>
    %cst_77 = arith.constant 1.000000e+00 : f32
    %298 = vector.broadcast %cst_77 : f32 to vector<1x32xf32>
    %299 = arith.subf %298, %291 : vector<1x32xf32>
    %300 = arith.mulf %299, %297 : vector<1x32xf32>
    %301 = arith.mulf %291, %278 : vector<1x32xf32>
    %302 = arith.addf %300, %301 : vector<1x32xf32>
    %303 = vector.extract_strided_slice %206 {offsets = [4, 0], sizes = [1, 96], strides = [1, 1]} : vector<8x96xf32> to vector<1x96xf32>
    %304 = arith.truncf %302 : vector<1x32xf32> to vector<1x32xbf16>
    %cst_78 = arith.constant dense<0.000000e+00> : vector<1x96xf32>
    %305 = tpu.matmul %304, %15, %cst_78 {dimension_numbers = #tpu.dot_dimension_numbers<[1], [0], [0], [1], [0, 0, 1, 1], [], []>} : vector<1x32xbf16>, vector<32x96xbf16>, vector<1x96xf32> -> vector<1x96xf32>
    %306 = vector.extract_strided_slice %303 {offsets = [0, 0], sizes = [1, 64], strides = [1, 1]} : vector<1x96xf32> to vector<1x64xf32>
    %307 = vector.extract_strided_slice %305 {offsets = [0, 0], sizes = [1, 64], strides = [1, 1]} : vector<1x96xf32> to vector<1x64xf32>
    %308 = arith.addf %306, %307 : vector<1x64xf32>
    %309 = arith.negf %308 : vector<1x64xf32>
    %310 = math.exp %309 : vector<1x64xf32>
    %cst_79 = arith.constant 1.000000e+00 : f32
    %311 = vector.broadcast %cst_79 : f32 to vector<1x64xf32>
    %312 = arith.addf %311, %310 : vector<1x64xf32>
    %313 = arith.divf %311, %312 : vector<1x64xf32>
    %314 = vector.extract_strided_slice %313 {offsets = [0, 0], sizes = [1, 32], strides = [1, 1]} : vector<1x64xf32> to vector<1x32xf32>
    %315 = vector.extract_strided_slice %313 {offsets = [0, 32], sizes = [1, 32], strides = [1, 1]} : vector<1x64xf32> to vector<1x32xf32>
    %316 = vector.extract_strided_slice %303 {offsets = [0, 64], sizes = [1, 32], strides = [1, 1]} : vector<1x96xf32> to vector<1x32xf32>
    %317 = vector.extract_strided_slice %305 {offsets = [0, 64], sizes = [1, 32], strides = [1, 1]} : vector<1x96xf32> to vector<1x32xf32>
    %318 = arith.addf %317, %17 : vector<1x32xf32>
    %319 = arith.mulf %314, %318 : vector<1x32xf32>
    %320 = arith.addf %316, %319 : vector<1x32xf32>
    %321 = math.tanh %320 : vector<1x32xf32>
    %cst_80 = arith.constant 1.000000e+00 : f32
    %322 = vector.broadcast %cst_80 : f32 to vector<1x32xf32>
    %323 = arith.subf %322, %315 : vector<1x32xf32>
    %324 = arith.mulf %323, %321 : vector<1x32xf32>
    %325 = arith.mulf %315, %302 : vector<1x32xf32>
    %326 = arith.addf %324, %325 : vector<1x32xf32>
    %327 = vector.extract_strided_slice %206 {offsets = [5, 0], sizes = [1, 96], strides = [1, 1]} : vector<8x96xf32> to vector<1x96xf32>
    %328 = arith.truncf %326 : vector<1x32xf32> to vector<1x32xbf16>
    %cst_81 = arith.constant dense<0.000000e+00> : vector<1x96xf32>
    %329 = tpu.matmul %328, %15, %cst_81 {dimension_numbers = #tpu.dot_dimension_numbers<[1], [0], [0], [1], [0, 0, 1, 1], [], []>} : vector<1x32xbf16>, vector<32x96xbf16>, vector<1x96xf32> -> vector<1x96xf32>
    %330 = vector.extract_strided_slice %327 {offsets = [0, 0], sizes = [1, 64], strides = [1, 1]} : vector<1x96xf32> to vector<1x64xf32>
    %331 = vector.extract_strided_slice %329 {offsets = [0, 0], sizes = [1, 64], strides = [1, 1]} : vector<1x96xf32> to vector<1x64xf32>
    %332 = arith.addf %330, %331 : vector<1x64xf32>
    %333 = arith.negf %332 : vector<1x64xf32>
    %334 = math.exp %333 : vector<1x64xf32>
    %cst_82 = arith.constant 1.000000e+00 : f32
    %335 = vector.broadcast %cst_82 : f32 to vector<1x64xf32>
    %336 = arith.addf %335, %334 : vector<1x64xf32>
    %337 = arith.divf %335, %336 : vector<1x64xf32>
    %338 = vector.extract_strided_slice %337 {offsets = [0, 0], sizes = [1, 32], strides = [1, 1]} : vector<1x64xf32> to vector<1x32xf32>
    %339 = vector.extract_strided_slice %337 {offsets = [0, 32], sizes = [1, 32], strides = [1, 1]} : vector<1x64xf32> to vector<1x32xf32>
    %340 = vector.extract_strided_slice %327 {offsets = [0, 64], sizes = [1, 32], strides = [1, 1]} : vector<1x96xf32> to vector<1x32xf32>
    %341 = vector.extract_strided_slice %329 {offsets = [0, 64], sizes = [1, 32], strides = [1, 1]} : vector<1x96xf32> to vector<1x32xf32>
    %342 = arith.addf %341, %17 : vector<1x32xf32>
    %343 = arith.mulf %338, %342 : vector<1x32xf32>
    %344 = arith.addf %340, %343 : vector<1x32xf32>
    %345 = math.tanh %344 : vector<1x32xf32>
    %cst_83 = arith.constant 1.000000e+00 : f32
    %346 = vector.broadcast %cst_83 : f32 to vector<1x32xf32>
    %347 = arith.subf %346, %339 : vector<1x32xf32>
    %348 = arith.mulf %347, %345 : vector<1x32xf32>
    %349 = arith.mulf %339, %326 : vector<1x32xf32>
    %350 = arith.addf %348, %349 : vector<1x32xf32>
    %351 = vector.extract_strided_slice %206 {offsets = [6, 0], sizes = [1, 96], strides = [1, 1]} : vector<8x96xf32> to vector<1x96xf32>
    %352 = arith.truncf %350 : vector<1x32xf32> to vector<1x32xbf16>
    %cst_84 = arith.constant dense<0.000000e+00> : vector<1x96xf32>
    %353 = tpu.matmul %352, %15, %cst_84 {dimension_numbers = #tpu.dot_dimension_numbers<[1], [0], [0], [1], [0, 0, 1, 1], [], []>} : vector<1x32xbf16>, vector<32x96xbf16>, vector<1x96xf32> -> vector<1x96xf32>
    %354 = vector.extract_strided_slice %351 {offsets = [0, 0], sizes = [1, 64], strides = [1, 1]} : vector<1x96xf32> to vector<1x64xf32>
    %355 = vector.extract_strided_slice %353 {offsets = [0, 0], sizes = [1, 64], strides = [1, 1]} : vector<1x96xf32> to vector<1x64xf32>
    %356 = arith.addf %354, %355 : vector<1x64xf32>
    %357 = arith.negf %356 : vector<1x64xf32>
    %358 = math.exp %357 : vector<1x64xf32>
    %cst_85 = arith.constant 1.000000e+00 : f32
    %359 = vector.broadcast %cst_85 : f32 to vector<1x64xf32>
    %360 = arith.addf %359, %358 : vector<1x64xf32>
    %361 = arith.divf %359, %360 : vector<1x64xf32>
    %362 = vector.extract_strided_slice %361 {offsets = [0, 0], sizes = [1, 32], strides = [1, 1]} : vector<1x64xf32> to vector<1x32xf32>
    %363 = vector.extract_strided_slice %361 {offsets = [0, 32], sizes = [1, 32], strides = [1, 1]} : vector<1x64xf32> to vector<1x32xf32>
    %364 = vector.extract_strided_slice %351 {offsets = [0, 64], sizes = [1, 32], strides = [1, 1]} : vector<1x96xf32> to vector<1x32xf32>
    %365 = vector.extract_strided_slice %353 {offsets = [0, 64], sizes = [1, 32], strides = [1, 1]} : vector<1x96xf32> to vector<1x32xf32>
    %366 = arith.addf %365, %17 : vector<1x32xf32>
    %367 = arith.mulf %362, %366 : vector<1x32xf32>
    %368 = arith.addf %364, %367 : vector<1x32xf32>
    %369 = math.tanh %368 : vector<1x32xf32>
    %cst_86 = arith.constant 1.000000e+00 : f32
    %370 = vector.broadcast %cst_86 : f32 to vector<1x32xf32>
    %371 = arith.subf %370, %363 : vector<1x32xf32>
    %372 = arith.mulf %371, %369 : vector<1x32xf32>
    %373 = arith.mulf %363, %350 : vector<1x32xf32>
    %374 = arith.addf %372, %373 : vector<1x32xf32>
    %375 = vector.extract_strided_slice %206 {offsets = [7, 0], sizes = [1, 96], strides = [1, 1]} : vector<8x96xf32> to vector<1x96xf32>
    %376 = arith.truncf %374 : vector<1x32xf32> to vector<1x32xbf16>
    %cst_87 = arith.constant dense<0.000000e+00> : vector<1x96xf32>
    %377 = tpu.matmul %376, %15, %cst_87 {dimension_numbers = #tpu.dot_dimension_numbers<[1], [0], [0], [1], [0, 0, 1, 1], [], []>} : vector<1x32xbf16>, vector<32x96xbf16>, vector<1x96xf32> -> vector<1x96xf32>
    %378 = vector.extract_strided_slice %375 {offsets = [0, 0], sizes = [1, 64], strides = [1, 1]} : vector<1x96xf32> to vector<1x64xf32>
    %379 = vector.extract_strided_slice %377 {offsets = [0, 0], sizes = [1, 64], strides = [1, 1]} : vector<1x96xf32> to vector<1x64xf32>
    %380 = arith.addf %378, %379 : vector<1x64xf32>
    %381 = arith.negf %380 : vector<1x64xf32>
    %382 = math.exp %381 : vector<1x64xf32>
    %cst_88 = arith.constant 1.000000e+00 : f32
    %383 = vector.broadcast %cst_88 : f32 to vector<1x64xf32>
    %384 = arith.addf %383, %382 : vector<1x64xf32>
    %385 = arith.divf %383, %384 : vector<1x64xf32>
    %386 = vector.extract_strided_slice %385 {offsets = [0, 0], sizes = [1, 32], strides = [1, 1]} : vector<1x64xf32> to vector<1x32xf32>
    %387 = vector.extract_strided_slice %385 {offsets = [0, 32], sizes = [1, 32], strides = [1, 1]} : vector<1x64xf32> to vector<1x32xf32>
    %388 = vector.extract_strided_slice %375 {offsets = [0, 64], sizes = [1, 32], strides = [1, 1]} : vector<1x96xf32> to vector<1x32xf32>
    %389 = vector.extract_strided_slice %377 {offsets = [0, 64], sizes = [1, 32], strides = [1, 1]} : vector<1x96xf32> to vector<1x32xf32>
    %390 = arith.addf %389, %17 : vector<1x32xf32>
    %391 = arith.mulf %386, %390 : vector<1x32xf32>
    %392 = arith.addf %388, %391 : vector<1x32xf32>
    %393 = math.tanh %392 : vector<1x32xf32>
    %cst_89 = arith.constant 1.000000e+00 : f32
    %394 = vector.broadcast %cst_89 : f32 to vector<1x32xf32>
    %395 = arith.subf %394, %387 : vector<1x32xf32>
    %396 = arith.mulf %395, %393 : vector<1x32xf32>
    %397 = arith.mulf %387, %374 : vector<1x32xf32>
    %398 = arith.addf %396, %397 : vector<1x32xf32>
    %399 = tpu.concatenate %230, %254, %278, %302, %326, %350, %374, %398 in 0 : vector<1x32xf32>, vector<1x32xf32>, vector<1x32xf32>, vector<1x32xf32>, vector<1x32xf32>, vector<1x32xf32>, vector<1x32xf32>, vector<1x32xf32> -> vector<8x32xf32>
    %400 = arith.index_cast %204 : i32 to index
    %c0_90 = arith.constant 0 : index
    %401 = vector.load %arg15[%400, %c0_90] : memref<16x32xf32, #tpu.memory_space<vmem>>, vector<8x32xf32>
    tpu.vector_store %arg15[%400, %c0_90], %399 {strides = array<i32>} : memref<16x32xf32, #tpu.memory_space<vmem>>, vector<8x32xf32>,
    %c1_i32 = arith.constant 1 : i32
    %402 = arith.addi %c0_i32, %c1_i32 : i32
    %c8_i32_91 = arith.constant 8 : i32
    %403 = arith.muli %402, %c8_i32_91 : i32
    %404 = tpu.assume_multiple %403, 8 : i32
    %405 = arith.index_cast %404 : i32 to index
    %c0_92 = arith.constant 0 : index
    %406 = vector.load %arg13[%405, %c0_92] : memref<16x64xf32, #tpu.memory_space<vmem>>, vector<8x64xf32>
    %407 = vector.extract_strided_slice %406 {offsets = [0, 0], sizes = [1, 64], strides = [1, 1]} : vector<8x64xf32> to vector<1x64xf32>
    %408 = arith.truncf %196 : vector<1x16xf32> to vector<1x16xbf16>
    %cst_93 = arith.constant dense<0.000000e+00> : vector<1x64xf32>
    %409 = tpu.matmul %408, %14, %cst_93 {dimension_numbers = #tpu.dot_dimension_numbers<[1], [0], [0], [1], [0, 0, 1, 1], [], []>} : vector<1x16xbf16>, vector<16x64xbf16>, vector<1x64xf32> -> vector<1x64xf32>
    %410 = arith.addf %407, %409 : vector<1x64xf32>
    %411 = arith.negf %410 : vector<1x64xf32>
    %412 = math.exp %411 : vector<1x64xf32>
    %cst_94 = arith.constant 1.000000e+00 : f32
    %413 = vector.broadcast %cst_94 : f32 to vector<1x64xf32>
    %414 = arith.addf %413, %412 : vector<1x64xf32>
    %415 = arith.divf %413, %414 : vector<1x64xf32>
    %416 = vector.extract_strided_slice %415 {offsets = [0, 0], sizes = [1, 16], strides = [1, 1]} : vector<1x64xf32> to vector<1x16xf32>
    %417 = vector.extract_strided_slice %415 {offsets = [0, 16], sizes = [1, 16], strides = [1, 1]} : vector<1x64xf32> to vector<1x16xf32>
    %418 = vector.extract_strided_slice %415 {offsets = [0, 32], sizes = [1, 16], strides = [1, 1]} : vector<1x64xf32> to vector<1x16xf32>
    %419 = vector.extract_strided_slice %415 {offsets = [0, 48], sizes = [1, 16], strides = [1, 1]} : vector<1x64xf32> to vector<1x16xf32>
    %cst_95 = arith.constant 2.000000e+00 : f32
    %420 = vector.broadcast %cst_95 : f32 to vector<1x16xf32>
    %421 = arith.mulf %420, %419 : vector<1x16xf32>
    %cst_96 = arith.constant 1.000000e+00 : f32
    %422 = vector.broadcast %cst_96 : f32 to vector<1x16xf32>
    %423 = arith.subf %421, %422 : vector<1x16xf32>
    %424 = arith.mulf %417, %194 : vector<1x16xf32>
    %425 = arith.mulf %416, %423 : vector<1x16xf32>
    %426 = arith.addf %424, %425 : vector<1x16xf32>
    %427 = math.tanh %426 : vector<1x16xf32>
    %428 = arith.mulf %418, %427 : vector<1x16xf32>
    %429 = vector.extract_strided_slice %406 {offsets = [1, 0], sizes = [1, 64], strides = [1, 1]} : vector<8x64xf32> to vector<1x64xf32>
    %430 = arith.truncf %428 : vector<1x16xf32> to vector<1x16xbf16>
    %cst_97 = arith.constant dense<0.000000e+00> : vector<1x64xf32>
    %431 = tpu.matmul %430, %14, %cst_97 {dimension_numbers = #tpu.dot_dimension_numbers<[1], [0], [0], [1], [0, 0, 1, 1], [], []>} : vector<1x16xbf16>, vector<16x64xbf16>, vector<1x64xf32> -> vector<1x64xf32>
    %432 = arith.addf %429, %431 : vector<1x64xf32>
    %433 = arith.negf %432 : vector<1x64xf32>
    %434 = math.exp %433 : vector<1x64xf32>
    %cst_98 = arith.constant 1.000000e+00 : f32
    %435 = vector.broadcast %cst_98 : f32 to vector<1x64xf32>
    %436 = arith.addf %435, %434 : vector<1x64xf32>
    %437 = arith.divf %435, %436 : vector<1x64xf32>
    %438 = vector.extract_strided_slice %437 {offsets = [0, 0], sizes = [1, 16], strides = [1, 1]} : vector<1x64xf32> to vector<1x16xf32>
    %439 = vector.extract_strided_slice %437 {offsets = [0, 16], sizes = [1, 16], strides = [1, 1]} : vector<1x64xf32> to vector<1x16xf32>
    %440 = vector.extract_strided_slice %437 {offsets = [0, 32], sizes = [1, 16], strides = [1, 1]} : vector<1x64xf32> to vector<1x16xf32>
    %441 = vector.extract_strided_slice %437 {offsets = [0, 48], sizes = [1, 16], strides = [1, 1]} : vector<1x64xf32> to vector<1x16xf32>
    %cst_99 = arith.constant 2.000000e+00 : f32
    %442 = vector.broadcast %cst_99 : f32 to vector<1x16xf32>
    %443 = arith.mulf %442, %441 : vector<1x16xf32>
    %cst_100 = arith.constant 1.000000e+00 : f32
    %444 = vector.broadcast %cst_100 : f32 to vector<1x16xf32>
    %445 = arith.subf %443, %444 : vector<1x16xf32>
    %446 = arith.mulf %439, %426 : vector<1x16xf32>
    %447 = arith.mulf %438, %445 : vector<1x16xf32>
    %448 = arith.addf %446, %447 : vector<1x16xf32>
    %449 = math.tanh %448 : vector<1x16xf32>
    %450 = arith.mulf %440, %449 : vector<1x16xf32>
    %451 = vector.extract_strided_slice %406 {offsets = [2, 0], sizes = [1, 64], strides = [1, 1]} : vector<8x64xf32> to vector<1x64xf32>
    %452 = arith.truncf %450 : vector<1x16xf32> to vector<1x16xbf16>
    %cst_101 = arith.constant dense<0.000000e+00> : vector<1x64xf32>
    %453 = tpu.matmul %452, %14, %cst_101 {dimension_numbers = #tpu.dot_dimension_numbers<[1], [0], [0], [1], [0, 0, 1, 1], [], []>} : vector<1x16xbf16>, vector<16x64xbf16>, vector<1x64xf32> -> vector<1x64xf32>
    %454 = arith.addf %451, %453 : vector<1x64xf32>
    %455 = arith.negf %454 : vector<1x64xf32>
    %456 = math.exp %455 : vector<1x64xf32>
    %cst_102 = arith.constant 1.000000e+00 : f32
    %457 = vector.broadcast %cst_102 : f32 to vector<1x64xf32>
    %458 = arith.addf %457, %456 : vector<1x64xf32>
    %459 = arith.divf %457, %458 : vector<1x64xf32>
    %460 = vector.extract_strided_slice %459 {offsets = [0, 0], sizes = [1, 16], strides = [1, 1]} : vector<1x64xf32> to vector<1x16xf32>
    %461 = vector.extract_strided_slice %459 {offsets = [0, 16], sizes = [1, 16], strides = [1, 1]} : vector<1x64xf32> to vector<1x16xf32>
    %462 = vector.extract_strided_slice %459 {offsets = [0, 32], sizes = [1, 16], strides = [1, 1]} : vector<1x64xf32> to vector<1x16xf32>
    %463 = vector.extract_strided_slice %459 {offsets = [0, 48], sizes = [1, 16], strides = [1, 1]} : vector<1x64xf32> to vector<1x16xf32>
    %cst_103 = arith.constant 2.000000e+00 : f32
    %464 = vector.broadcast %cst_103 : f32 to vector<1x16xf32>
    %465 = arith.mulf %464, %463 : vector<1x16xf32>
    %cst_104 = arith.constant 1.000000e+00 : f32
    %466 = vector.broadcast %cst_104 : f32 to vector<1x16xf32>
    %467 = arith.subf %465, %466 : vector<1x16xf32>
    %468 = arith.mulf %461, %448 : vector<1x16xf32>
    %469 = arith.mulf %460, %467 : vector<1x16xf32>
    %470 = arith.addf %468, %469 : vector<1x16xf32>
    %471 = math.tanh %470 : vector<1x16xf32>
    %472 = arith.mulf %462, %471 : vector<1x16xf32>
    %473 = vector.extract_strided_slice %406 {offsets = [3, 0], sizes = [1, 64], strides = [1, 1]} : vector<8x64xf32> to vector<1x64xf32>
    %474 = arith.truncf %472 : vector<1x16xf32> to vector<1x16xbf16>
    %cst_105 = arith.constant dense<0.000000e+00> : vector<1x64xf32>
    %475 = tpu.matmul %474, %14, %cst_105 {dimension_numbers = #tpu.dot_dimension_numbers<[1], [0], [0], [1], [0, 0, 1, 1], [], []>} : vector<1x16xbf16>, vector<16x64xbf16>, vector<1x64xf32> -> vector<1x64xf32>
    %476 = arith.addf %473, %475 : vector<1x64xf32>
    %477 = arith.negf %476 : vector<1x64xf32>
    %478 = math.exp %477 : vector<1x64xf32>
    %cst_106 = arith.constant 1.000000e+00 : f32
    %479 = vector.broadcast %cst_106 : f32 to vector<1x64xf32>
    %480 = arith.addf %479, %478 : vector<1x64xf32>
    %481 = arith.divf %479, %480 : vector<1x64xf32>
    %482 = vector.extract_strided_slice %481 {offsets = [0, 0], sizes = [1, 16], strides = [1, 1]} : vector<1x64xf32> to vector<1x16xf32>
    %483 = vector.extract_strided_slice %481 {offsets = [0, 16], sizes = [1, 16], strides = [1, 1]} : vector<1x64xf32> to vector<1x16xf32>
    %484 = vector.extract_strided_slice %481 {offsets = [0, 32], sizes = [1, 16], strides = [1, 1]} : vector<1x64xf32> to vector<1x16xf32>
    %485 = vector.extract_strided_slice %481 {offsets = [0, 48], sizes = [1, 16], strides = [1, 1]} : vector<1x64xf32> to vector<1x16xf32>
    %cst_107 = arith.constant 2.000000e+00 : f32
    %486 = vector.broadcast %cst_107 : f32 to vector<1x16xf32>
    %487 = arith.mulf %486, %485 : vector<1x16xf32>
    %cst_108 = arith.constant 1.000000e+00 : f32
    %488 = vector.broadcast %cst_108 : f32 to vector<1x16xf32>
    %489 = arith.subf %487, %488 : vector<1x16xf32>
    %490 = arith.mulf %483, %470 : vector<1x16xf32>
    %491 = arith.mulf %482, %489 : vector<1x16xf32>
    %492 = arith.addf %490, %491 : vector<1x16xf32>
    %493 = math.tanh %492 : vector<1x16xf32>
    %494 = arith.mulf %484, %493 : vector<1x16xf32>
    %495 = vector.extract_strided_slice %406 {offsets = [4, 0], sizes = [1, 64], strides = [1, 1]} : vector<8x64xf32> to vector<1x64xf32>
    %496 = arith.truncf %494 : vector<1x16xf32> to vector<1x16xbf16>
    %cst_109 = arith.constant dense<0.000000e+00> : vector<1x64xf32>
    %497 = tpu.matmul %496, %14, %cst_109 {dimension_numbers = #tpu.dot_dimension_numbers<[1], [0], [0], [1], [0, 0, 1, 1], [], []>} : vector<1x16xbf16>, vector<16x64xbf16>, vector<1x64xf32> -> vector<1x64xf32>
    %498 = arith.addf %495, %497 : vector<1x64xf32>
    %499 = arith.negf %498 : vector<1x64xf32>
    %500 = math.exp %499 : vector<1x64xf32>
    %cst_110 = arith.constant 1.000000e+00 : f32
    %501 = vector.broadcast %cst_110 : f32 to vector<1x64xf32>
    %502 = arith.addf %501, %500 : vector<1x64xf32>
    %503 = arith.divf %501, %502 : vector<1x64xf32>
    %504 = vector.extract_strided_slice %503 {offsets = [0, 0], sizes = [1, 16], strides = [1, 1]} : vector<1x64xf32> to vector<1x16xf32>
    %505 = vector.extract_strided_slice %503 {offsets = [0, 16], sizes = [1, 16], strides = [1, 1]} : vector<1x64xf32> to vector<1x16xf32>
    %506 = vector.extract_strided_slice %503 {offsets = [0, 32], sizes = [1, 16], strides = [1, 1]} : vector<1x64xf32> to vector<1x16xf32>
    %507 = vector.extract_strided_slice %503 {offsets = [0, 48], sizes = [1, 16], strides = [1, 1]} : vector<1x64xf32> to vector<1x16xf32>
    %cst_111 = arith.constant 2.000000e+00 : f32
    %508 = vector.broadcast %cst_111 : f32 to vector<1x16xf32>
    %509 = arith.mulf %508, %507 : vector<1x16xf32>
    %cst_112 = arith.constant 1.000000e+00 : f32
    %510 = vector.broadcast %cst_112 : f32 to vector<1x16xf32>
    %511 = arith.subf %509, %510 : vector<1x16xf32>
    %512 = arith.mulf %505, %492 : vector<1x16xf32>
    %513 = arith.mulf %504, %511 : vector<1x16xf32>
    %514 = arith.addf %512, %513 : vector<1x16xf32>
    %515 = math.tanh %514 : vector<1x16xf32>
    %516 = arith.mulf %506, %515 : vector<1x16xf32>
    %517 = vector.extract_strided_slice %406 {offsets = [5, 0], sizes = [1, 64], strides = [1, 1]} : vector<8x64xf32> to vector<1x64xf32>
    %518 = arith.truncf %516 : vector<1x16xf32> to vector<1x16xbf16>
    %cst_113 = arith.constant dense<0.000000e+00> : vector<1x64xf32>
    %519 = tpu.matmul %518, %14, %cst_113 {dimension_numbers = #tpu.dot_dimension_numbers<[1], [0], [0], [1], [0, 0, 1, 1], [], []>} : vector<1x16xbf16>, vector<16x64xbf16>, vector<1x64xf32> -> vector<1x64xf32>
    %520 = arith.addf %517, %519 : vector<1x64xf32>
    %521 = arith.negf %520 : vector<1x64xf32>
    %522 = math.exp %521 : vector<1x64xf32>
    %cst_114 = arith.constant 1.000000e+00 : f32
    %523 = vector.broadcast %cst_114 : f32 to vector<1x64xf32>
    %524 = arith.addf %523, %522 : vector<1x64xf32>
    %525 = arith.divf %523, %524 : vector<1x64xf32>
    %526 = vector.extract_strided_slice %525 {offsets = [0, 0], sizes = [1, 16], strides = [1, 1]} : vector<1x64xf32> to vector<1x16xf32>
    %527 = vector.extract_strided_slice %525 {offsets = [0, 16], sizes = [1, 16], strides = [1, 1]} : vector<1x64xf32> to vector<1x16xf32>
    %528 = vector.extract_strided_slice %525 {offsets = [0, 32], sizes = [1, 16], strides = [1, 1]} : vector<1x64xf32> to vector<1x16xf32>
    %529 = vector.extract_strided_slice %525 {offsets = [0, 48], sizes = [1, 16], strides = [1, 1]} : vector<1x64xf32> to vector<1x16xf32>
    %cst_115 = arith.constant 2.000000e+00 : f32
    %530 = vector.broadcast %cst_115 : f32 to vector<1x16xf32>
    %531 = arith.mulf %530, %529 : vector<1x16xf32>
    %cst_116 = arith.constant 1.000000e+00 : f32
    %532 = vector.broadcast %cst_116 : f32 to vector<1x16xf32>
    %533 = arith.subf %531, %532 : vector<1x16xf32>
    %534 = arith.mulf %527, %514 : vector<1x16xf32>
    %535 = arith.mulf %526, %533 : vector<1x16xf32>
    %536 = arith.addf %534, %535 : vector<1x16xf32>
    %537 = math.tanh %536 : vector<1x16xf32>
    %538 = arith.mulf %528, %537 : vector<1x16xf32>
    %539 = vector.extract_strided_slice %406 {offsets = [6, 0], sizes = [1, 64], strides = [1, 1]} : vector<8x64xf32> to vector<1x64xf32>
    %540 = arith.truncf %538 : vector<1x16xf32> to vector<1x16xbf16>
    %cst_117 = arith.constant dense<0.000000e+00> : vector<1x64xf32>
    %541 = tpu.matmul %540, %14, %cst_117 {dimension_numbers = #tpu.dot_dimension_numbers<[1], [0], [0], [1], [0, 0, 1, 1], [], []>} : vector<1x16xbf16>, vector<16x64xbf16>, vector<1x64xf32> -> vector<1x64xf32>
    %542 = arith.addf %539, %541 : vector<1x64xf32>
    %543 = arith.negf %542 : vector<1x64xf32>
    %544 = math.exp %543 : vector<1x64xf32>
    %cst_118 = arith.constant 1.000000e+00 : f32
    %545 = vector.broadcast %cst_118 : f32 to vector<1x64xf32>
    %546 = arith.addf %545, %544 : vector<1x64xf32>
    %547 = arith.divf %545, %546 : vector<1x64xf32>
    %548 = vector.extract_strided_slice %547 {offsets = [0, 0], sizes = [1, 16], strides = [1, 1]} : vector<1x64xf32> to vector<1x16xf32>
    %549 = vector.extract_strided_slice %547 {offsets = [0, 16], sizes = [1, 16], strides = [1, 1]} : vector<1x64xf32> to vector<1x16xf32>
    %550 = vector.extract_strided_slice %547 {offsets = [0, 32], sizes = [1, 16], strides = [1, 1]} : vector<1x64xf32> to vector<1x16xf32>
    %551 = vector.extract_strided_slice %547 {offsets = [0, 48], sizes = [1, 16], strides = [1, 1]} : vector<1x64xf32> to vector<1x16xf32>
    %cst_119 = arith.constant 2.000000e+00 : f32
    %552 = vector.broadcast %cst_119 : f32 to vector<1x16xf32>
    %553 = arith.mulf %552, %551 : vector<1x16xf32>
    %cst_120 = arith.constant 1.000000e+00 : f32
    %554 = vector.broadcast %cst_120 : f32 to vector<1x16xf32>
    %555 = arith.subf %553, %554 : vector<1x16xf32>
    %556 = arith.mulf %549, %536 : vector<1x16xf32>
    %557 = arith.mulf %548, %555 : vector<1x16xf32>
    %558 = arith.addf %556, %557 : vector<1x16xf32>
    %559 = math.tanh %558 : vector<1x16xf32>
    %560 = arith.mulf %550, %559 : vector<1x16xf32>
    %561 = vector.extract_strided_slice %406 {offsets = [7, 0], sizes = [1, 64], strides = [1, 1]} : vector<8x64xf32> to vector<1x64xf32>
    %562 = arith.truncf %560 : vector<1x16xf32> to vector<1x16xbf16>
    %cst_121 = arith.constant dense<0.000000e+00> : vector<1x64xf32>
    %563 = tpu.matmul %562, %14, %cst_121 {dimension_numbers = #tpu.dot_dimension_numbers<[1], [0], [0], [1], [0, 0, 1, 1], [], []>} : vector<1x16xbf16>, vector<16x64xbf16>, vector<1x64xf32> -> vector<1x64xf32>
    %564 = arith.addf %561, %563 : vector<1x64xf32>
    %565 = arith.negf %564 : vector<1x64xf32>
    %566 = math.exp %565 : vector<1x64xf32>
    %cst_122 = arith.constant 1.000000e+00 : f32
    %567 = vector.broadcast %cst_122 : f32 to vector<1x64xf32>
    %568 = arith.addf %567, %566 : vector<1x64xf32>
    %569 = arith.divf %567, %568 : vector<1x64xf32>
    %570 = vector.extract_strided_slice %569 {offsets = [0, 0], sizes = [1, 16], strides = [1, 1]} : vector<1x64xf32> to vector<1x16xf32>
    %571 = vector.extract_strided_slice %569 {offsets = [0, 16], sizes = [1, 16], strides = [1, 1]} : vector<1x64xf32> to vector<1x16xf32>
    %572 = vector.extract_strided_slice %569 {offsets = [0, 32], sizes = [1, 16], strides = [1, 1]} : vector<1x64xf32> to vector<1x16xf32>
    %573 = vector.extract_strided_slice %569 {offsets = [0, 48], sizes = [1, 16], strides = [1, 1]} : vector<1x64xf32> to vector<1x16xf32>
    %cst_123 = arith.constant 2.000000e+00 : f32
    %574 = vector.broadcast %cst_123 : f32 to vector<1x16xf32>
    %575 = arith.mulf %574, %573 : vector<1x16xf32>
    %cst_124 = arith.constant 1.000000e+00 : f32
    %576 = vector.broadcast %cst_124 : f32 to vector<1x16xf32>
    %577 = arith.subf %575, %576 : vector<1x16xf32>
    %578 = arith.mulf %571, %558 : vector<1x16xf32>
    %579 = arith.mulf %570, %577 : vector<1x16xf32>
    %580 = arith.addf %578, %579 : vector<1x16xf32>
    %581 = math.tanh %580 : vector<1x16xf32>
    %582 = arith.mulf %572, %581 : vector<1x16xf32>
    %583 = tpu.concatenate %428, %450, %472, %494, %516, %538, %560, %582 in 0 : vector<1x16xf32>, vector<1x16xf32>, vector<1x16xf32>, vector<1x16xf32>, vector<1x16xf32>, vector<1x16xf32>, vector<1x16xf32>, vector<1x16xf32> -> vector<8x16xf32>
    %584 = arith.index_cast %404 : i32 to index
    %c0_125 = arith.constant 0 : index
    %585 = vector.load %arg14[%584, %c0_125] : memref<16x96xf32, #tpu.memory_space<vmem>>, vector<8x96xf32>
    %586 = arith.truncf %583 : vector<8x16xf32> to vector<8x16xbf16>
    %cst_126 = arith.constant dense<0.000000e+00> : vector<8x96xf32>
    %587 = tpu.matmul %586, %16, %cst_126 {dimension_numbers = #tpu.dot_dimension_numbers<[1], [0], [0], [1], [0, 0, 1, 1], [], []>} : vector<8x16xbf16>, vector<16x96xbf16>, vector<8x96xf32> -> vector<8x96xf32>
    %588 = arith.addf %585, %587 : vector<8x96xf32>
    %589 = arith.index_cast %404 : i32 to index
    %c0_127 = arith.constant 0 : index
    %590 = vector.load %arg14[%589, %c0_127] : memref<16x96xf32, #tpu.memory_space<vmem>>, vector<8x96xf32>
    tpu.vector_store %arg14[%589, %c0_127], %588 {strides = array<i32>} : memref<16x96xf32, #tpu.memory_space<vmem>>, vector<8x96xf32>,
    %c1_i32_128 = arith.constant 1 : i32
    %c8 = arith.constant 8 : index
    %c0_129 = arith.constant 0 : index
    %591 = vector.load %arg14[%c8, %c0_129] : memref<16x96xf32, #tpu.memory_space<vmem>>, vector<8x96xf32>
    %592 = vector.extract_strided_slice %591 {offsets = [0, 0], sizes = [1, 96], strides = [1, 1]} : vector<8x96xf32> to vector<1x96xf32>
    %593 = arith.truncf %398 : vector<1x32xf32> to vector<1x32xbf16>
    %cst_130 = arith.constant dense<0.000000e+00> : vector<1x96xf32>
    %594 = tpu.matmul %593, %15, %cst_130 {dimension_numbers = #tpu.dot_dimension_numbers<[1], [0], [0], [1], [0, 0, 1, 1], [], []>} : vector<1x32xbf16>, vector<32x96xbf16>, vector<1x96xf32> -> vector<1x96xf32>
    %595 = vector.extract_strided_slice %592 {offsets = [0, 0], sizes = [1, 64], strides = [1, 1]} : vector<1x96xf32> to vector<1x64xf32>
    %596 = vector.extract_strided_slice %594 {offsets = [0, 0], sizes = [1, 64], strides = [1, 1]} : vector<1x96xf32> to vector<1x64xf32>
    %597 = arith.addf %595, %596 : vector<1x64xf32>
    %598 = arith.negf %597 : vector<1x64xf32>
    %599 = math.exp %598 : vector<1x64xf32>
    %cst_131 = arith.constant 1.000000e+00 : f32
    %600 = vector.broadcast %cst_131 : f32 to vector<1x64xf32>
    %601 = arith.addf %600, %599 : vector<1x64xf32>
    %602 = arith.divf %600, %601 : vector<1x64xf32>
    %603 = vector.extract_strided_slice %602 {offsets = [0, 0], sizes = [1, 32], strides = [1, 1]} : vector<1x64xf32> to vector<1x32xf32>
    %604 = vector.extract_strided_slice %602 {offsets = [0, 32], sizes = [1, 32], strides = [1, 1]} : vector<1x64xf32> to vector<1x32xf32>
    %605 = vector.extract_strided_slice %592 {offsets = [0, 64], sizes = [1, 32], strides = [1, 1]} : vector<1x96xf32> to vector<1x32xf32>
    %606 = vector.extract_strided_slice %594 {offsets = [0, 64], sizes = [1, 32], strides = [1, 1]} : vector<1x96xf32> to vector<1x32xf32>
    %607 = arith.addf %606, %17 : vector<1x32xf32>
    %608 = arith.mulf %603, %607 : vector<1x32xf32>
    %609 = arith.addf %605, %608 : vector<1x32xf32>
    %610 = math.tanh %609 : vector<1x32xf32>
    %cst_132 = arith.constant 1.000000e+00 : f32
    %611 = vector.broadcast %cst_132 : f32 to vector<1x32xf32>
    %612 = arith.subf %611, %604 : vector<1x32xf32>
    %613 = arith.mulf %612, %610 : vector<1x32xf32>
    %614 = arith.mulf %604, %398 : vector<1x32xf32>
    %615 = arith.addf %613, %614 : vector<1x32xf32>
    %616 = vector.extract_strided_slice %591 {offsets = [1, 0], sizes = [1, 96], strides = [1, 1]} : vector<8x96xf32> to vector<1x96xf32>
    %617 = arith.truncf %615 : vector<1x32xf32> to vector<1x32xbf16>
    %cst_133 = arith.constant dense<0.000000e+00> : vector<1x96xf32>
    %618 = tpu.matmul %617, %15, %cst_133 {dimension_numbers = #tpu.dot_dimension_numbers<[1], [0], [0], [1], [0, 0, 1, 1], [], []>} : vector<1x32xbf16>, vector<32x96xbf16>, vector<1x96xf32> -> vector<1x96xf32>
    %619 = vector.extract_strided_slice %616 {offsets = [0, 0], sizes = [1, 64], strides = [1, 1]} : vector<1x96xf32> to vector<1x64xf32>
    %620 = vector.extract_strided_slice %618 {offsets = [0, 0], sizes = [1, 64], strides = [1, 1]} : vector<1x96xf32> to vector<1x64xf32>
    %621 = arith.addf %619, %620 : vector<1x64xf32>
    %622 = arith.negf %621 : vector<1x64xf32>
    %623 = math.exp %622 : vector<1x64xf32>
    %cst_134 = arith.constant 1.000000e+00 : f32
    %624 = vector.broadcast %cst_134 : f32 to vector<1x64xf32>
    %625 = arith.addf %624, %623 : vector<1x64xf32>
    %626 = arith.divf %624, %625 : vector<1x64xf32>
    %627 = vector.extract_strided_slice %626 {offsets = [0, 0], sizes = [1, 32], strides = [1, 1]} : vector<1x64xf32> to vector<1x32xf32>
    %628 = vector.extract_strided_slice %626 {offsets = [0, 32], sizes = [1, 32], strides = [1, 1]} : vector<1x64xf32> to vector<1x32xf32>
    %629 = vector.extract_strided_slice %616 {offsets = [0, 64], sizes = [1, 32], strides = [1, 1]} : vector<1x96xf32> to vector<1x32xf32>
    %630 = vector.extract_strided_slice %618 {offsets = [0, 64], sizes = [1, 32], strides = [1, 1]} : vector<1x96xf32> to vector<1x32xf32>
    %631 = arith.addf %630, %17 : vector<1x32xf32>
    %632 = arith.mulf %627, %631 : vector<1x32xf32>
    %633 = arith.addf %629, %632 : vector<1x32xf32>
    %634 = math.tanh %633 : vector<1x32xf32>
    %cst_135 = arith.constant 1.000000e+00 : f32
    %635 = vector.broadcast %cst_135 : f32 to vector<1x32xf32>
    %636 = arith.subf %635, %628 : vector<1x32xf32>
    %637 = arith.mulf %636, %634 : vector<1x32xf32>
    %638 = arith.mulf %628, %615 : vector<1x32xf32>
    %639 = arith.addf %637, %638 : vector<1x32xf32>
    %640 = vector.extract_strided_slice %591 {offsets = [2, 0], sizes = [1, 96], strides = [1, 1]} : vector<8x96xf32> to vector<1x96xf32>
    %641 = arith.truncf %639 : vector<1x32xf32> to vector<1x32xbf16>
    %cst_136 = arith.constant dense<0.000000e+00> : vector<1x96xf32>
    %642 = tpu.matmul %641, %15, %cst_136 {dimension_numbers = #tpu.dot_dimension_numbers<[1], [0], [0], [1], [0, 0, 1, 1], [], []>} : vector<1x32xbf16>, vector<32x96xbf16>, vector<1x96xf32> -> vector<1x96xf32>
    %643 = vector.extract_strided_slice %640 {offsets = [0, 0], sizes = [1, 64], strides = [1, 1]} : vector<1x96xf32> to vector<1x64xf32>
    %644 = vector.extract_strided_slice %642 {offsets = [0, 0], sizes = [1, 64], strides = [1, 1]} : vector<1x96xf32> to vector<1x64xf32>
    %645 = arith.addf %643, %644 : vector<1x64xf32>
    %646 = arith.negf %645 : vector<1x64xf32>
    %647 = math.exp %646 : vector<1x64xf32>
    %cst_137 = arith.constant 1.000000e+00 : f32
    %648 = vector.broadcast %cst_137 : f32 to vector<1x64xf32>
    %649 = arith.addf %648, %647 : vector<1x64xf32>
    %650 = arith.divf %648, %649 : vector<1x64xf32>
    %651 = vector.extract_strided_slice %650 {offsets = [0, 0], sizes = [1, 32], strides = [1, 1]} : vector<1x64xf32> to vector<1x32xf32>
    %652 = vector.extract_strided_slice %650 {offsets = [0, 32], sizes = [1, 32], strides = [1, 1]} : vector<1x64xf32> to vector<1x32xf32>
    %653 = vector.extract_strided_slice %640 {offsets = [0, 64], sizes = [1, 32], strides = [1, 1]} : vector<1x96xf32> to vector<1x32xf32>
    %654 = vector.extract_strided_slice %642 {offsets = [0, 64], sizes = [1, 32], strides = [1, 1]} : vector<1x96xf32> to vector<1x32xf32>
    %655 = arith.addf %654, %17 : vector<1x32xf32>
    %656 = arith.mulf %651, %655 : vector<1x32xf32>
    %657 = arith.addf %653, %656 : vector<1x32xf32>
    %658 = math.tanh %657 : vector<1x32xf32>
    %cst_138 = arith.constant 1.000000e+00 : f32
    %659 = vector.broadcast %cst_138 : f32 to vector<1x32xf32>
    %660 = arith.subf %659, %652 : vector<1x32xf32>
    %661 = arith.mulf %660, %658 : vector<1x32xf32>
    %662 = arith.mulf %652, %639 : vector<1x32xf32>
    %663 = arith.addf %661, %662 : vector<1x32xf32>
    %664 = vector.extract_strided_slice %591 {offsets = [3, 0], sizes = [1, 96], strides = [1, 1]} : vector<8x96xf32> to vector<1x96xf32>
    %665 = arith.truncf %663 : vector<1x32xf32> to vector<1x32xbf16>
    %cst_139 = arith.constant dense<0.000000e+00> : vector<1x96xf32>
    %666 = tpu.matmul %665, %15, %cst_139 {dimension_numbers = #tpu.dot_dimension_numbers<[1], [0], [0], [1], [0, 0, 1, 1], [], []>} : vector<1x32xbf16>, vector<32x96xbf16>, vector<1x96xf32> -> vector<1x96xf32>
    %667 = vector.extract_strided_slice %664 {offsets = [0, 0], sizes = [1, 64], strides = [1, 1]} : vector<1x96xf32> to vector<1x64xf32>
    %668 = vector.extract_strided_slice %666 {offsets = [0, 0], sizes = [1, 64], strides = [1, 1]} : vector<1x96xf32> to vector<1x64xf32>
    %669 = arith.addf %667, %668 : vector<1x64xf32>
    %670 = arith.negf %669 : vector<1x64xf32>
    %671 = math.exp %670 : vector<1x64xf32>
    %cst_140 = arith.constant 1.000000e+00 : f32
    %672 = vector.broadcast %cst_140 : f32 to vector<1x64xf32>
    %673 = arith.addf %672, %671 : vector<1x64xf32>
    %674 = arith.divf %672, %673 : vector<1x64xf32>
    %675 = vector.extract_strided_slice %674 {offsets = [0, 0], sizes = [1, 32], strides = [1, 1]} : vector<1x64xf32> to vector<1x32xf32>
    %676 = vector.extract_strided_slice %674 {offsets = [0, 32], sizes = [1, 32], strides = [1, 1]} : vector<1x64xf32> to vector<1x32xf32>
    %677 = vector.extract_strided_slice %664 {offsets = [0, 64], sizes = [1, 32], strides = [1, 1]} : vector<1x96xf32> to vector<1x32xf32>
    %678 = vector.extract_strided_slice %666 {offsets = [0, 64], sizes = [1, 32], strides = [1, 1]} : vector<1x96xf32> to vector<1x32xf32>
    %679 = arith.addf %678, %17 : vector<1x32xf32>
    %680 = arith.mulf %675, %679 : vector<1x32xf32>
    %681 = arith.addf %677, %680 : vector<1x32xf32>
    %682 = math.tanh %681 : vector<1x32xf32>
    %cst_141 = arith.constant 1.000000e+00 : f32
    %683 = vector.broadcast %cst_141 : f32 to vector<1x32xf32>
    %684 = arith.subf %683, %676 : vector<1x32xf32>
    %685 = arith.mulf %684, %682 : vector<1x32xf32>
    %686 = arith.mulf %676, %663 : vector<1x32xf32>
    %687 = arith.addf %685, %686 : vector<1x32xf32>
    %688 = vector.extract_strided_slice %591 {offsets = [4, 0], sizes = [1, 96], strides = [1, 1]} : vector<8x96xf32> to vector<1x96xf32>
    %689 = arith.truncf %687 : vector<1x32xf32> to vector<1x32xbf16>
    %cst_142 = arith.constant dense<0.000000e+00> : vector<1x96xf32>
    %690 = tpu.matmul %689, %15, %cst_142 {dimension_numbers = #tpu.dot_dimension_numbers<[1], [0], [0], [1], [0, 0, 1, 1], [], []>} : vector<1x32xbf16>, vector<32x96xbf16>, vector<1x96xf32> -> vector<1x96xf32>
    %691 = vector.extract_strided_slice %688 {offsets = [0, 0], sizes = [1, 64], strides = [1, 1]} : vector<1x96xf32> to vector<1x64xf32>
    %692 = vector.extract_strided_slice %690 {offsets = [0, 0], sizes = [1, 64], strides = [1, 1]} : vector<1x96xf32> to vector<1x64xf32>
    %693 = arith.addf %691, %692 : vector<1x64xf32>
    %694 = arith.negf %693 : vector<1x64xf32>
    %695 = math.exp %694 : vector<1x64xf32>
    %cst_143 = arith.constant 1.000000e+00 : f32
    %696 = vector.broadcast %cst_143 : f32 to vector<1x64xf32>
    %697 = arith.addf %696, %695 : vector<1x64xf32>
    %698 = arith.divf %696, %697 : vector<1x64xf32>
    %699 = vector.extract_strided_slice %698 {offsets = [0, 0], sizes = [1, 32], strides = [1, 1]} : vector<1x64xf32> to vector<1x32xf32>
    %700 = vector.extract_strided_slice %698 {offsets = [0, 32], sizes = [1, 32], strides = [1, 1]} : vector<1x64xf32> to vector<1x32xf32>
    %701 = vector.extract_strided_slice %688 {offsets = [0, 64], sizes = [1, 32], strides = [1, 1]} : vector<1x96xf32> to vector<1x32xf32>
    %702 = vector.extract_strided_slice %690 {offsets = [0, 64], sizes = [1, 32], strides = [1, 1]} : vector<1x96xf32> to vector<1x32xf32>
    %703 = arith.addf %702, %17 : vector<1x32xf32>
    %704 = arith.mulf %699, %703 : vector<1x32xf32>
    %705 = arith.addf %701, %704 : vector<1x32xf32>
    %706 = math.tanh %705 : vector<1x32xf32>
    %cst_144 = arith.constant 1.000000e+00 : f32
    %707 = vector.broadcast %cst_144 : f32 to vector<1x32xf32>
    %708 = arith.subf %707, %700 : vector<1x32xf32>
    %709 = arith.mulf %708, %706 : vector<1x32xf32>
    %710 = arith.mulf %700, %687 : vector<1x32xf32>
    %711 = arith.addf %709, %710 : vector<1x32xf32>
    %712 = vector.extract_strided_slice %591 {offsets = [5, 0], sizes = [1, 96], strides = [1, 1]} : vector<8x96xf32> to vector<1x96xf32>
    %713 = arith.truncf %711 : vector<1x32xf32> to vector<1x32xbf16>
    %cst_145 = arith.constant dense<0.000000e+00> : vector<1x96xf32>
    %714 = tpu.matmul %713, %15, %cst_145 {dimension_numbers = #tpu.dot_dimension_numbers<[1], [0], [0], [1], [0, 0, 1, 1], [], []>} : vector<1x32xbf16>, vector<32x96xbf16>, vector<1x96xf32> -> vector<1x96xf32>
    %715 = vector.extract_strided_slice %712 {offsets = [0, 0], sizes = [1, 64], strides = [1, 1]} : vector<1x96xf32> to vector<1x64xf32>
    %716 = vector.extract_strided_slice %714 {offsets = [0, 0], sizes = [1, 64], strides = [1, 1]} : vector<1x96xf32> to vector<1x64xf32>
    %717 = arith.addf %715, %716 : vector<1x64xf32>
    %718 = arith.negf %717 : vector<1x64xf32>
    %719 = math.exp %718 : vector<1x64xf32>
    %cst_146 = arith.constant 1.000000e+00 : f32
    %720 = vector.broadcast %cst_146 : f32 to vector<1x64xf32>
    %721 = arith.addf %720, %719 : vector<1x64xf32>
    %722 = arith.divf %720, %721 : vector<1x64xf32>
    %723 = vector.extract_strided_slice %722 {offsets = [0, 0], sizes = [1, 32], strides = [1, 1]} : vector<1x64xf32> to vector<1x32xf32>
    %724 = vector.extract_strided_slice %722 {offsets = [0, 32], sizes = [1, 32], strides = [1, 1]} : vector<1x64xf32> to vector<1x32xf32>
    %725 = vector.extract_strided_slice %712 {offsets = [0, 64], sizes = [1, 32], strides = [1, 1]} : vector<1x96xf32> to vector<1x32xf32>
    %726 = vector.extract_strided_slice %714 {offsets = [0, 64], sizes = [1, 32], strides = [1, 1]} : vector<1x96xf32> to vector<1x32xf32>
    %727 = arith.addf %726, %17 : vector<1x32xf32>
    %728 = arith.mulf %723, %727 : vector<1x32xf32>
    %729 = arith.addf %725, %728 : vector<1x32xf32>
    %730 = math.tanh %729 : vector<1x32xf32>
    %cst_147 = arith.constant 1.000000e+00 : f32
    %731 = vector.broadcast %cst_147 : f32 to vector<1x32xf32>
    %732 = arith.subf %731, %724 : vector<1x32xf32>
    %733 = arith.mulf %732, %730 : vector<1x32xf32>
    %734 = arith.mulf %724, %711 : vector<1x32xf32>
    %735 = arith.addf %733, %734 : vector<1x32xf32>
    %736 = vector.extract_strided_slice %591 {offsets = [6, 0], sizes = [1, 96], strides = [1, 1]} : vector<8x96xf32> to vector<1x96xf32>
    %737 = arith.truncf %735 : vector<1x32xf32> to vector<1x32xbf16>
    %cst_148 = arith.constant dense<0.000000e+00> : vector<1x96xf32>
    %738 = tpu.matmul %737, %15, %cst_148 {dimension_numbers = #tpu.dot_dimension_numbers<[1], [0], [0], [1], [0, 0, 1, 1], [], []>} : vector<1x32xbf16>, vector<32x96xbf16>, vector<1x96xf32> -> vector<1x96xf32>
    %739 = vector.extract_strided_slice %736 {offsets = [0, 0], sizes = [1, 64], strides = [1, 1]} : vector<1x96xf32> to vector<1x64xf32>
    %740 = vector.extract_strided_slice %738 {offsets = [0, 0], sizes = [1, 64], strides = [1, 1]} : vector<1x96xf32> to vector<1x64xf32>
    %741 = arith.addf %739, %740 : vector<1x64xf32>
    %742 = arith.negf %741 : vector<1x64xf32>
    %743 = math.exp %742 : vector<1x64xf32>
    %cst_149 = arith.constant 1.000000e+00 : f32
    %744 = vector.broadcast %cst_149 : f32 to vector<1x64xf32>
    %745 = arith.addf %744, %743 : vector<1x64xf32>
    %746 = arith.divf %744, %745 : vector<1x64xf32>
    %747 = vector.extract_strided_slice %746 {offsets = [0, 0], sizes = [1, 32], strides = [1, 1]} : vector<1x64xf32> to vector<1x32xf32>
    %748 = vector.extract_strided_slice %746 {offsets = [0, 32], sizes = [1, 32], strides = [1, 1]} : vector<1x64xf32> to vector<1x32xf32>
    %749 = vector.extract_strided_slice %736 {offsets = [0, 64], sizes = [1, 32], strides = [1, 1]} : vector<1x96xf32> to vector<1x32xf32>
    %750 = vector.extract_strided_slice %738 {offsets = [0, 64], sizes = [1, 32], strides = [1, 1]} : vector<1x96xf32> to vector<1x32xf32>
    %751 = arith.addf %750, %17 : vector<1x32xf32>
    %752 = arith.mulf %747, %751 : vector<1x32xf32>
    %753 = arith.addf %749, %752 : vector<1x32xf32>
    %754 = math.tanh %753 : vector<1x32xf32>
    %cst_150 = arith.constant 1.000000e+00 : f32
    %755 = vector.broadcast %cst_150 : f32 to vector<1x32xf32>
    %756 = arith.subf %755, %748 : vector<1x32xf32>
    %757 = arith.mulf %756, %754 : vector<1x32xf32>
    %758 = arith.mulf %748, %735 : vector<1x32xf32>
    %759 = arith.addf %757, %758 : vector<1x32xf32>
    %760 = vector.extract_strided_slice %591 {offsets = [7, 0], sizes = [1, 96], strides = [1, 1]} : vector<8x96xf32> to vector<1x96xf32>
    %761 = arith.truncf %759 : vector<1x32xf32> to vector<1x32xbf16>
    %cst_151 = arith.constant dense<0.000000e+00> : vector<1x96xf32>
    %762 = tpu.matmul %761, %15, %cst_151 {dimension_numbers = #tpu.dot_dimension_numbers<[1], [0], [0], [1], [0, 0, 1, 1], [], []>} : vector<1x32xbf16>, vector<32x96xbf16>, vector<1x96xf32> -> vector<1x96xf32>
    %763 = vector.extract_strided_slice %760 {offsets = [0, 0], sizes = [1, 64], strides = [1, 1]} : vector<1x96xf32> to vector<1x64xf32>
    %764 = vector.extract_strided_slice %762 {offsets = [0, 0], sizes = [1, 64], strides = [1, 1]} : vector<1x96xf32> to vector<1x64xf32>
    %765 = arith.addf %763, %764 : vector<1x64xf32>
    %766 = arith.negf %765 : vector<1x64xf32>
    %767 = math.exp %766 : vector<1x64xf32>
    %cst_152 = arith.constant 1.000000e+00 : f32
    %768 = vector.broadcast %cst_152 : f32 to vector<1x64xf32>
    %769 = arith.addf %768, %767 : vector<1x64xf32>
    %770 = arith.divf %768, %769 : vector<1x64xf32>
    %771 = vector.extract_strided_slice %770 {offsets = [0, 0], sizes = [1, 32], strides = [1, 1]} : vector<1x64xf32> to vector<1x32xf32>
    %772 = vector.extract_strided_slice %770 {offsets = [0, 32], sizes = [1, 32], strides = [1, 1]} : vector<1x64xf32> to vector<1x32xf32>
    %773 = vector.extract_strided_slice %760 {offsets = [0, 64], sizes = [1, 32], strides = [1, 1]} : vector<1x96xf32> to vector<1x32xf32>
    %774 = vector.extract_strided_slice %762 {offsets = [0, 64], sizes = [1, 32], strides = [1, 1]} : vector<1x96xf32> to vector<1x32xf32>
    %775 = arith.addf %774, %17 : vector<1x32xf32>
    %776 = arith.mulf %771, %775 : vector<1x32xf32>
    %777 = arith.addf %773, %776 : vector<1x32xf32>
    %778 = math.tanh %777 : vector<1x32xf32>
    %cst_153 = arith.constant 1.000000e+00 : f32
    %779 = vector.broadcast %cst_153 : f32 to vector<1x32xf32>
    %780 = arith.subf %779, %772 : vector<1x32xf32>
    %781 = arith.mulf %780, %778 : vector<1x32xf32>
    %782 = arith.mulf %772, %759 : vector<1x32xf32>
    %783 = arith.addf %781, %782 : vector<1x32xf32>
    %784 = tpu.concatenate %615, %639, %663, %687, %711, %735, %759, %783 in 0 : vector<1x32xf32>, vector<1x32xf32>, vector<1x32xf32>, vector<1x32xf32>, vector<1x32xf32>, vector<1x32xf32>, vector<1x32xf32>, vector<1x32xf32> -> vector<8x32xf32>
    %c8_154 = arith.constant 8 : index
    %c0_155 = arith.constant 0 : index
    %785 = vector.load %arg15[%c8_154, %c0_155] : memref<16x32xf32, #tpu.memory_space<vmem>>, vector<8x32xf32>
    tpu.vector_store %arg15[%c8_154, %c0_155], %784 {strides = array<i32>} : memref<16x32xf32, #tpu.memory_space<vmem>>, vector<8x32xf32>,
    %c0_156 = arith.constant 0 : index
    %c0_157 = arith.constant 0 : index
    %786 = vector.load %arg15[%c0_156, %c0_157] : memref<16x32xf32, #tpu.memory_space<vmem>>, vector<16x32xf32>
    %c0_158 = arith.constant 0 : index
    %c0_159 = arith.constant 0 : index
    %787 = vector.load %arg10[%c0_158, %c0_159] : memref<32x128xf32, #tpu.memory_space<vmem>>, vector<32x128xf32>
    %cst_160 = arith.constant dense<0.000000e+00> : vector<16x128xf32>
    %788 = tpu.matmul %786, %787, %cst_160 {dimension_numbers = #tpu.dot_dimension_numbers<[1], [0], [0], [1], [0, 0, 1, 1], [], []>} : vector<16x32xf32>, vector<32x128xf32>, vector<16x128xf32> -> vector<16x128xf32>
    %c0_161 = arith.constant 0 : index
    %c0_162 = arith.constant 0 : index
    %789 = vector.load %arg11[%c0_161, %c0_162] : memref<1x128xf32, #tpu.memory_space<vmem>>, vector<1x128xf32>
    %790 = vector.broadcast %789 : vector<1x128xf32> to vector<16x128xf32>
    %791 = arith.addf %788, %790 : vector<16x128xf32>
    %cst_163 = arith.constant dense<0xFF800000> : vector<16xf32>
    %792 = vector.multi_reduction <maximumf>, %791, %cst_163 [1] : vector<16x128xf32> to vector<16xf32>
    %793 = vector.shape_cast %792 : vector<16xf32> to vector<16x1xf32>
    %794 = vector.broadcast %793 : vector<16x1xf32> to vector<16x128xf32>
    %795 = arith.subf %791, %794 : vector<16x128xf32>
    %796 = math.exp %795 : vector<16x128xf32>
    %cst_164 = arith.constant dense<0.000000e+00> : vector<16xf32>
    %797 = vector.multi_reduction <add>, %796, %cst_164 [1] : vector<16x128xf32> to vector<16xf32>
    %798 = vector.shape_cast %797 : vector<16xf32> to vector<16x1xf32>
    %799 = math.log %798 : vector<16x1xf32>
    %800 = vector.broadcast %799 : vector<16x1xf32> to vector<16x128xf32>
    %801 = arith.subf %795, %800 : vector<16x128xf32>
    %c0_165 = arith.constant 0 : index
    %c0_166 = arith.constant 0 : index
    %802 = vector.load %arg12[%c0_165, %c0_166] : memref<16x128xf32, #tpu.memory_space<vmem>>, vector<16x128xf32>
    tpu.vector_store %arg12[%c0_165, %c0_166], %801 {strides = array<i32>} : memref<16x128xf32, #tpu.memory_space<vmem>>, vector<16x128xf32>,
    return
  }
}

</mosaic_0001>

<bundles_post_ra>
// kernel: tpu_custom_call.1
= control target key start
LH: loop header
LB: loop body
LE: loop exit
PB: predicated region body
PF: predicated region fallthrough
CT: control target
= control target key end

     0   :  { %vm331_vm0 = vcmask 261120   ;;  %s3860_s0 = inlined_call_operand.vmem [shape: bf16[16,384], index: 0, kind: input, shape index: {}]   ;;  %s3861_s1 = inlined_call_operand.vmem [shape: bf16[16,32], index: 1, kind: input, shape index: {}]   ;;  %s3862_s2 = inlined_call_operand.vmem [shape: bf16[384,64], index: 2, kind: input, shape index: {}]   ;;  %s3863_s3 = inlined_call_operand.vmem [shape: bf16[16,64], index: 3, kind: input, shape index: {}]   ;;  %s3864_s4 = inlined_call_operand.vmem [shape: f32[1,64], index: 4, kind: input, shape index: {}]   ;;  %s3865_s5 = inlined_call_operand.vmem [shape: bf16[32,96], index: 5, kind: input, shape index: {}]   ;;  %s3866_s6 = inlined_call_operand.vmem [shape: bf16[16,96], index: 6, kind: input, shape index: {}]   ;;  %s3867_s7 = inlined_call_operand.vmem [shape: bf16[32,96], index: 7, kind: input, shape index: {}]   ;;  %s3868_s8 = inlined_call_operand.vmem [shape: f32[1,96], index: 8, kind: input, shape index: {}]   ;;  %s3869_s9 = inlined_call_operand.vmem [shape: f32[1,32], index: 9, kind: input, shape index: {}]   ;;  %s3870_s10 = inlined_call_operand.vmem [shape: f32[32,128], index: 10, kind: input, shape index: {}]   ;;  %s3871_s11 = inlined_call_operand.vmem [shape: f32[1,128], index: 11, kind: input, shape index: {}]   ;;  %s3872_s12 = inlined_call_operand.hbm [shape: f32[16,128], index: 12, kind: output, shape index: {}]  }
   0x1   :  { %v2929_v0 = vld [vmem:[%s3862_s2 + $0x38] sm:$0xff]  ;;  %v2928_v3 = vld [vmem:[%s3862_s2 + $0x30] sm:$0xff]  ;;  %v2948_v6 = vld [vmem:[%s3865_s5 + $0x8] sm:$0xff] }
   0x2   :  { %v2937_v1 = vld [vmem:[%s3862_s2 + $0x78] sm:$0xff]  ;;  %259 = vmatpush.bf16.msra.mxu0 %v2929_v0  ;;  %v2936_v4 = vld [vmem:[%s3862_s2 + $0x70] sm:$0xff]  ;;  %341 = vmatpush.bf16.msra.mxu3 %v2948_v6  ;;  %v2947_v7 = vld [vmem:[%s3865_s5] sm:$0xff] }
   0x3   :  { %v2945_v2 = vld [vmem:[%s3862_s2 + $0xb8] sm:$0xff]  ;;  %273 = vmatpush.bf16.msra.mxu1 %v2937_v1  ;;  %v2944_v5 = vld [vmem:[%s3862_s2 + $0xb0] sm:$0xff]  ;;  %v2927_v8 = vld [vmem:[%s3862_s2 + $0x28] sm:$0xff] }
   0x4   :  { %287 = vmatpush.bf16.msra.mxu2 %v2945_v2  ;;  %v2935_v9 = vld [vmem:[%s3862_s2 + $0x68] sm:$0xff]  ;;  %v2946_v11 = vld [vmem:[%s3861_s1] sm:$0xff] }
   0x5   :  { %v2943_v10 = vld [vmem:[%s3862_s2 + $0xa8] sm:$0xff]  ;;  %v3311_v12 = vld [vmem:[%s3863_s3] sm:$0xff] }
   0x6   :  { %260 = vmatpush.bf16.msra.mxu0 %v2928_v3  ;;  %342 = vmatpush.bf16.msra.mxu3 %v2947_v7  ;;  %v2926_v13 = vld [vmem:[%s3862_s2 + $0x20] sm:$0xff] }
   0x7   :  { %274 = vmatpush.bf16.msra.mxu1 %v2936_v4  ;;  %v2934_v14 = vld [vmem:[%s3862_s2 + $0x60] sm:$0xff] }
   0x8   :  { %288 = vmatpush.bf16.msra.mxu2 %v2944_v5  ;;  %v2942_v15 = vld [vmem:[%s3862_s2 + $0xa0] sm:$0xff] }
   0x9   :  { %2820 = vmatmul.msk.bf16.vlgmr.msra.gmra.mxu3 %vm331_vm0, %v2946_v11 }
   0xa   :  { %261 = vmatpush.bf16.msra.mxu0 %v2927_v8  ;;  %379 = vmatpush.bf16.msrb.mxu3 %v3311_v12 }
   0xb   :  { %275 = vmatpush.bf16.msra.mxu1 %v2935_v9 }
   0xc   :  { %289 = vmatpush.bf16.msra.mxu2 %v2943_v10 }
   0xe   :  { %438 = vmatpush.bf16.msra.mxu3 %v3311_v12 }
   0xf   :  { %17 = vsyncpa [#allocation6], 0  ;;  %262 = vmatpush.bf16.msra.mxu0 %v2926_v13  ;;  %276 = vmatpush.bf16.msra.mxu1 %v2934_v14  ;;  %v2925_v16 = vld [vmem:[%s3862_s2 + $0x18] sm:$0xff]  ;;  %v2924_v19 = vld [vmem:[%s3862_s2 + $0x10] sm:$0xff]  ;;  %v3199_v34 = vmov 0   ;;  %vm3873_vm1 = vcmask 785408  }
  0x10   :  { %v2933_v17 = vld [vmem:[%s3862_s2 + $0x58] sm:$0xff]  ;;  %290 = vmatpush.bf16.msra.mxu2 %v2942_v15  ;;  %v2932_v20 = vld [vmem:[%s3862_s2 + $0x50] sm:$0xff]  ;;  %v2923_v22 = vld [vmem:[%s3862_s2 + $0x8] sm:$0xff]  ;;  %vm301_vm2 = vcmask 523264   ;;  %s3202_s14 = smov 96   ;;  %vm368_vm7 = vcmask 130048  }
  0x11   :  { %v2941_v18 = vld [vmem:[%s3862_s2 + $0x98] sm:$0xff]  ;;  %v2940_v21 = vld [vmem:[%s3862_s2 + $0x90] sm:$0xff]  ;;  %v2931_v23 = vld [vmem:[%s3862_s2 + $0x48] sm:$0xff]  ;;  %s3203_s22 = smov 64   ;;  %s3205_s1 = smov 128  }
  0x12   :  { %v2939_v24 = vld [vmem:[%s3862_s2 + $0x88] sm:$0xff]  ;;  %v2922_v25 = vld [vmem:[%s3862_s2] sm:$0xff]  ;;  %v2704_v30 = vld [vmem:[%s3860_s0 + $0xc] sm:$0xf0]  ;;  %s3206_s15 = smov 8  }
  0x13   :  { %263 = vmatpush.bf16.msra.mxu0 %v2925_v16  ;;  %277 = vmatpush.bf16.msra.mxu1 %v2933_v17  ;;  %v2930_v26 = vld [vmem:[%s3862_s2 + $0x40] sm:$0xff]  ;;  %v2920_v28 = vld [vmem:[%s3860_s0 + $0x8] sm:$0xf0]  ;;  %v2710_v32 = vld [vmem:[%s3860_s0 + $0x8] sm:$0xf] }
  0x14   :  { %291 = vmatpush.bf16.msra.mxu2 %v2941_v18  ;;  %v2702_v27 = vld [vmem:[%s3860_s0] sm:$0xf]  ;;  %v2919_v29 = vld [vmem:[%s3860_s0 + $0x4] sm:$0xf]  ;;  %v2921_v33 = vld [vmem:[%s3860_s0 + $0x10] sm:$0xf0] }
  0x15   :  { %v2938_v31 = vld [vmem:[%s3862_s2 + $0x80] sm:$0xff]  ;;  %v2703_v35 = vor.u32 %v2920_v28, %v2702_v27  ;;  %v2707_v36 = vor.u32 %v2919_v29, %v2704_v30  ;;  %v2711_v37 = vor.u32 %v2921_v33, %v2710_v32 }
  0x16   :  { %v2965_v38 = vld [vmem:[%s3868_s8] ss:$0 sm:$0xff]  ;;  %s3201_s8 = smov 16  }
  0x17   :  { %264 = vmatpush.bf16.msra.mxu0 %v2924_v19  ;;  %278 = vmatpush.bf16.msra.mxu1 %v2932_v20  ;;  %v2966_v43 = vld [vmem:[%s3864_s4] ss:$0 sm:$0xff]  ;;  %s3200_s4 = smov 80  }
  0x18   :  { %292 = vmatpush.bf16.msra.mxu2 %v2940_v21 }
  0x19   :  { %380 = vmatmul.bf16.vlgmr.msrb.gmra.mxu3 %v3199_v34 }
  0x1a   :  { %705 = vmatpush.bf16.msrb.mxu3 %v3311_v12 }
  0x1b   :  { %265 = vmatpush.bf16.msra.mxu0 %v2923_v22  ;;  %279 = vmatpush.bf16.msra.mxu1 %v2931_v23 }
  0x1c   :  { %293 = vmatpush.bf16.msra.mxu2 %v2939_v24 }
  0x1f   :  { %266 = vmatpush.bf16.msra.mxu0 %v2922_v25  ;;  %280 = vmatpush.bf16.msra.mxu1 %v2930_v26 }
  0x20   :  { %294 = vmatpush.bf16.msra.mxu2 %v2938_v31 }
  0x22   :  { %267 = vmatmul.bf16.vlgmr.msra.gmra.mxu0 %v2703_v35  ;;  %281 = vmatmul.bf16.vlgmr.msra.gmra.mxu1 %v2707_v36 }
  0x23   :  { %505 = vmatpush.bf16.msrb.mxu0 %v3311_v12  ;;  %571 = vmatpush.bf16.msrb.mxu1 %v3311_v12 }
  0x24   :  { %639 = vmatpush.bf16.msrb.mxu2 %v3311_v12 }
  0x25   :  { %295 = vmatmul.bf16.vlgmr.msra.gmra.mxu2 %v2711_v37 }
  0x27   :  { %773 = vmatpush.bf16.msra.mxu0 %v3311_v12  ;;  %839 = vmatpush.bf16.msra.mxu1 %v3311_v12 }
  0x8c   :  { %v344_v39 = vpop.f32.mrf.mxu3 }
  0x8d   :  { %v345_v40 = vadd.f32 %v2965_v38, %v344_v39 }
  0x8f   :  { %350 = vst.msk [vmem:[#allocation3] sm:$0xff] %vm3873_vm1, %v345_v40 }
  0x94   :  { %v346_v41 = vpop.f32.mrf.mxu3 }
  0x95   :  { %v347_v42 = vadd.f32 %v2965_v38, %v346_v41 }
  0x97   :  { %351 = vst.msk [vmem:[#allocation3 + $0x8] sm:$0xff] %vm3873_vm1, %v347_v42 }
  0x9c   :  { %v381_v46 = vpop.f32.mrf.mxu3 }
  0x9f   :  { %v268_v44 = vpop.f32.mrf.mxu0  ;;  %v282_v47 = vpop.f32.mrf.mxu1 }
  0xa0   :  { %v269_v45 = vadd.f32 %v2966_v43, %v268_v44 }
  0xa2   :  { %v283_v48 = vadd.f32 %v282_v47, %v269_v45 }
  0xa4   :  { %v383_v52 = vpop.f32.mrf.mxu3 }
  0xa7   :  { %v270_v51 = vpop.f32.mrf.mxu0  ;;  %v284_v54 = vpop.f32.mrf.mxu1 }
  0xa8   :  { %v296_v49 = vpop.f32.mrf.mxu2  ;;  %v271_v53 = vadd.f32 %v2966_v43, %v270_v51 }
  0xa9   :  { %v297_v50 = vadd.f32 %v296_v49, %v283_v48 }
  0xaa   :  { %v285_v55 = vadd.f32 %v284_v54, %v271_v53 }
  0xab   :  { %302 = vst.msk [vmem:[#allocation2] sm:$0xff] %vm301_vm2, %v297_v50 }
  0xb0   :  { %v298_v56 = vpop.f32.mrf.mxu2 }
  0xb1   :  { %v299_v57 = vadd.f32 %v298_v56, %v285_v55 }
  0xb2   :  { %v3394_v58 = vld [vmem:[#allocation2] sm:$0xff] }
  0xb3   :  { %v385_v59 = vadd.f32 %v381_v46, %v3394_v58  ;;  %303 = vst.msk [vmem:[#allocation2 + $0x8] sm:$0xff] %vm301_vm2, %v299_v57  ;;  %vm890_vm2 = vcmask 1040384  }
  0xb5   :  { %v2825_v60 = vmul.f32 -1.442695, %v385_v59 }
  0xb7   :  { %2969 = vpow2.f32 %v2825_v60 }
  0xbd   :  { %v2970_v61 = vpop.eup %2969 }
  0xbe   :  { %v389_v62 = vadd.f32 1.0, %v2970_v61 }
  0xc0   :  { %2971 = vrcp.f32 %v389_v62  ;;  %v401_v2 = vand.u32 2147483648, %v389_v62  ;;  %v399_v4 = vand.u32 2147483647, %v389_v62  ;;  %vm395_vm4 = vweird.f32 %v389_v62 }
  0xc2   :  { %v402_v6 = vor.u32 1.1754944e-38, %v401_v2  ;;  %vm400_vm6 = vcmp.eq.f32.partialorder %v399_v4, 8.507059e+37 }
  0xc6   :  { %v2972_v63 = vpop.eup %2971 }
  0xc7   :  { %v391_v0 = vmul.f32 %v2972_v63, %v389_v62  ;;  %vm396_vm3 = vweird.f32 %v2972_v63 }
  0xc8   :  { %vm397_vm5 = vmor %vm395_vm4, %vm396_vm3  ;;  %vm892_vm3 = vcmask 1041408  }
  0xc9   :  { %v392_v1 = vsub.f32 1.0, %v391_v0 }
  0xcb   :  { %v393_v3 = vmul.f32 %v2972_v63, %v392_v1 }
  0xcd   :  { %v394_v5 = vadd.f32 %v2972_v63, %v393_v3 }
  0xcf   :  { %v398_v7 = vsel %vm397_vm5, %v2972_v63, %v394_v5 }
  0xd0   :  { %v403_v8 = vsel %vm400_vm6, %v402_v6, %v398_v7 }
  0xd1   :  { %v405_v9 = vmul.f32 2.0, %v403_v8  ;;  %v407_v14 = vmul.f32 0.0, %v403_v8 }
  0xd3   :  { %v2826_v10 = vadd.f32 -1.0, %v405_v9 }
  0xd5   :  { %409 = vrot.lane.b32.xlu0 %v2826_v10, %s3200_s4 }
 0x147   :  { %v410_v11 = vpop.permute.xlu0 %409 }
 0x148   :  { %v412_v13 = vmul.f32 %v410_v11, %v403_v8 }
 0x14a   :  { %414 = vrot.lane.b32.xlu0 %v412_v13, %s3201_s8 }
 0x1bc   :  { %v415_v15 = vpop.permute.xlu0 %414 }
 0x1bd   :  { %v417_v16 = vadd.f32 %v415_v15, %v407_v14 }
 0x1bf   :  { %2973 = vtanh.f32 %v417_v16  ;;  %v470_v44 = vrot.slane %v417_v16, 7 }
 0x1c5   :  { %v2974_v17 = vpop.eup %2973 }
 0x1c6   :  { %420 = vrot.lane.b32.xlu1 %v2974_v17, %s3201_s8 }
 0x238   :  { %v421_v18 = vpop.permute.xlu1 %420 }
 0x239   :  { %v3400_v19 = vmul.f32 %v421_v18, %v403_v8 }
 0x23b   :  { %v424_v20 = vpack.c.bf16 %v3400_v19, %v3400_v19 }
 0x23d   :  { %426 = vrot.lane.b32.xlu1 %v424_v20, %s3202_s14 }
 0x2af   :  { %v427_v21 = vpop.permute.xlu1 %426 }
 0x2b0   :  { %2827 = vmatmul.msk.bf16.vlgmr.msra.gmra.mxu3 %vm368_vm7, %v427_v21 }
 0x333   :  { %v440_v22 = vpop.f32.mrf.mxu3 }
 0x334   :  { %v445_v23 = vrot.slane %v440_v22, 7 }
 0x336   :  { %v447_v24 = vadd.f32 %v445_v23, %v3394_v58 }
 0x338   :  { %v2828_v25 = vmul.f32 -1.442695, %v447_v24 }
 0x33a   :  { %2975 = vpow2.f32 %v2828_v25 }
 0x33b   :  { %v442_v26 = vpop.f32.mrf.mxu3 }
 0x340   :  { %v2976_v27 = vpop.eup %2975 }
 0x341   :  { %v451_v28 = vadd.f32 1.0, %v2976_v27 }
 0x343   :  { %2977 = vrcp.f32 %v451_v28  ;;  %v463_v32 = vand.u32 2147483648, %v451_v28  ;;  %v461_v35 = vand.u32 2147483647, %v451_v28  ;;  %vm457_vm9 = vweird.f32 %v451_v28 }
 0x345   :  { %v464_v37 = vor.u32 1.1754944e-38, %v463_v32  ;;  %vm462_vm11 = vcmp.eq.f32.partialorder %v461_v35, 8.507059e+37 }
 0x349   :  { %v2978_v29 = vpop.eup %2977 }
 0x34a   :  { %v453_v30 = vmul.f32 %v2978_v29, %v451_v28  ;;  %vm458_vm8 = vweird.f32 %v2978_v29 }
 0x34b   :  { %vm459_vm10 = vmor %vm457_vm9, %vm458_vm8  ;;  %vm894_vm9 = vcmask 1042432  }
 0x34c   :  { %v454_v31 = vsub.f32 1.0, %v453_v30 }
 0x34e   :  { %v455_v33 = vmul.f32 %v2978_v29, %v454_v31 }
 0x350   :  { %v456_v36 = vadd.f32 %v2978_v29, %v455_v33 }
 0x352   :  { %v460_v38 = vsel %vm459_vm10, %v2978_v29, %v456_v36 }
 0x353   :  { %v465_v39 = vsel %vm462_vm11, %v464_v37, %v460_v38 }
 0x354   :  { %v467_v40 = vmul.f32 2.0, %v465_v39  ;;  %v472_v45 = vmul.f32 %v470_v44, %v465_v39 }
 0x356   :  { %v2829_v41 = vadd.f32 -1.0, %v467_v40 }
 0x358   :  { %474 = vrot.lane.b32.xlu2 %v2829_v41, %s3200_s4 }
 0x3b2   :  { %v475_v42 = vpop.permute.xlu2 %474 }
 0x3b3   :  { %v477_v43 = vmul.f32 %v475_v42, %v465_v39 }
 0x3b5   :  { %479 = vrot.lane.b32.xlu2 %v477_v43, %s3201_s8 }
 0x40f   :  { %v480_v46 = vpop.permute.xlu2 %479 }
 0x410   :  { %v482_v47 = vadd.f32 %v480_v46, %v472_v45 }
 0x412   :  { %2979 = vtanh.f32 %v482_v47  ;;  %v537_v13 = vrot.slane %v482_v47, 7 }
 0x418   :  { %v2980_v48 = vpop.eup %2979 }
 0x419   :  { %485 = vrot.lane.b32.xlu0 %v2980_v48, %s3201_s8 }
 0x48b   :  { %v486_v49 = vpop.permute.xlu0 %485 }
 0x48c   :  { %v488_v50 = vmul.f32 %v486_v49, %v465_v39 }
 0x48e   :  { %v489_v51 = vpack.c.bf16 %v488_v50, %v488_v50  ;;  %v891_v21 = vsel %vm890_vm2, %v3400_v19, %v488_v50 }
 0x490   :  { %v491_v52 = vshrl.u32 %v489_v51, 16 }
 0x492   :  { %493 = vrot.lane.b32.xlu1 %v491_v52, %s3202_s14 }
 0x504   :  { %v494_v53 = vpop.permute.xlu1 %493 }
 0x505   :  { %2830 = vmatmul.msk.bf16.vlgmr.msrb.gmra.mxu0 %vm368_vm7, %v494_v53 }
 0x582   :  { %v507_v54 = vpop.f32.mrf.mxu0 }
 0x583   :  { %v512_v55 = vrot.slane %v507_v54, 6 }
 0x585   :  { %v514_v56 = vadd.f32 %v512_v55, %v3394_v58 }
 0x587   :  { %v2831_v57 = vmul.f32 -1.442695, %v514_v56 }
 0x589   :  { %2981 = vpow2.f32 %v2831_v57 }
 0x58a   :  { %v509_v59 = vpop.f32.mrf.mxu0 }
 0x58f   :  { %v2982_v60 = vpop.eup %2981 }
 0x590   :  { %v518_v61 = vadd.f32 1.0, %v2982_v60 }
 0x592   :  { %2983 = vrcp.f32 %v518_v61  ;;  %v530_v1 = vand.u32 2147483648, %v518_v61  ;;  %v528_v3 = vand.u32 2147483647, %v518_v61  ;;  %vm524_vm13 = vweird.f32 %v518_v61 }
 0x594   :  { %v531_v5 = vor.u32 1.1754944e-38, %v530_v1  ;;  %vm529_vm15 = vcmp.eq.f32.partialorder %v528_v3, 8.507059e+37 }
 0x598   :  { %v2984_v62 = vpop.eup %2983 }
 0x599   :  { %v520_v63 = vmul.f32 %v2984_v62, %v518_v61  ;;  %vm525_vm12 = vweird.f32 %v2984_v62 }
 0x59a   :  { %vm526_vm14 = vmor %vm524_vm13, %vm525_vm12 }
 0x59b   :  { %v521_v0 = vsub.f32 1.0, %v520_v63 }
 0x59d   :  { %v522_v2 = vmul.f32 %v2984_v62, %v521_v0 }
 0x59f   :  { %v523_v4 = vadd.f32 %v2984_v62, %v522_v2 }
 0x5a1   :  { %v527_v6 = vsel %vm526_vm14, %v2984_v62, %v523_v4  ;;  %vm896_vm14 = vcmask 1043456  }
 0x5a2   :  { %v532_v7 = vsel %vm529_vm15, %v531_v5, %v527_v6 }
 0x5a3   :  { %v534_v8 = vmul.f32 2.0, %v532_v7  ;;  %v539_v14 = vmul.f32 %v537_v13, %v532_v7 }
 0x5a5   :  { %v2832_v9 = vadd.f32 -1.0, %v534_v8 }
 0x5a7   :  { %541 = vrot.lane.b32.xlu2 %v2832_v9, %s3200_s4 }
 0x601   :  { %v542_v10 = vpop.permute.xlu2 %541 }
 0x602   :  { %v544_v11 = vmul.f32 %v542_v10, %v532_v7 }
 0x604   :  { %546 = vrot.lane.b32.xlu0 %v544_v11, %s3201_s8 }
 0x676   :  { %v547_v15 = vpop.permute.xlu0 %546 }
 0x677   :  { %v549_v16 = vadd.f32 %v547_v15, %v539_v14 }
 0x679   :  { %2985 = vtanh.f32 %v549_v16  ;;  %v603_v47 = vrot.slane %v549_v16, 7 }
 0x67f   :  { %v2986_v17 = vpop.eup %2985 }
 0x680   :  { %552 = vrot.lane.b32.xlu1 %v2986_v17, %s3201_s8 }
 0x6f2   :  { %v553_v18 = vpop.permute.xlu1 %552 }
 0x6f3   :  { %v555_v20 = vmul.f32 %v553_v18, %v532_v7 }
 0x6f5   :  { %v556_v22 = vpack.c.bf16 %v555_v20, %v555_v20  ;;  %v893_v23 = vsel %vm892_vm3, %v891_v21, %v555_v20 }
 0x6f7   :  { %v558_v24 = vrot.slane %v556_v22, 1 }
 0x6f9   :  { %559 = vrot.lane.b32.xlu2 %v558_v24, %s3202_s14 }
 0x753   :  { %v560_v25 = vpop.permute.xlu2 %559 }
 0x754   :  { %2833 = vmatmul.msk.bf16.vlgmr.msrb.gmra.mxu1 %vm368_vm7, %v560_v25 }
 0x7d1   :  { %v573_v26 = vpop.f32.mrf.mxu1 }
 0x7d2   :  { %v578_v27 = vrot.slane %v573_v26, 5 }
 0x7d4   :  { %v580_v28 = vadd.f32 %v578_v27, %v3394_v58 }
 0x7d6   :  { %v2834_v29 = vmul.f32 -1.442695, %v580_v28 }
 0x7d8   :  { %2987 = vpow2.f32 %v2834_v29 }
 0x7d9   :  { %v575_v30 = vpop.f32.mrf.mxu1 }
 0x7de   :  { %v2988_v31 = vpop.eup %2987 }
 0x7df   :  { %v584_v32 = vadd.f32 1.0, %v2988_v31 }
 0x7e1   :  { %2989 = vrcp.f32 %v584_v32  ;;  %v596_v36 = vand.u32 2147483648, %v584_v32  ;;  %v594_v38 = vand.u32 2147483647, %v584_v32  ;;  %vm590_vm5 = vweird.f32 %v584_v32 }
 0x7e3   :  { %v597_v40 = vor.u32 1.1754944e-38, %v596_v36  ;;  %vm595_vm8 = vcmp.eq.f32.partialorder %v594_v38, 8.507059e+37 }
 0x7e7   :  { %v2990_v19 = vpop.eup %2989 }
 0x7e8   :  { %v586_v33 = vmul.f32 %v2990_v19, %v584_v32  ;;  %vm591_vm4 = vweird.f32 %v2990_v19 }
 0x7e9   :  { %vm592_vm6 = vmor %vm590_vm5, %vm591_vm4 }
 0x7ea   :  { %v587_v35 = vsub.f32 1.0, %v586_v33 }
 0x7ec   :  { %v588_v37 = vmul.f32 %v2990_v19, %v587_v35 }
 0x7ee   :  { %v589_v39 = vadd.f32 %v2990_v19, %v588_v37 }
 0x7f0   :  { %v593_v41 = vsel %vm592_vm6, %v2990_v19, %v589_v39 }
 0x7f1   :  { %v598_v42 = vsel %vm595_vm8, %v597_v40, %v593_v41  ;;  %vm898_vm8 = vcmask 1044480  }
 0x7f2   :  { %v600_v43 = vmul.f32 2.0, %v598_v42  ;;  %v605_v48 = vmul.f32 %v603_v47, %v598_v42 }
 0x7f4   :  { %v2835_v44 = vadd.f32 -1.0, %v600_v43 }
 0x7f6   :  { %607 = vrot.lane.b32.xlu0 %v2835_v44, %s3200_s4 }
 0x868   :  { %v608_v45 = vpop.permute.xlu0 %607 }
 0x869   :  { %v610_v46 = vmul.f32 %v608_v45, %v598_v42 }
 0x86b   :  { %612 = vrot.lane.b32.xlu1 %v610_v46, %s3201_s8 }
 0x8dd   :  { %v613_v49 = vpop.permute.xlu1 %612 }
 0x8de   :  { %v615_v50 = vadd.f32 %v613_v49, %v605_v48 }
 0x8e0   :  { %2991 = vtanh.f32 %v615_v50  ;;  %v671_v18 = vrot.slane %v615_v50, 7 }
 0x8e6   :  { %v2992_v51 = vpop.eup %2991 }
 0x8e7   :  { %618 = vrot.lane.b32.xlu2 %v2992_v51, %s3201_s8 }
 0x941   :  { %v619_v52 = vpop.permute.xlu2 %618 }
 0x942   :  { %v621_v53 = vmul.f32 %v619_v52, %v598_v42 }
 0x944   :  { %v622_v54 = vpack.c.bf16 %v621_v53, %v621_v53  ;;  %v895_v55 = vsel %vm894_vm9, %v893_v23, %v621_v53 }
 0x946   :  { %v624_v56 = vshrl.u32 %v622_v54, 16 }
 0x948   :  { %v626_v57 = vrot.slane %v624_v56, 1 }
 0x94a   :  { %627 = vrot.lane.b32.xlu0 %v626_v57, %s3202_s14 }
 0x9bc   :  { %v628_v59 = vpop.permute.xlu0 %627 }
 0x9bd   :  { %2836 = vmatmul.msk.bf16.vlgmr.msrb.gmra.mxu2 %vm368_vm7, %v628_v59 }
 0xa40   :  { %v641_v60 = vpop.f32.mrf.mxu2 }
 0xa41   :  { %v646_v61 = vrot.slane %v641_v60, 4 }
 0xa43   :  { %v648_v62 = vadd.f32 %v646_v61, %v3394_v58 }
 0xa45   :  { %v2837_v63 = vmul.f32 -1.442695, %v648_v62 }
 0xa47   :  { %2993 = vpow2.f32 %v2837_v63 }
 0xa48   :  { %v643_v0 = vpop.f32.mrf.mxu2 }
 0xa4d   :  { %v2994_v1 = vpop.eup %2993 }
 0xa4e   :  { %v652_v2 = vadd.f32 1.0, %v2994_v1 }
 0xa50   :  { %2995 = vrcp.f32 %v652_v2  ;;  %v664_v6 = vand.u32 2147483648, %v652_v2  ;;  %v662_v8 = vand.u32 2147483647, %v652_v2  ;;  %vm658_vm11 = vweird.f32 %v652_v2 }
 0xa52   :  { %v665_v10 = vor.u32 1.1754944e-38, %v664_v6  ;;  %vm663_vm13 = vcmp.eq.f32.partialorder %v662_v8, 8.507059e+37 }
 0xa56   :  { %v2996_v3 = vpop.eup %2995 }
 0xa57   :  { %v654_v4 = vmul.f32 %v2996_v3, %v652_v2  ;;  %vm659_vm10 = vweird.f32 %v2996_v3 }
 0xa58   :  { %vm660_vm12 = vmor %vm658_vm11, %vm659_vm10 }
 0xa59   :  { %v655_v5 = vsub.f32 1.0, %v654_v4 }
 0xa5b   :  { %v656_v7 = vmul.f32 %v2996_v3, %v655_v5 }
 0xa5d   :  { %v657_v9 = vadd.f32 %v2996_v3, %v656_v7 }
 0xa5f   :  { %v661_v11 = vsel %vm660_vm12, %v2996_v3, %v657_v9 }
 0xa60   :  { %v666_v13 = vsel %vm663_vm13, %v665_v10, %v661_v11 }
 0xa61   :  { %v668_v14 = vmul.f32 2.0, %v666_v13  ;;  %v673_v20 = vmul.f32 %v671_v18, %v666_v13 }
 0xa63   :  { %v2838_v15 = vadd.f32 -1.0, %v668_v14 }
 0xa65   :  { %675 = vrot.lane.b32.xlu1 %v2838_v15, %s3200_s4 }
 0xad7   :  { %v676_v16 = vpop.permute.xlu1 %675 }
 0xad8   :  { %v678_v17 = vmul.f32 %v676_v16, %v666_v13 }
 0xada   :  { %680 = vrot.lane.b32.xlu2 %v678_v17, %s3201_s8 }
 0xb34   :  { %v681_v21 = vpop.permute.xlu2 %680 }
 0xb35   :  { %v683_v22 = vadd.f32 %v681_v21, %v673_v20 }
 0xb37   :  { %2997 = vtanh.f32 %v683_v22  ;;  %v737_v51 = vrot.slane %v683_v22, 7 }
 0xb3d   :  { %v2998_v23 = vpop.eup %2997 }
 0xb3e   :  { %686 = vrot.lane.b32.xlu0 %v2998_v23, %s3201_s8 }
 0xbb0   :  { %v687_v24 = vpop.permute.xlu0 %686 }
 0xbb1   :  { %v689_v25 = vmul.f32 %v687_v24, %v666_v13 }
 0xbb3   :  { %v690_v26 = vpack.c.bf16 %v689_v25, %v689_v25  ;;  %v897_v27 = vsel %vm896_vm14, %v895_v55, %v689_v25 }
 0xbb5   :  { %v692_v28 = vrot.slane %v690_v26, 2 }
 0xbb7   :  { %693 = vrot.lane.b32.xlu1 %v692_v28, %s3202_s14 }
 0xc29   :  { %v694_v29 = vpop.permute.xlu1 %693 }
 0xc2a   :  { %2839 = vmatmul.msk.bf16.vlgmr.msrb.gmra.mxu3 %vm368_vm7, %v694_v29 }
 0xcad   :  { %v707_v30 = vpop.f32.mrf.mxu3 }
 0xcae   :  { %v712_v31 = vrot.slane %v707_v30, 3 }
 0xcb0   :  { %v714_v32 = vadd.f32 %v712_v31, %v3394_v58 }
 0xcb2   :  { %v2840_v19 = vmul.f32 -1.442695, %v714_v32 }
 0xcb4   :  { %2999 = vpow2.f32 %v2840_v19 }
 0xcb5   :  { %v709_v33 = vpop.f32.mrf.mxu3 }
 0xcba   :  { %v3000_v35 = vpop.eup %2999 }
 0xcbb   :  { %v718_v36 = vadd.f32 1.0, %v3000_v35 }
 0xcbd   :  { %3001 = vrcp.f32 %v718_v36  ;;  %v730_v40 = vand.u32 2147483648, %v718_v36  ;;  %v728_v42 = vand.u32 2147483647, %v718_v36  ;;  %vm724_vm4 = vweird.f32 %v718_v36 }
 0xcbf   :  { %v731_v44 = vor.u32 1.1754944e-38, %v730_v40  ;;  %vm729_vm6 = vcmp.eq.f32.partialorder %v728_v42, 8.507059e+37 }
 0xcc3   :  { %v3002_v37 = vpop.eup %3001 }
 0xcc4   :  { %v720_v38 = vmul.f32 %v3002_v37, %v718_v36  ;;  %vm725_vm15 = vweird.f32 %v3002_v37 }
 0xcc5   :  { %vm726_vm5 = vmor %vm724_vm4, %vm725_vm15  ;;  %vm900_vm15 = vcmask 1045504  }
 0xcc6   :  { %v721_v39 = vsub.f32 1.0, %v720_v38 }
 0xcc8   :  { %v722_v41 = vmul.f32 %v3002_v37, %v721_v39 }
 0xcca   :  { %v723_v43 = vadd.f32 %v3002_v37, %v722_v41 }
 0xccc   :  { %v727_v45 = vsel %vm726_vm5, %v3002_v37, %v723_v43 }
 0xccd   :  { %v732_v46 = vsel %vm729_vm6, %v731_v44, %v727_v45 }
 0xcce   :  { %v734_v47 = vmul.f32 2.0, %v732_v46  ;;  %v739_v52 = vmul.f32 %v737_v51, %v732_v46 }
 0xcd0   :  { %v2841_v48 = vadd.f32 -1.0, %v734_v47 }
 0xcd2   :  { %741 = vrot.lane.b32.xlu2 %v2841_v48, %s3200_s4 }
 0xd2c   :  { %v742_v49 = vpop.permute.xlu2 %741 }
 0xd2d   :  { %v744_v50 = vmul.f32 %v742_v49, %v732_v46 }
 0xd2f   :  { %746 = vrot.lane.b32.xlu0 %v744_v50, %s3201_s8 }
 0xda1   :  { %v747_v53 = vpop.permute.xlu0 %746 }
 0xda2   :  { %v749_v54 = vadd.f32 %v747_v53, %v739_v52 }
 0xda4   :  { %3003 = vtanh.f32 %v749_v54  ;;  %v805_v23 = vrot.slane %v749_v54, 7 }
 0xdaa   :  { %v3004_v55 = vpop.eup %3003 }
 0xdab   :  { %752 = vrot.lane.b32.xlu1 %v3004_v55, %s3201_s8 }
 0xe1d   :  { %v753_v56 = vpop.permute.xlu1 %752 }
 0xe1e   :  { %v755_v57 = vmul.f32 %v753_v56, %v732_v46 }
 0xe20   :  { %v756_v59 = vpack.c.bf16 %v755_v57, %v755_v57  ;;  %v899_v60 = vsel %vm898_vm8, %v897_v27, %v755_v57 }
 0xe22   :  { %v758_v61 = vshrl.u32 %v756_v59, 16 }
 0xe24   :  { %v760_v62 = vrot.slane %v758_v61, 2  ;;  %v2967_v61 = vld [vmem:[%s3869_s9] ss:$0 sm:$0xff] }
 0xe26   :  { %761 = vrot.lane.b32.xlu2 %v760_v62, %s3202_s14  ;;  %v3469_v62 = vld [vmem:[%s3866_s6] sm:$0xff] }
 0xe27   :  { %925 = vmatpush.bf16.msra.mxu2 %v3469_v62 }
 0xe80   :  { %v762_v63 = vpop.permute.xlu2 %761 }
 0xe81   :  { %2842 = vmatmul.msk.bf16.vlgmr.msra.gmra.mxu0 %vm368_vm7, %v762_v63  ;;  %v3475_v63 = vld [vmem:[%s3867_s7] sm:$0xff] }
 0xefe   :  { %v775_v0 = vpop.f32.mrf.mxu0 }
 0xeff   :  { %v780_v1 = vrot.slane %v775_v0, 2 }
 0xf01   :  { %v782_v2 = vadd.f32 %v780_v1, %v3394_v58 }
 0xf03   :  { %v2843_v3 = vmul.f32 -1.442695, %v782_v2 }
 0xf05   :  { %3005 = vpow2.f32 %v2843_v3 }
 0xf06   :  { %v777_v4 = vpop.f32.mrf.mxu0 }
 0xf0b   :  { %v3006_v5 = vpop.eup %3005 }
 0xf0c   :  { %v786_v6 = vadd.f32 1.0, %v3006_v5 }
 0xf0e   :  { %3007 = vrcp.f32 %v786_v6  ;;  %v798_v10 = vand.u32 2147483648, %v786_v6  ;;  %v796_v13 = vand.u32 2147483647, %v786_v6  ;;  %vm792_vm11 = vweird.f32 %v786_v6 }
 0xf10   :  { %v799_v15 = vor.u32 1.1754944e-38, %v798_v10  ;;  %vm797_vm13 = vcmp.eq.f32.partialorder %v796_v13, 8.507059e+37 }
 0xf14   :  { %v3008_v7 = vpop.eup %3007 }
 0xf15   :  { %v788_v8 = vmul.f32 %v3008_v7, %v786_v6  ;;  %vm793_vm10 = vweird.f32 %v3008_v7 }
 0xf16   :  { %vm794_vm12 = vmor %vm792_vm11, %vm793_vm10  ;;  %vm3874_vm11 = vcmask 1046528  }
 0xf17   :  { %v789_v9 = vsub.f32 1.0, %v788_v8 }
 0xf19   :  { %v790_v11 = vmul.f32 %v3008_v7, %v789_v9 }
 0xf1b   :  { %v791_v14 = vadd.f32 %v3008_v7, %v790_v11 }
 0xf1d   :  { %v795_v16 = vsel %vm794_vm12, %v3008_v7, %v791_v14  ;;  %v904_v7 = vld [vmem:[#allocation3] sm:$0xff] }
 0xf1e   :  { %v800_v17 = vsel %vm797_vm13, %v799_v15, %v795_v16 }
 0xf1f   :  { %v802_v18 = vmul.f32 2.0, %v800_v17  ;;  %v807_v24 = vmul.f32 %v805_v23, %v800_v17 }
 0xf21   :  { %v2844_v20 = vadd.f32 -1.0, %v802_v18 }
 0xf23   :  { %809 = vrot.lane.b32.xlu0 %v2844_v20, %s3200_s4 }
 0xf95   :  { %v810_v21 = vpop.permute.xlu0 %809 }
 0xf96   :  { %v812_v22 = vmul.f32 %v810_v21, %v800_v17 }
 0xf98   :  { %814 = vrot.lane.b32.xlu1 %v812_v22, %s3201_s8 }
0x100a   :  { %v815_v25 = vpop.permute.xlu1 %814 }
0x100b   :  { %v817_v26 = vadd.f32 %v815_v25, %v807_v24 }
0x100d   :  { %3009 = vtanh.f32 %v817_v26  ;;  %v871_v54 = vrot.slane %v817_v26, 7 }
0x1013   :  { %v3010_v27 = vpop.eup %3009 }
0x1014   :  { %820 = vrot.lane.b32.xlu2 %v3010_v27, %s3201_s8 }
0x106e   :  { %v821_v28 = vpop.permute.xlu2 %820 }
0x106f   :  { %v823_v29 = vmul.f32 %v821_v28, %v800_v17 }
0x1071   :  { %v824_v30 = vpack.c.bf16 %v823_v29, %v823_v29  ;;  %v3447_v31 = vsel %vm900_vm15, %v899_v60, %v823_v29  ;;  %v3461_v60 = vld [vmem:[%s3867_s7 + $0x8] sm:$0xff] }
0x1072   :  { %954 = vmatpush.bf16.msra.mxu3 %v3461_v60  ;;  %1019 = vmatpush.bf16.msrb.mxu0 %v3461_v60 }
0x1073   :  { %v826_v32 = vrot.slane %v824_v30, 3  ;;  %1088 = vmatpush.bf16.msrb.mxu1 %v3461_v60  ;;  %1156 = vmatpush.bf16.msrb.mxu2 %v3461_v60 }
0x1075   :  { %827 = vrot.lane.b32.xlu0 %v826_v32, %s3202_s14 }
0x1076   :  { %955 = vmatpush.bf16.msra.mxu3 %v3475_v63  ;;  %1020 = vmatpush.bf16.msrb.mxu0 %v3475_v63 }
0x1077   :  { %1089 = vmatpush.bf16.msrb.mxu1 %v3475_v63  ;;  %1157 = vmatpush.bf16.msrb.mxu2 %v3475_v63 }
0x1079   :  { %956 = vmatmul.bf16.vlgmr.msra.gmra.mxu3 %v3199_v34 }
0x107a   :  { %1226 = vmatpush.bf16.msrb.mxu3 %v3461_v60  ;;  %1294 = vmatpush.bf16.msra.mxu0 %v3461_v60 }
0x107e   :  { %1227 = vmatpush.bf16.msrb.mxu3 %v3475_v63  ;;  %1295 = vmatpush.bf16.msra.mxu0 %v3475_v63 }
0x1082   :  { %1517 = vmatpush.bf16.msra.mxu3 %v3311_v12 }
0x10e7   :  { %v828_v19 = vpop.permute.xlu0 %827 }
0x10e8   :  { %2845 = vmatmul.msk.bf16.vlgmr.msra.gmra.mxu1 %vm368_vm7, %v828_v19 }
0x10e9   :  { %1364 = vmatpush.bf16.msra.mxu1 %v3461_v60 }
0x10ed   :  { %1365 = vmatpush.bf16.msra.mxu1 %v3475_v63 }
0x10fc   :  { %v957_v4 = vpop.f32.mrf.mxu3 }
0x1104   :  { %v959_v6 = vpop.f32.mrf.mxu3 }
0x1165   :  { %v841_v33 = vpop.f32.mrf.mxu1 }
0x1166   :  { %v846_v35 = vrot.slane %v841_v33, 1 }
0x1168   :  { %v848_v36 = vadd.f32 %v846_v35, %v3394_v58 }
0x116a   :  { %v2846_v37 = vmul.f32 -1.442695, %v848_v36 }
0x116c   :  { %3011 = vpow2.f32 %v2846_v37 }
0x116d   :  { %v843_v38 = vpop.f32.mrf.mxu1 }
0x1172   :  { %v3012_v39 = vpop.eup %3011 }
0x1173   :  { %v852_v40 = vadd.f32 1.0, %v3012_v39 }
0x1175   :  { %3013 = vrcp.f32 %v852_v40  ;;  %v864_v44 = vand.u32 2147483648, %v852_v40  ;;  %v862_v46 = vand.u32 2147483647, %v852_v40  ;;  %vm858_vm5 = vweird.f32 %v852_v40 }
0x1177   :  { %v865_v48 = vor.u32 1.1754944e-38, %v864_v44  ;;  %vm863_vm10 = vcmp.eq.f32.partialorder %v862_v46, 8.507059e+37 }
0x117b   :  { %v3014_v41 = vpop.eup %3013 }
0x117c   :  { %v854_v42 = vmul.f32 %v3014_v41, %v852_v40  ;;  %vm859_vm4 = vweird.f32 %v3014_v41  ;;  %v3523_v40 = vld [vmem:[%s3863_s3] sm:$0xff] }
0x117d   :  { %vm860_vm6 = vmor %vm858_vm5, %vm859_vm4 }
0x117e   :  { %v855_v43 = vsub.f32 1.0, %v854_v42 }
0x1180   :  { %v856_v45 = vmul.f32 %v3014_v41, %v855_v43 }
0x1182   :  { %v857_v47 = vadd.f32 %v3014_v41, %v856_v45 }
0x1184   :  { %v861_v49 = vsel %vm860_vm6, %v3014_v41, %v857_v47 }
0x1185   :  { %v866_v58 = vsel %vm863_vm10, %v865_v48, %v861_v49 }
0x1186   :  { %v868_v50 = vmul.f32 2.0, %v866_v58  ;;  %v873_v55 = vmul.f32 %v871_v54, %v866_v58 }
0x1188   :  { %v2847_v51 = vadd.f32 -1.0, %v868_v50 }
0x118a   :  { %875 = vrot.lane.b32.xlu1 %v2847_v51, %s3200_s4 }
0x11fc   :  { %v876_v52 = vpop.permute.xlu1 %875 }
0x11fd   :  { %v878_v53 = vmul.f32 %v876_v52, %v866_v58 }
0x11ff   :  { %880 = vrot.lane.b32.xlu2 %v878_v53, %s3201_s8 }
0x1207   :  { %983 = vrot.lane.b32.xlu2 %v2967_v61, %s3203_s22 }
0x1259   :  { %v881_v56 = vpop.permute.xlu2 %880 }
0x125a   :  { %v3454_v57 = vadd.f32 %v881_v56, %v873_v55 }
0x125c   :  { %3015 = vtanh.f32 %v3454_v57 }
0x1261   :  { %v3500_v3 = vpop.permute.xlu2 %983 }
0x1262   :  { %v3016_v59 = vpop.eup %3015  ;;  %v986_v12 = vadd.f32 %v3500_v3, %v957_v4 }
0x1263   :  { %886 = vrot.lane.b32.xlu0 %v3016_v59, %s3201_s8 }
0x126b   :  { %988 = vrot.lane.b32.xlu0 %v986_v12, %s3203_s22 }
0x12d5   :  { %v887_v0 = vpop.permute.xlu0 %886 }
0x12d6   :  { %v3494_v1 = vmul.f32 %v887_v0, %v866_v58 }
0x12d8   :  { %v903_v34 = vsel %vm3874_vm11, %v3447_v31, %v3494_v1 }
0x12d9   :  { %v905_v2 = vpack.c.bf16 %v903_v34, %v903_v34 }
0x12db   :  { %907 = vrot.lane.b32.xlu1 %v905_v2, %s3202_s14 }
0x12dd   :  { %v989_v25 = vpop.permute.xlu0 %988 }
0x134d   :  { %v908_v5 = vpop.permute.xlu1 %907 }
0x134e   :  { %2852 = vmatmul.msk.bf16.vlgmr.msra.gmra.mxu2 %vm368_vm7, %v908_v5 }
0x134f   :  { %1432 = vmatpush.bf16.msra.mxu2 %v3461_v60 }
0x1353   :  { %1433 = vmatpush.bf16.msra.mxu2 %v3475_v63 }
0x13d1   :  { %v927_v8 = vpop.f32.mrf.mxu2 }
0x13d2   :  { %v931_v9 = vadd.f32 %v927_v8, %v904_v7 }
0x13d4   :  { %932 = vst.msk [vmem:[#allocation3] sm:$0xff] %vm3873_vm1, %v931_v9 }
0x13d9   :  { %v929_v10 = vpop.f32.mrf.mxu2 }
0x13db   :  { %v3508_v11 = vld [vmem:[#allocation3] sm:$0xff] }
0x13dc   :  { %v961_v13 = vadd.f32 %v957_v4, %v3508_v11 }
0x13de   :  { %v2861_v14 = vmul.f32 -1.442695, %v961_v13 }
0x13e0   :  { %3017 = vpow2.f32 %v2861_v14 }
0x13e6   :  { %v3018_v15 = vpop.eup %3017 }
0x13e7   :  { %v965_v16 = vadd.f32 1.0, %v3018_v15 }
0x13e9   :  { %3019 = vrcp.f32 %v965_v16  ;;  %v977_v21 = vand.u32 2147483648, %v965_v16  ;;  %v975_v23 = vand.u32 2147483647, %v965_v16  ;;  %vm971_vm13 = vweird.f32 %v965_v16 }
0x13eb   :  { %v978_v26 = vor.u32 1.1754944e-38, %v977_v21  ;;  %vm976_vm5 = vcmp.eq.f32.partialorder %v975_v23, 8.507059e+37 }
0x13ef   :  { %v3020_v17 = vpop.eup %3019 }
0x13f0   :  { %v967_v18 = vmul.f32 %v3020_v17, %v965_v16  ;;  %vm972_vm12 = vweird.f32 %v3020_v17 }
0x13f1   :  { %vm973_vm4 = vmor %vm971_vm13, %vm972_vm12 }
0x13f2   :  { %v968_v20 = vsub.f32 1.0, %v967_v18 }
0x13f4   :  { %v969_v22 = vmul.f32 %v3020_v17, %v968_v20 }
0x13f6   :  { %v970_v24 = vadd.f32 %v3020_v17, %v969_v22 }
0x13f8   :  { %v974_v27 = vsel %vm973_vm4, %v3020_v17, %v970_v24 }
0x13f9   :  { %v979_v28 = vsel %vm976_vm5, %v978_v26, %v974_v27 }
0x13fa   :  { %v991_v29 = vmul.f32 %v989_v25, %v979_v28  ;;  %v998_v19 = vsub.f32 1.0, %v979_v28  ;;  %v1004_v35 = vmul.f32 0.0, %v979_v28 }
0x13fc   :  { %993 = vrot.lane.b32.xlu1 %v991_v29, %s3203_s22 }
0x146e   :  { %v994_v30 = vpop.permute.xlu1 %993 }
0x146f   :  { %v996_v31 = vadd.f32 %v994_v30, %v3508_v11 }
0x1471   :  { %3021 = vtanh.f32 %v996_v31 }
0x1477   :  { %v3022_v32 = vpop.eup %3021 }
0x1478   :  { %1000 = vrot.lane.b32.xlu2 %v3022_v32, %s3202_s14 }
0x14d2   :  { %v1001_v33 = vpop.permute.xlu2 %1000 }
0x14d3   :  { %v1003_v36 = vmul.f32 %v1001_v33, %v998_v19 }
0x14d5   :  { %v3514_v37 = vadd.f32 %v1004_v35, %v1003_v36 }
0x14d7   :  { %v1006_v38 = vpack.c.bf16 %v3514_v37, %v3514_v37  ;;  %v1069_v6 = vrot.slane %v3514_v37, 7 }
0x14d9   :  { %1008 = vrot.lane.b32.xlu0 %v1006_v38, %s3202_s14 }
0x154b   :  { %v1009_v39 = vpop.permute.xlu0 %1008 }
0x154c   :  { %2862 = vmatmul.msk.bf16.vlgmr.msrb.gmra.mxu0 %vm331_vm0, %v1009_v39 }
0x154d   :  { %1579 = vmatpush.bf16.msrb.mxu0 %v3523_v40 }
0x15c9   :  { %v1022_v41 = vpop.f32.mrf.mxu0 }
0x15ca   :  { %v1049_v42 = vadd.f32 %v1022_v41, %v3500_v3  ;;  %v1027_v45 = vrot.slane %v1022_v41, 7 }
0x15cc   :  { %v1051_v43 = vrot.slane %v1049_v42, 7  ;;  %v1029_v46 = vadd.f32 %v1027_v45, %v3508_v11 }
0x15ce   :  { %1052 = vrot.lane.b32.xlu1 %v1051_v43, %s3203_s22  ;;  %v2863_v47 = vmul.f32 -1.442695, %v1029_v46 }
0x15d0   :  { %3023 = vpow2.f32 %v2863_v47 }
0x15d1   :  { %v1024_v44 = vpop.f32.mrf.mxu0 }
0x15d6   :  { %v3024_v48 = vpop.eup %3023 }
0x15d7   :  { %v1033_v49 = vadd.f32 1.0, %v3024_v48 }
0x15d9   :  { %3025 = vrcp.f32 %v1033_v49  ;;  %v1045_v54 = vand.u32 2147483648, %v1033_v49  ;;  %vm1039_vm10 = vweird.f32 %v1033_v49  ;;  %v1043_v55 = vand.u32 2147483647, %v1033_v49 }
0x15db   :  { %v1046_v59 = vor.u32 1.1754944e-38, %v1045_v54  ;;  %vm1044_vm13 = vcmp.eq.f32.partialorder %v1043_v55, 8.507059e+37 }
0x15df   :  { %v3026_v58 = vpop.eup %3025 }
0x15e0   :  { %v1035_v50 = vmul.f32 %v3026_v58, %v1033_v49  ;;  %vm1040_vm6 = vweird.f32 %v3026_v58 }
0x15e1   :  { %vm1041_vm12 = vmor %vm1039_vm10, %vm1040_vm6 }
0x15e2   :  { %v1036_v51 = vsub.f32 1.0, %v1035_v50 }
0x15e4   :  { %v1037_v52 = vmul.f32 %v3026_v58, %v1036_v51 }
0x15e6   :  { %v1038_v53 = vadd.f32 %v3026_v58, %v1037_v52 }
0x15e8   :  { %v1042_v56 = vsel %vm1041_vm12, %v3026_v58, %v1038_v53 }
0x15e9   :  { %v1047_v0 = vsel %vm1044_vm13, %v1046_v59, %v1042_v56 }
0x15ea   :  { %v1062_v5 = vsub.f32 1.0, %v1047_v0  ;;  %v1071_v8 = vmul.f32 %v1069_v6, %v1047_v0 }
0x1640   :  { %v1053_v61 = vpop.permute.xlu1 %1052 }
0x1641   :  { %v1055_v34 = vmul.f32 %v1053_v61, %v1047_v0 }
0x1643   :  { %1057 = vrot.lane.b32.xlu2 %v1055_v34, %s3203_s22 }
0x169d   :  { %v1058_v2 = vpop.permute.xlu2 %1057 }
0x169e   :  { %v1060_v4 = vadd.f32 %v1058_v2, %v3508_v11 }
0x16a0   :  { %3027 = vtanh.f32 %v1060_v4 }
0x16a6   :  { %v3028_v12 = vpop.eup %3027 }
0x16a7   :  { %1064 = vrot.lane.b32.xlu0 %v3028_v12, %s3202_s14 }
0x1719   :  { %v1065_v7 = vpop.permute.xlu0 %1064 }
0x171a   :  { %v1067_v9 = vmul.f32 %v1065_v7, %v1062_v5 }
0x171c   :  { %v1072_v10 = vadd.f32 %v1071_v8, %v1067_v9 }
0x171e   :  { %v1073_v13 = vpack.c.bf16 %v1072_v10, %v1072_v10  ;;  %v1138_v35 = vrot.slane %v1072_v10, 7  ;;  %v1486_v49 = vsel %vm890_vm2, %v3514_v37, %v1072_v10 }
0x1720   :  { %v1075_v14 = vshrl.u32 %v1073_v13, 16 }
0x1722   :  { %1077 = vrot.lane.b32.xlu1 %v1075_v14, %s3202_s14 }
0x1794   :  { %v1078_v15 = vpop.permute.xlu1 %1077 }
0x1795   :  { %2864 = vmatmul.msk.bf16.vlgmr.msrb.gmra.mxu1 %vm331_vm0, %v1078_v15  ;;  %v1500_v15 = vpack.c.bf16 %v3494_v1, %v3494_v1 }
0x1796   :  { %1646 = vmatpush.bf16.msrb.mxu1 %v3523_v40 }
0x1812   :  { %v1091_v16 = vpop.f32.mrf.mxu1 }
0x1813   :  { %v1096_v17 = vrot.slane %v1091_v16, 6  ;;  %v1118_v18 = vadd.f32 %v1091_v16, %v3500_v3 }
0x1815   :  { %v1098_v20 = vadd.f32 %v1096_v17, %v3508_v11  ;;  %v1120_v21 = vrot.slane %v1118_v18, 6  ;;  %v1502_v17 = vshrl.u32 %v1500_v15, 16 }
0x1817   :  { %v2865_v22 = vmul.f32 -1.442695, %v1098_v20  ;;  %1121 = vrot.lane.b32.xlu2 %v1120_v21, %s3203_s22  ;;  %v1504_v18 = vrot.slane %v1502_v17, 3 }
0x1819   :  { %3029 = vpow2.f32 %v2865_v22 }
0x181a   :  { %v1093_v23 = vpop.f32.mrf.mxu1 }
0x181f   :  { %v3030_v24 = vpop.eup %3029 }
0x1820   :  { %v1102_v25 = vadd.f32 1.0, %v3030_v24 }
0x1822   :  { %3031 = vrcp.f32 %v1102_v25  ;;  %v1114_v29 = vand.u32 2147483648, %v1102_v25  ;;  %v1112_v31 = vand.u32 2147483647, %v1102_v25  ;;  %vm1108_vm5 = vweird.f32 %v1102_v25 }
0x1824   :  { %v1115_v19 = vor.u32 1.1754944e-38, %v1114_v29  ;;  %vm1113_vm10 = vcmp.eq.f32.partialorder %v1112_v31, 8.507059e+37 }
0x1828   :  { %v3032_v26 = vpop.eup %3031 }
0x1829   :  { %v1104_v27 = vmul.f32 %v3032_v26, %v1102_v25  ;;  %vm1109_vm4 = vweird.f32 %v3032_v26 }
0x182a   :  { %vm1110_vm6 = vmor %vm1108_vm5, %vm1109_vm4 }
0x182b   :  { %v1105_v28 = vsub.f32 1.0, %v1104_v27 }
0x182d   :  { %v1106_v30 = vmul.f32 %v3032_v26, %v1105_v28 }
0x182f   :  { %v1107_v32 = vadd.f32 %v3032_v26, %v1106_v30 }
0x1831   :  { %v1111_v33 = vsel %vm1110_vm6, %v3032_v26, %v1107_v32 }
0x1832   :  { %v1116_v36 = vsel %vm1113_vm10, %v1115_v19, %v1111_v33 }
0x1833   :  { %v1140_v38 = vmul.f32 %v1138_v35, %v1116_v36  ;;  %v1131_v45 = vsub.f32 1.0, %v1116_v36 }
0x1871   :  { %v1122_v39 = vpop.permute.xlu2 %1121 }
0x1872   :  { %v1124_v41 = vmul.f32 %v1122_v39, %v1116_v36 }
0x1874   :  { %1126 = vrot.lane.b32.xlu0 %v1124_v41, %s3203_s22 }
0x18e6   :  { %v1127_v42 = vpop.permute.xlu0 %1126 }
0x18e7   :  { %v1129_v43 = vadd.f32 %v1127_v42, %v3508_v11 }
0x18e9   :  { %3033 = vtanh.f32 %v1129_v43 }
0x18ef   :  { %v3034_v44 = vpop.eup %3033 }
0x18f0   :  { %1133 = vrot.lane.b32.xlu1 %v3034_v44, %s3202_s14 }
0x1962   :  { %v1134_v46 = vpop.permute.xlu1 %1133 }
0x1963   :  { %v1136_v47 = vmul.f32 %v1134_v46, %v1131_v45  ;;  %v3568_v45 = vld [vmem:[#allocation2 + $0x8] sm:$0xff] }
0x1965   :  { %v1141_v48 = vadd.f32 %v1140_v38, %v1136_v47 }
0x1967   :  { %v1487_v58 = vsel %vm892_vm3, %v1486_v49, %v1141_v48  ;;  %v1142_v50 = vpack.c.bf16 %v1141_v48, %v1141_v48  ;;  %v1206_v24 = vrot.slane %v1141_v48, 7 }
0x1969   :  { %v1144_v51 = vrot.slane %v1142_v50, 1 }
0x196b   :  { %1145 = vrot.lane.b32.xlu2 %v1144_v51, %s3202_s14 }
0x19c5   :  { %v1146_v52 = vpop.permute.xlu2 %1145 }
0x19c6   :  { %2866 = vmatmul.msk.bf16.vlgmr.msrb.gmra.mxu2 %vm331_vm0, %v1146_v52 }
0x19c7   :  { %1712 = vmatpush.bf16.msrb.mxu2 %v3523_v40 }
0x1a49   :  { %v1159_v53 = vpop.f32.mrf.mxu2 }
0x1a4a   :  { %v1186_v54 = vadd.f32 %v1159_v53, %v3500_v3  ;;  %v1164_v59 = vrot.slane %v1159_v53, 5 }
0x1a4c   :  { %v1188_v55 = vrot.slane %v1186_v54, 5  ;;  %v1166_v37 = vadd.f32 %v1164_v59, %v3508_v11 }
0x1a4e   :  { %1189 = vrot.lane.b32.xlu0 %v1188_v55, %s3203_s22  ;;  %v2867_v61 = vmul.f32 -1.442695, %v1166_v37 }
0x1a50   :  { %3035 = vpow2.f32 %v2867_v61 }
0x1a51   :  { %v1161_v56 = vpop.f32.mrf.mxu2 }
0x1a56   :  { %v3036_v0 = vpop.eup %3035 }
0x1a57   :  { %v1170_v34 = vadd.f32 1.0, %v3036_v0 }
0x1a59   :  { %3037 = vrcp.f32 %v1170_v34  ;;  %v1182_v7 = vand.u32 2147483648, %v1170_v34  ;;  %vm1176_vm13 = vweird.f32 %v1170_v34  ;;  %v1180_v8 = vand.u32 2147483647, %v1170_v34 }
0x1a5b   :  { %v1183_v10 = vor.u32 1.1754944e-38, %v1182_v7  ;;  %vm1181_vm5 = vcmp.eq.f32.partialorder %v1180_v8, 8.507059e+37 }
0x1a5f   :  { %v3038_v2 = vpop.eup %3037 }
0x1a60   :  { %v1172_v4 = vmul.f32 %v3038_v2, %v1170_v34  ;;  %vm1177_vm12 = vweird.f32 %v3038_v2 }
0x1a61   :  { %vm1178_vm4 = vmor %vm1176_vm13, %vm1177_vm12 }
0x1a62   :  { %v1173_v12 = vsub.f32 1.0, %v1172_v4 }
0x1a64   :  { %v1174_v5 = vmul.f32 %v3038_v2, %v1173_v12 }
0x1a66   :  { %v1175_v6 = vadd.f32 %v3038_v2, %v1174_v5 }
0x1a68   :  { %v1179_v9 = vsel %vm1178_vm4, %v3038_v2, %v1175_v6 }
0x1a69   :  { %v1184_v14 = vsel %vm1181_vm5, %v1183_v10, %v1179_v9 }
0x1a6a   :  { %v1199_v23 = vsub.f32 1.0, %v1184_v14  ;;  %v1208_v26 = vmul.f32 %v1206_v24, %v1184_v14  ;;  %v1546_v24 = vrot.slane %v3454_v57, 7 }
0x1ac0   :  { %v1190_v13 = vpop.permute.xlu0 %1189 }
0x1ac1   :  { %v1192_v16 = vmul.f32 %v1190_v13, %v1184_v14 }
0x1ac3   :  { %1194 = vrot.lane.b32.xlu1 %v1192_v16, %s3203_s22 }
0x1acb   :  { %1505 = vrot.lane.b32.xlu1 %v1504_v18, %s3202_s14 }
0x1b35   :  { %v1195_v20 = vpop.permute.xlu1 %1194 }
0x1b36   :  { %v1197_v21 = vadd.f32 %v1195_v20, %v3508_v11 }
0x1b38   :  { %3039 = vtanh.f32 %v1197_v21 }
0x1b3d   :  { %v1506_v19 = vpop.permute.xlu1 %1505 }
0x1b3e   :  { %v3040_v22 = vpop.eup %3039 }
0x1b3f   :  { %1201 = vrot.lane.b32.xlu2 %v3040_v22, %s3202_s14 }
0x1b99   :  { %v1202_v25 = vpop.permute.xlu2 %1201 }
0x1b9a   :  { %v1204_v27 = vmul.f32 %v1202_v25, %v1199_v23 }
0x1b9c   :  { %v1209_v1 = vadd.f32 %v1208_v26, %v1204_v27 }
0x1b9e   :  { %v3558_v28 = vsel %vm894_vm9, %v1487_v58, %v1209_v1  ;;  %v1210_v29 = vpack.c.bf16 %v1209_v1, %v1209_v1  ;;  %v1276_v61 = vrot.slane %v1209_v1, 7 }
0x1ba0   :  { %v1212_v30 = vshrl.u32 %v1210_v29, 16 }
0x1ba2   :  { %v1214_v31 = vrot.slane %v1212_v30, 1 }
0x1ba4   :  { %1215 = vrot.lane.b32.xlu0 %v1214_v31, %s3202_s14 }
0x1c16   :  { %v1216_v32 = vpop.permute.xlu0 %1215 }
0x1c17   :  { %2868 = vmatmul.msk.bf16.vlgmr.msrb.gmra.mxu3 %vm331_vm0, %v1216_v32 }
0x1c18   :  { %1780 = vmatpush.bf16.msrb.mxu3 %v3523_v40 }
0x1c27   :  { %2876 = vmatmul.msk.bf16.vlgmr.msra.gmra.mxu3 %vm368_vm7, %v1506_v19 }
0x1c28   :  { %2054 = vmatpush.bf16.msra.mxu3 %v3469_v62 }
0x1c9a   :  { %v1229_v33 = vpop.f32.mrf.mxu3 }
0x1c9b   :  { %v1234_v35 = vrot.slane %v1229_v33, 4  ;;  %v1256_v36 = vadd.f32 %v1229_v33, %v3500_v3 }
0x1c9d   :  { %v1236_v38 = vadd.f32 %v1234_v35, %v3508_v11  ;;  %v1258_v39 = vrot.slane %v1256_v36, 4 }
0x1c9f   :  { %v2869_v41 = vmul.f32 -1.442695, %v1236_v38  ;;  %1259 = vrot.lane.b32.xlu2 %v1258_v39, %s3203_s22 }
0x1ca1   :  { %3041 = vpow2.f32 %v2869_v41 }
0x1ca2   :  { %v1231_v42 = vpop.f32.mrf.mxu3 }
0x1ca7   :  { %v3042_v43 = vpop.eup %3041 }
0x1ca8   :  { %v1240_v44 = vadd.f32 1.0, %v3042_v43 }
0x1caa   :  { %3043 = vrcp.f32 %v1240_v44  ;;  %v1519_v46 = vpop.f32.mrf.mxu3  ;;  %v1252_v51 = vand.u32 2147483648, %v1240_v44  ;;  %v1250_v54 = vand.u32 2147483647, %v1240_v44  ;;  %vm1246_vm10 = vweird.f32 %v1240_v44 }
0x1cab   :  { %v1523_v62 = vadd.f32 %v1519_v46, %v3568_v45 }
0x1cac   :  { %v1253_v59 = vor.u32 1.1754944e-38, %v1252_v51  ;;  %vm1251_vm13 = vcmp.eq.f32.partialorder %v1250_v54, 8.507059e+37 }
0x1cad   :  { %v2877_v47 = vmul.f32 -1.442695, %v1523_v62 }
0x1caf   :  { %3045 = vpow2.f32 %v2877_v47 }
0x1cb0   :  { %v3044_v48 = vpop.eup %3043 }
0x1cb1   :  { %v1242_v49 = vmul.f32 %v3044_v48, %v1240_v44  ;;  %vm1247_vm6 = vweird.f32 %v3044_v48 }
0x1cb2   :  { %v1521_v58 = vpop.f32.mrf.mxu3  ;;  %vm1248_vm12 = vmor %vm1246_vm10, %vm1247_vm6 }
0x1cb3   :  { %v1243_v50 = vsub.f32 1.0, %v1242_v49 }
0x1cb5   :  { %v3046_v52 = vpop.eup %3045  ;;  %v1244_v53 = vmul.f32 %v3044_v48, %v1243_v50 }
0x1cb6   :  { %v1527_v55 = vadd.f32 1.0, %v3046_v52 }
0x1cb7   :  { %v1245_v56 = vadd.f32 %v3044_v48, %v1244_v53 }
0x1cb8   :  { %3047 = vrcp.f32 %v1527_v55  ;;  %v1539_v5 = vand.u32 2147483648, %v1527_v55  ;;  %v1537_v7 = vand.u32 2147483647, %v1527_v55  ;;  %vm1533_vm5 = vweird.f32 %v1527_v55 }
0x1cb9   :  { %v1249_v37 = vsel %vm1248_vm12, %v3044_v48, %v1245_v56 }
0x1cba   :  { %v1254_v0 = vsel %vm1251_vm13, %v1253_v59, %v1249_v37  ;;  %v1540_v9 = vor.u32 1.1754944e-38, %v1539_v5  ;;  %vm1538_vm11 = vcmp.eq.f32.partialorder %v1537_v7, 8.507059e+37 }
0x1cbb   :  { %v1278_v34 = vmul.f32 %v1276_v61, %v1254_v0  ;;  %v1269_v29 = vsub.f32 1.0, %v1254_v0 }
0x1cbe   :  { %v3048_v2 = vpop.eup %3047 }
0x1cbf   :  { %v1529_v4 = vmul.f32 %v3048_v2, %v1527_v55  ;;  %vm1534_vm4 = vweird.f32 %v3048_v2 }
0x1cc0   :  { %vm1535_vm1 = vmor %vm1533_vm5, %vm1534_vm4 }
0x1cc1   :  { %v1530_v12 = vsub.f32 1.0, %v1529_v4 }
0x1cc3   :  { %v1531_v6 = vmul.f32 %v3048_v2, %v1530_v12 }
0x1cc5   :  { %v1532_v8 = vadd.f32 %v3048_v2, %v1531_v6 }
0x1cc7   :  { %v1536_v10 = vsel %vm1535_vm1, %v3048_v2, %v1532_v8 }
0x1cc8   :  { %v1541_v13 = vsel %vm1538_vm11, %v1540_v9, %v1536_v10 }
0x1cc9   :  { %v1543_v14 = vmul.f32 2.0, %v1541_v13  ;;  %v1548_v25 = vmul.f32 %v1546_v24, %v1541_v13 }
0x1ccb   :  { %v2878_v15 = vadd.f32 -1.0, %v1543_v14 }
0x1ccd   :  { %1550 = vrot.lane.b32.xlu0 %v2878_v15, %s3200_s4 }
0x1cf9   :  { %v1260_v16 = vpop.permute.xlu2 %1259 }
0x1cfa   :  { %v1262_v17 = vmul.f32 %v1260_v16, %v1254_v0 }
0x1cfc   :  { %1264 = vrot.lane.b32.xlu1 %v1262_v17, %s3203_s22 }
0x1d3f   :  { %v1551_v18 = vpop.permute.xlu0 %1550 }
0x1d40   :  { %v1553_v20 = vmul.f32 %v1551_v18, %v1541_v13 }
0x1d42   :  { %1555 = vrot.lane.b32.xlu2 %v1553_v20, %s3201_s8 }
0x1d6e   :  { %v1265_v21 = vpop.permute.xlu1 %1264 }
0x1d6f   :  { %v1267_v22 = vadd.f32 %v1265_v21, %v3508_v11 }
0x1d71   :  { %3049 = vtanh.f32 %v1267_v22 }
0x1d77   :  { %v3050_v23 = vpop.eup %3049 }
0x1d78   :  { %1271 = vrot.lane.b32.xlu0 %v3050_v23, %s3202_s14 }
0x1d9c   :  { %v1556_v26 = vpop.permute.xlu2 %1555 }
0x1d9d   :  { %v3577_v27 = vadd.f32 %v1556_v26, %v1548_v25 }
0x1d9f   :  { %3051 = vtanh.f32 %v3577_v27 }
0x1da5   :  { %v3052_v1 = vpop.eup %3051 }
0x1da6   :  { %1561 = vrot.lane.b32.xlu1 %v3052_v1, %s3201_s8 }
0x1dea   :  { %v1272_v30 = vpop.permute.xlu0 %1271 }
0x1deb   :  { %v1274_v31 = vmul.f32 %v1272_v30, %v1269_v29  ;;  %v1611_v29 = vrot.slane %v3577_v27, 7 }
0x1ded   :  { %v3581_v32 = vadd.f32 %v1278_v34, %v1274_v31 }
0x1def   :  { %v3586_v19 = vsel %vm896_vm14, %v3558_v28, %v3581_v32  ;;  %v1280_v57 = vpack.c.bf16 %v3581_v32, %v3581_v32 }
0x1df1   :  { %v1282_v33 = vrot.slane %v1280_v57, 2 }
0x1df3   :  { %1283 = vrot.lane.b32.xlu2 %v1282_v33, %s3202_s14 }
0x1e18   :  { %v1562_v35 = vpop.permute.xlu1 %1561 }
0x1e19   :  { %v3591_v36 = vmul.f32 %v1562_v35, %v1541_v13 }
0x1e1b   :  { %v1565_v38 = vpack.c.bf16 %v3591_v36, %v3591_v36 }
0x1e1d   :  { %1567 = vrot.lane.b32.xlu0 %v1565_v38, %s3202_s14  ;;  %v1344_v38 = vrot.slane %v3581_v32, 7 }
0x1e4d   :  { %v1284_v39 = vpop.permute.xlu2 %1283 }
0x1e4e   :  { %2870 = vmatmul.msk.bf16.vlgmr.msra.gmra.mxu0 %vm331_vm0, %v1284_v39 }
0x1e4f   :  { %1846 = vmatpush.bf16.msra.mxu0 %v3523_v40 }
0x1e8f   :  { %v1568_v28 = vpop.permute.xlu0 %1567 }
0x1e90   :  { %2879 = vmatmul.msk.bf16.vlgmr.msrb.gmra.mxu0 %vm368_vm7, %v1568_v28 }
0x1e91   :  { %2079 = vmatpush.bf16.msrb.mxu0 %v3461_v60 }
0x1e95   :  { %2080 = vmatpush.bf16.msrb.mxu0 %v3475_v63 }
0x1ecb   :  { %v1297_v41 = vpop.f32.mrf.mxu0 }
0x1ecc   :  { %v1324_v42 = vadd.f32 %v1297_v41, %v3500_v3  ;;  %v1302_v46 = vrot.slane %v1297_v41, 3 }
0x1ece   :  { %v1326_v43 = vrot.slane %v1324_v42, 3  ;;  %v1304_v49 = vadd.f32 %v1302_v46, %v3508_v11 }
0x1ed0   :  { %1327 = vrot.lane.b32.xlu1 %v1326_v43, %s3203_s22  ;;  %v2871_v50 = vmul.f32 -1.442695, %v1304_v49 }
0x1ed3   :  { %v1299_v44 = vpop.f32.mrf.mxu0 }
0x1f0d   :  { %v1581_v62 = vpop.f32.mrf.mxu0 }
0x1f0e   :  { %v1586_v47 = vrot.slane %v1581_v62, 7 }
0x1f10   :  { %v1588_v48 = vadd.f32 %v1586_v47, %v3568_v45 }
0x1f12   :  { %v2880_v58 = vmul.f32 -1.442695, %v1588_v48 }
0x1f14   :  { %3053 = vpow2.f32 %v2880_v58 }
0x1f15   :  { %v1583_v51 = vpop.f32.mrf.mxu0  ;;  %3055 = vpow2.f32 %v2871_v50 }
0x1f1a   :  { %v3054_v52 = vpop.eup %3053 }
0x1f1b   :  { %v1592_v53 = vadd.f32 1.0, %v3054_v52  ;;  %v3056_v54 = vpop.eup %3055 }
0x1f1c   :  { %v1308_v55 = vadd.f32 1.0, %v3056_v54 }
0x1f1d   :  { %3057 = vrcp.f32 %v1592_v53  ;;  %v1604_v61 = vand.u32 2147483648, %v1592_v53  ;;  %v1602_v34 = vand.u32 2147483647, %v1592_v53  ;;  %vm1598_vm11 = vweird.f32 %v1592_v53 }
0x1f1e   :  { %3059 = vrcp.f32 %v1308_v55  ;;  %v1320_v15 = vand.u32 2147483648, %v1308_v55  ;;  %vm1314_vm13 = vweird.f32 %v1308_v55  ;;  %v1318_v16 = vand.u32 2147483647, %v1308_v55 }
0x1f1f   :  { %v1605_v4 = vor.u32 1.1754944e-38, %v1604_v61  ;;  %vm1603_vm10 = vcmp.eq.f32.partialorder %v1602_v34, 8.507059e+37 }
0x1f20   :  { %v1321_v18 = vor.u32 1.1754944e-38, %v1320_v15  ;;  %vm1319_vm5 = vcmp.eq.f32.partialorder %v1318_v16, 8.507059e+37 }
0x1f23   :  { %v3058_v56 = vpop.eup %3057 }
0x1f24   :  { %v1594_v59 = vmul.f32 %v3058_v56, %v1592_v53  ;;  %vm1599_vm1 = vweird.f32 %v3058_v56  ;;  %v3060_v12 = vpop.eup %3059 }
0x1f25   :  { %vm1600_vm6 = vmor %vm1598_vm11, %vm1599_vm1  ;;  %v1310_v8 = vmul.f32 %v3060_v12, %v1308_v55  ;;  %vm1315_vm12 = vweird.f32 %v3060_v12 }
0x1f26   :  { %v1595_v37 = vsub.f32 1.0, %v1594_v59  ;;  %vm1316_vm4 = vmor %vm1314_vm13, %vm1315_vm12 }
0x1f27   :  { %v1311_v10 = vsub.f32 1.0, %v1310_v8 }
0x1f28   :  { %v1596_v0 = vmul.f32 %v3058_v56, %v1595_v37 }
0x1f29   :  { %v1312_v13 = vmul.f32 %v3060_v12, %v1311_v10 }
0x1f2a   :  { %v1597_v2 = vadd.f32 %v3058_v56, %v1596_v0 }
0x1f2b   :  { %v1313_v14 = vadd.f32 %v3060_v12, %v1312_v13 }
0x1f2c   :  { %v1601_v5 = vsel %vm1600_vm6, %v3058_v56, %v1597_v2 }
0x1f2d   :  { %v1606_v6 = vsel %vm1603_vm10, %v1605_v4, %v1601_v5  ;;  %v1317_v17 = vsel %vm1316_vm4, %v3060_v12, %v1313_v14 }
0x1f2e   :  { %v1608_v7 = vmul.f32 2.0, %v1606_v6  ;;  %v1322_v21 = vsel %vm1319_vm5, %v1321_v18, %v1317_v17  ;;  %v1613_v30 = vmul.f32 %v1611_v29, %v1606_v6 }
0x1f2f   :  { %v1337_v35 = vsub.f32 1.0, %v1322_v21  ;;  %v1346_v28 = vmul.f32 %v1344_v38, %v1322_v21 }
0x1f30   :  { %v2881_v9 = vadd.f32 -1.0, %v1608_v7 }
0x1f32   :  { %1615 = vrot.lane.b32.xlu2 %v2881_v9, %s3200_s4 }
0x1f42   :  { %v1328_v20 = vpop.permute.xlu1 %1327 }
0x1f43   :  { %v1330_v22 = vmul.f32 %v1328_v20, %v1322_v21 }
0x1f45   :  { %1332 = vrot.lane.b32.xlu0 %v1330_v22, %s3203_s22 }
0x1f8c   :  { %v1616_v23 = vpop.permute.xlu2 %1615 }
0x1f8d   :  { %v1618_v24 = vmul.f32 %v1616_v23, %v1606_v6 }
0x1f8f   :  { %1620 = vrot.lane.b32.xlu1 %v1618_v24, %s3201_s8 }
0x1fb7   :  { %v1333_v25 = vpop.permute.xlu0 %1332 }
0x1fb8   :  { %v1335_v26 = vadd.f32 %v1333_v25, %v3508_v11 }
0x1fba   :  { %3061 = vtanh.f32 %v1335_v26 }
0x1fc0   :  { %v3062_v1 = vpop.eup %3061 }
0x1fc1   :  { %1339 = vrot.lane.b32.xlu2 %v3062_v1, %s3202_s14 }
0x2001   :  { %v1621_v31 = vpop.permute.xlu1 %1620 }
0x2002   :  { %v3611_v57 = vadd.f32 %v1621_v31, %v1613_v30 }
0x2004   :  { %3063 = vtanh.f32 %v3611_v57 }
0x200a   :  { %v3064_v33 = vpop.eup %3063 }
0x200b   :  { %1626 = vrot.lane.b32.xlu0 %v3064_v33, %s3201_s8 }
0x201b   :  { %v1340_v39 = vpop.permute.xlu2 %1339 }
0x201c   :  { %v1342_v41 = vmul.f32 %v1340_v39, %v1337_v35 }
0x201e   :  { %v3616_v42 = vadd.f32 %v1346_v28, %v1342_v41 }
0x2020   :  { %v1348_v27 = vpack.c.bf16 %v3616_v42, %v3616_v42  ;;  %v3623_v43 = vsel %vm898_vm8, %v3586_v19, %v3616_v42 }
0x2022   :  { %v1350_v44 = vshrl.u32 %v1348_v27, 16  ;;  %v1678_v27 = vrot.slane %v3611_v57, 7 }
0x2024   :  { %v1352_v46 = vrot.slane %v1350_v44, 2 }
0x2026   :  { %1353 = vrot.lane.b32.xlu1 %v1352_v46, %s3202_s14  ;;  %v1414_v46 = vrot.slane %v3616_v42, 7 }
0x207d   :  { %v1627_v62 = vpop.permute.xlu0 %1626 }
0x207e   :  { %v3626_v47 = vmul.f32 %v1627_v62, %v1606_v6 }
0x2080   :  { %v1630_v32 = vpack.c.bf16 %v3626_v47, %v3626_v47 }
0x2082   :  { %v1632_v48 = vshrl.u32 %v1630_v32, 16 }
0x2084   :  { %1634 = vrot.lane.b32.xlu2 %v1632_v48, %s3202_s14 }
0x2098   :  { %v1354_v49 = vpop.permute.xlu1 %1353 }
0x2099   :  { %2872 = vmatmul.msk.bf16.vlgmr.msra.gmra.mxu1 %vm331_vm0, %v1354_v49 }
0x209a   :  { %1914 = vmatpush.bf16.msra.mxu1 %v3523_v40 }
0x20de   :  { %v1635_v19 = vpop.permute.xlu2 %1634 }
0x20df   :  { %2882 = vmatmul.msk.bf16.vlgmr.msrb.gmra.mxu1 %vm368_vm7, %v1635_v19 }
0x20e0   :  { %2142 = vmatpush.bf16.msrb.mxu1 %v3461_v60 }
0x20e4   :  { %2143 = vmatpush.bf16.msrb.mxu1 %v3475_v63 }
0x2116   :  { %v1367_v58 = vpop.f32.mrf.mxu1 }
0x2117   :  { %v1394_v50 = vadd.f32 %v1367_v58, %v3500_v3  ;;  %v1372_v53 = vrot.slane %v1367_v58, 2 }
0x2119   :  { %v1396_v51 = vrot.slane %v1394_v50, 2  ;;  %v1374_v54 = vadd.f32 %v1372_v53, %v3508_v11 }
0x211b   :  { %1397 = vrot.lane.b32.xlu0 %v1396_v51, %s3203_s22  ;;  %v2873_v37 = vmul.f32 -1.442695, %v1374_v54  ;;  %v2031_v54 = vsel %vm890_vm2, %v3591_v36, %v3626_v47 }
0x211e   :  { %v1369_v52 = vpop.f32.mrf.mxu1 }
0x215c   :  { %v1648_v55 = vpop.f32.mrf.mxu1 }
0x215d   :  { %v1653_v56 = vrot.slane %v1648_v55, 6 }
0x215f   :  { %v1655_v59 = vadd.f32 %v1653_v56, %v3568_v45 }
0x2161   :  { %v2883_v61 = vmul.f32 -1.442695, %v1655_v59 }
0x2163   :  { %3065 = vpow2.f32 %v2883_v61 }
0x2164   :  { %3067 = vpow2.f32 %v2873_v37  ;;  %v1650_v0 = vpop.f32.mrf.mxu1 }
0x2169   :  { %v3066_v34 = vpop.eup %3065 }
0x216a   :  { %v3068_v2 = vpop.eup %3067  ;;  %v1659_v4 = vadd.f32 1.0, %v3066_v34 }
0x216b   :  { %v1378_v12 = vadd.f32 1.0, %v3068_v2 }
0x216c   :  { %3069 = vrcp.f32 %v1659_v4  ;;  %v1671_v8 = vand.u32 2147483648, %v1659_v4  ;;  %v1669_v13 = vand.u32 2147483647, %v1659_v4  ;;  %vm1665_vm11 = vweird.f32 %v1659_v4 }
0x216d   :  { %3071 = vrcp.f32 %v1378_v12  ;;  %v1390_v25 = vand.u32 2147483648, %v1378_v12  ;;  %vm1384_vm13 = vweird.f32 %v1378_v12  ;;  %v1388_v26 = vand.u32 2147483647, %v1378_v12 }
0x216e   :  { %v1672_v15 = vor.u32 1.1754944e-38, %v1671_v8  ;;  %vm1670_vm10 = vcmp.eq.f32.partialorder %v1669_v13, 8.507059e+37 }
0x216f   :  { %v1391_v29 = vor.u32 1.1754944e-38, %v1390_v25  ;;  %vm1389_vm5 = vcmp.eq.f32.partialorder %v1388_v26, 8.507059e+37 }
0x2172   :  { %v3070_v5 = vpop.eup %3069 }
0x2173   :  { %v1661_v6 = vmul.f32 %v3070_v5, %v1659_v4  ;;  %v3072_v9 = vpop.eup %3071  ;;  %vm1666_vm1 = vweird.f32 %v3070_v5 }
0x2174   :  { %vm1667_vm6 = vmor %vm1665_vm11, %vm1666_vm1  ;;  %v1380_v16 = vmul.f32 %v3072_v9, %v1378_v12  ;;  %vm1385_vm12 = vweird.f32 %v3072_v9 }
0x2175   :  { %v1662_v7 = vsub.f32 1.0, %v1661_v6  ;;  %vm1386_vm4 = vmor %vm1384_vm13, %vm1385_vm12 }
0x2176   :  { %v1381_v21 = vsub.f32 1.0, %v1380_v16 }
0x2177   :  { %v1663_v10 = vmul.f32 %v3070_v5, %v1662_v7 }
0x2178   :  { %v1382_v23 = vmul.f32 %v3072_v9, %v1381_v21 }
0x2179   :  { %v1664_v14 = vadd.f32 %v3070_v5, %v1663_v10 }
0x217a   :  { %v1383_v24 = vadd.f32 %v3072_v9, %v1382_v23 }
0x217b   :  { %v1668_v17 = vsel %vm1667_vm6, %v3070_v5, %v1664_v14 }
0x217c   :  { %v1673_v18 = vsel %vm1670_vm10, %v1672_v15, %v1668_v17  ;;  %v1387_v1 = vsel %vm1386_vm4, %v3072_v9, %v1383_v24 }
0x217d   :  { %v1675_v20 = vmul.f32 2.0, %v1673_v18  ;;  %v1392_v30 = vsel %vm1389_vm5, %v1391_v29, %v1387_v1  ;;  %v1680_v49 = vmul.f32 %v1678_v27, %v1673_v18 }
0x217e   :  { %v1407_v44 = vsub.f32 1.0, %v1392_v30  ;;  %v1416_v32 = vmul.f32 %v1414_v46, %v1392_v30 }
0x217f   :  { %v2884_v22 = vadd.f32 -1.0, %v1675_v20 }
0x2181   :  { %1682 = vrot.lane.b32.xlu1 %v2884_v22, %s3200_s4 }
0x218d   :  { %v1398_v31 = vpop.permute.xlu0 %1397 }
0x218e   :  { %v1400_v33 = vmul.f32 %v1398_v31, %v1392_v30 }
0x2190   :  { %1402 = vrot.lane.b32.xlu2 %v1400_v33, %s3203_s22 }
0x21ea   :  { %v1403_v35 = vpop.permute.xlu2 %1402 }
0x21eb   :  { %v1405_v38 = vadd.f32 %v1403_v35, %v3508_v11  ;;  %v3680_v35 = vld [vmem:[%s3867_s7 + $0x8] sm:$0xff] }
0x21ed   :  { %3073 = vtanh.f32 %v1405_v38  ;;  %v3686_v38 = vld [vmem:[%s3867_s7] sm:$0xff] }
0x21f3   :  { %v3074_v39 = vpop.eup %3073  ;;  %v1683_v28 = vpop.permute.xlu1 %1682 }
0x21f4   :  { %v1685_v41 = vmul.f32 %v1683_v28, %v1673_v18  ;;  %1409 = vrot.lane.b32.xlu1 %v3074_v39, %s3202_s14 }
0x21f6   :  { %1687 = vrot.lane.b32.xlu0 %v1685_v41, %s3201_s8 }
0x2266   :  { %v1410_v62 = vpop.permute.xlu1 %1409 }
0x2267   :  { %v1412_v48 = vmul.f32 %v1410_v62, %v1407_v44 }
0x2268   :  { %v1688_v19 = vpop.permute.xlu0 %1687 }
0x2269   :  { %v3647_v58 = vadd.f32 %v1416_v32, %v1412_v48  ;;  %v1690_v11 = vadd.f32 %v1688_v19, %v1680_v49 }
0x226b   :  { %3075 = vtanh.f32 %v1690_v11  ;;  %v1418_v50 = vpack.c.bf16 %v3647_v58, %v3647_v58  ;;  %v3654_v51 = vsel %vm900_vm15, %v3623_v43, %v3647_v58  ;;  %v1744_v20 = vrot.slane %v1690_v11, 7 }
0x226d   :  { %v1420_v57 = vrot.slane %v1418_v50, 3 }
0x226f   :  { %1421 = vrot.lane.b32.xlu0 %v1420_v57, %s3202_s14 }
0x2271   :  { %v3076_v42 = vpop.eup %3075 }
0x2272   :  { %1693 = vrot.lane.b32.xlu2 %v3076_v42, %s3201_s8 }
0x22cc   :  { %v1694_v52 = vpop.permute.xlu2 %1693 }
0x22cd   :  { %v1696_v53 = vmul.f32 %v1694_v52, %v1673_v18 }
0x22cf   :  { %v1697_v55 = vpack.c.bf16 %v1696_v53, %v1696_v53  ;;  %v2032_v56 = vsel %vm892_vm3, %v2031_v54, %v1696_v53 }
0x22d1   :  { %v1699_v59 = vrot.slane %v1697_v55, 1 }
0x22d3   :  { %1700 = vrot.lane.b32.xlu1 %v1699_v59, %s3202_s14 }
0x22e1   :  { %v1422_v43 = vpop.permute.xlu0 %1421 }
0x22e2   :  { %2874 = vmatmul.msk.bf16.vlgmr.msra.gmra.mxu2 %vm331_vm0, %v1422_v43 }
0x22e3   :  { %1980 = vmatpush.bf16.msra.mxu2 %v3523_v40 }
0x2345   :  { %v1701_v37 = vpop.permute.xlu1 %1700 }
0x2346   :  { %2885 = vmatmul.msk.bf16.vlgmr.msrb.gmra.mxu2 %vm368_vm7, %v1701_v37 }
0x2347   :  { %2211 = vmatpush.bf16.msrb.mxu2 %v3461_v60 }
0x234b   :  { %2212 = vmatpush.bf16.msrb.mxu2 %v3475_v63 }
0x2365   :  { %v3668_v61 = vpop.f32.mrf.mxu2 }
0x236d   :  { %v1437_v36 = vpop.f32.mrf.mxu2 }
0x23c9   :  { %v1714_v47 = vpop.f32.mrf.mxu2 }
0x23ca   :  { %v1719_v0 = vrot.slane %v1714_v47, 5 }
0x23cc   :  { %v1721_v34 = vadd.f32 %v1719_v0, %v3568_v45 }
0x23ce   :  { %v2886_v2 = vmul.f32 -1.442695, %v1721_v34 }
0x23d0   :  { %3077 = vpow2.f32 %v2886_v2 }
0x23d1   :  { %v1716_v4 = vpop.f32.mrf.mxu2 }
0x23d6   :  { %v3078_v12 = vpop.eup %3077 }
0x23d7   :  { %v1725_v5 = vadd.f32 1.0, %v3078_v12 }
0x23d9   :  { %3079 = vrcp.f32 %v1725_v5  ;;  %v1737_v8 = vand.u32 2147483648, %v1725_v5  ;;  %v1735_v63 = vand.u32 2147483647, %v1725_v5  ;;  %vm1731_vm11 = vweird.f32 %v1725_v5 }
0x23db   :  { %v1738_v10 = vor.u32 1.1754944e-38, %v1737_v8  ;;  %vm1736_vm10 = vcmp.eq.f32.partialorder %v1735_v63, 8.507059e+37 }
0x23df   :  { %v3080_v40 = vpop.eup %3079 }
0x23e0   :  { %v1727_v6 = vmul.f32 %v3080_v40, %v1725_v5  ;;  %vm1732_vm1 = vweird.f32 %v3080_v40 }
0x23e1   :  { %vm1733_vm6 = vmor %vm1731_vm11, %vm1732_vm1 }
0x23e2   :  { %v1728_v7 = vsub.f32 1.0, %v1727_v6 }
0x23e4   :  { %v1729_v60 = vmul.f32 %v3080_v40, %v1728_v7 }
0x23e6   :  { %v1730_v9 = vadd.f32 %v3080_v40, %v1729_v60 }
0x23e8   :  { %v1734_v13 = vsel %vm1733_vm6, %v3080_v40, %v1730_v9 }
0x23e9   :  { %v1739_v14 = vsel %vm1736_vm10, %v1738_v10, %v1734_v13 }
0x23ea   :  { %v1741_v15 = vmul.f32 2.0, %v1739_v14  ;;  %v1746_v21 = vmul.f32 %v1744_v20, %v1739_v14 }
0x23ec   :  { %v2887_v16 = vadd.f32 -1.0, %v1741_v15 }
0x23ee   :  { %1748 = vrot.lane.b32.xlu2 %v2887_v16, %s3200_s4 }
0x2448   :  { %v1749_v17 = vpop.permute.xlu2 %1748 }
0x2449   :  { %v1751_v18 = vmul.f32 %v1749_v17, %v1739_v14 }
0x244b   :  { %1753 = vrot.lane.b32.xlu0 %v1751_v18, %s3201_s8 }
0x24bd   :  { %v1754_v22 = vpop.permute.xlu0 %1753 }
0x24be   :  { %v1756_v23 = vadd.f32 %v1754_v22, %v1746_v21 }
0x24c0   :  { %3081 = vtanh.f32 %v1756_v23  ;;  %v1812_v43 = vrot.slane %v1756_v23, 7 }
0x24c6   :  { %v3082_v24 = vpop.eup %3081 }
0x24c7   :  { %1759 = vrot.lane.b32.xlu1 %v3082_v24, %s3201_s8 }
0x2539   :  { %v1760_v25 = vpop.permute.xlu1 %1759 }
0x253a   :  { %v1762_v26 = vmul.f32 %v1760_v25, %v1739_v14 }
0x253c   :  { %v1763_v1 = vpack.c.bf16 %v1762_v26, %v1762_v26  ;;  %v2033_v29 = vsel %vm894_vm9, %v2032_v56, %v1762_v26 }
0x253e   :  { %v1765_v30 = vshrl.u32 %v1763_v1, 16 }
0x2540   :  { %v1767_v31 = vrot.slane %v1765_v30, 1 }
0x2542   :  { %1768 = vrot.lane.b32.xlu2 %v1767_v31, %s3202_s14 }
0x259c   :  { %v1769_v33 = vpop.permute.xlu2 %1768 }
0x259d   :  { %2888 = vmatmul.msk.bf16.vlgmr.msrb.gmra.mxu3 %vm368_vm7, %v1769_v33 }
0x259e   :  { %2279 = vmatpush.bf16.msrb.mxu3 %v3680_v35 }
0x25a2   :  { %2280 = vmatpush.bf16.msrb.mxu3 %v3686_v38 }
0x2620   :  { %v1782_v39 = vpop.f32.mrf.mxu3 }
0x2621   :  { %v1787_v28 = vrot.slane %v1782_v39, 4 }
0x2623   :  { %v1789_v41 = vadd.f32 %v1787_v28, %v3568_v45 }
0x2625   :  { %v2889_v27 = vmul.f32 -1.442695, %v1789_v41 }
0x2627   :  { %3083 = vpow2.f32 %v2889_v27 }
0x2628   :  { %v1784_v44 = vpop.f32.mrf.mxu3 }
0x262d   :  { %v3084_v46 = vpop.eup %3083 }
0x262e   :  { %v1793_v62 = vadd.f32 1.0, %v3084_v46 }
0x2630   :  { %3085 = vrcp.f32 %v1793_v62  ;;  %v1805_v19 = vand.u32 2147483648, %v1793_v62  ;;  %v1803_v50 = vand.u32 2147483647, %v1793_v62  ;;  %vm1799_vm13 = vweird.f32 %v1793_v62 }
0x2632   :  { %v1806_v42 = vor.u32 1.1754944e-38, %v1805_v19  ;;  %vm1804_vm5 = vcmp.eq.f32.partialorder %v1803_v50, 8.507059e+37 }
0x2636   :  { %v3086_v32 = vpop.eup %3085 }
0x2637   :  { %v1795_v48 = vmul.f32 %v3086_v32, %v1793_v62  ;;  %vm1800_vm12 = vweird.f32 %v3086_v32 }
0x2638   :  { %vm1801_vm4 = vmor %vm1799_vm13, %vm1800_vm12 }
0x2639   :  { %v1796_v49 = vsub.f32 1.0, %v1795_v48 }
0x263b   :  { %v1797_v11 = vmul.f32 %v3086_v32, %v1796_v49 }
0x263d   :  { %v1798_v57 = vadd.f32 %v3086_v32, %v1797_v11 }
0x263f   :  { %v1802_v52 = vsel %vm1801_vm4, %v3086_v32, %v1798_v57 }
0x2640   :  { %v1807_v53 = vsel %vm1804_vm5, %v1806_v42, %v1802_v52 }
0x2641   :  { %v1809_v54 = vmul.f32 2.0, %v1807_v53  ;;  %v1814_v37 = vmul.f32 %v1812_v43, %v1807_v53 }
0x2643   :  { %v2890_v55 = vadd.f32 -1.0, %v1809_v54 }
0x2645   :  { %1816 = vrot.lane.b32.xlu0 %v2890_v55, %s3200_s4 }
0x26b7   :  { %v1817_v56 = vpop.permute.xlu0 %1816 }
0x26b8   :  { %v1819_v59 = vmul.f32 %v1817_v56, %v1807_v53 }
0x26ba   :  { %1821 = vrot.lane.b32.xlu1 %v1819_v59, %s3201_s8 }
0x272c   :  { %v1822_v36 = vpop.permute.xlu1 %1821 }
0x272d   :  { %v1824_v47 = vadd.f32 %v1822_v36, %v1814_v37 }
0x272f   :  { %3087 = vtanh.f32 %v1824_v47 }
0x2735   :  { %v3088_v0 = vpop.eup %3087 }
0x2736   :  { %1827 = vrot.lane.b32.xlu2 %v3088_v0, %s3201_s8 }
0x2790   :  { %v1828_v34 = vpop.permute.xlu2 %1827 }
0x2791   :  { %v1830_v2 = vmul.f32 %v1828_v34, %v1807_v53 }
0x2793   :  { %v1831_v4 = vpack.c.bf16 %v1830_v2, %v1830_v2  ;;  %v2034_v12 = vsel %vm896_vm14, %v2033_v29, %v1830_v2  ;;  %v1878_v29 = vrot.slane %v1824_v47, 7 }
0x2795   :  { %v1833_v5 = vrot.slane %v1831_v4, 2 }
0x2797   :  { %1834 = vrot.lane.b32.xlu0 %v1833_v5, %s3202_s14 }
0x2809   :  { %v1835_v40 = vpop.permute.xlu0 %1834 }
0x280a   :  { %2891 = vmatmul.msk.bf16.vlgmr.msra.gmra.mxu0 %vm368_vm7, %v1835_v40 }
0x280b   :  { %2349 = vmatpush.bf16.msra.mxu0 %v3680_v35 }
0x280f   :  { %2350 = vmatpush.bf16.msra.mxu0 %v3686_v38 }
0x2887   :  { %v1848_v6 = vpop.f32.mrf.mxu0 }
0x2888   :  { %v1853_v7 = vrot.slane %v1848_v6, 3 }
0x288a   :  { %v1855_v8 = vadd.f32 %v1853_v7, %v3568_v45 }
0x288c   :  { %v2892_v60 = vmul.f32 -1.442695, %v1855_v8 }
0x288e   :  { %3089 = vpow2.f32 %v2892_v60 }
0x288f   :  { %v1850_v63 = vpop.f32.mrf.mxu0 }
0x2890   :  { %v1440_v63 = vrot.slane %v3668_v61, 1 }
0x2894   :  { %v3090_v9 = vpop.eup %3089 }
0x2895   :  { %v1859_v10 = vadd.f32 1.0, %v3090_v9  ;;  %v3172_v9 = vld [vmem:[#allocation3] sm:$0xff] }
0x2897   :  { %3091 = vrcp.f32 %v1859_v10  ;;  %v1871_v16 = vand.u32 2147483648, %v1859_v10  ;;  %v1869_v18 = vand.u32 2147483647, %v1859_v10  ;;  %vm1865_vm11 = vweird.f32 %v1859_v10 }
0x2899   :  { %v1872_v21 = vor.u32 1.1754944e-38, %v1871_v16  ;;  %vm1870_vm10 = vcmp.eq.f32.partialorder %v1869_v18, 8.507059e+37 }
0x289d   :  { %v3092_v13 = vpop.eup %3091 }
0x289e   :  { %v1861_v14 = vmul.f32 %v3092_v13, %v1859_v10  ;;  %vm1866_vm1 = vweird.f32 %v3092_v13  ;;  %v1442_v10 = vadd.f32 %v3172_v9, %v1440_v63 }
0x289f   :  { %vm1867_vm6 = vmor %vm1865_vm11, %vm1866_vm1 }
0x28a0   :  { %v1862_v15 = vsub.f32 1.0, %v1861_v14 }
0x28a2   :  { %v1863_v17 = vmul.f32 %v3092_v13, %v1862_v15 }
0x28a4   :  { %v1864_v20 = vadd.f32 %v3092_v13, %v1863_v17 }
0x28a6   :  { %v1868_v22 = vsel %vm1867_vm6, %v3092_v13, %v1864_v20  ;;  %v2875_v13 = vmul.f32 -1.442695, %v1442_v10 }
0x28a7   :  { %v1873_v23 = vsel %vm1870_vm10, %v1872_v21, %v1868_v22 }
0x28a8   :  { %v1875_v24 = vmul.f32 2.0, %v1873_v23  ;;  %v1880_v30 = vmul.f32 %v1878_v29, %v1873_v23 }
0x28aa   :  { %v2893_v25 = vadd.f32 -1.0, %v1875_v24 }
0x28ac   :  { %1882 = vrot.lane.b32.xlu1 %v2893_v25, %s3200_s4 }
0x291e   :  { %v1883_v26 = vpop.permute.xlu1 %1882 }
0x291f   :  { %v1885_v1 = vmul.f32 %v1883_v26, %v1873_v23 }
0x2921   :  { %1887 = vrot.lane.b32.xlu2 %v1885_v1, %s3201_s8 }
0x297b   :  { %v1888_v31 = vpop.permute.xlu2 %1887 }
0x297c   :  { %v1890_v33 = vadd.f32 %v1888_v31, %v1880_v30 }
0x297e   :  { %3093 = vtanh.f32 %v1890_v33  ;;  %v1946_v40 = vrot.slane %v1890_v33, 7 }
0x2984   :  { %v3094_v39 = vpop.eup %3093 }
0x2985   :  { %1893 = vrot.lane.b32.xlu0 %v3094_v39, %s3201_s8 }
0x29f7   :  { %v1894_v28 = vpop.permute.xlu0 %1893 }
0x29f8   :  { %v1896_v41 = vmul.f32 %v1894_v28, %v1873_v23 }
0x29fa   :  { %v1897_v27 = vpack.c.bf16 %v1896_v41, %v1896_v41  ;;  %v3703_v44 = vsel %vm898_vm8, %v2034_v12, %v1896_v41  ;;  %v1462_v12 = vadd.f32 %v3668_v61, %v3500_v3 }
0x29fc   :  { %v1899_v46 = vshrl.u32 %v1897_v27, 16  ;;  %v1464_v5 = vrot.slane %v1462_v12, 1 }
0x29fe   :  { %v1901_v62 = vrot.slane %v1899_v46, 2 }
0x2a00   :  { %1902 = vrot.lane.b32.xlu1 %v1901_v62, %s3202_s14 }
0x2a72   :  { %v1903_v32 = vpop.permute.xlu1 %1902 }
0x2a73   :  { %2894 = vmatmul.msk.bf16.vlgmr.msra.gmra.mxu1 %vm368_vm7, %v1903_v32 }
0x2a74   :  { %2417 = vmatpush.bf16.msra.mxu1 %v3680_v35 }
0x2a78   :  { %2418 = vmatpush.bf16.msra.mxu1 %v3686_v38 }
0x2af0   :  { %v1916_v48 = vpop.f32.mrf.mxu1 }
0x2af1   :  { %v1921_v49 = vrot.slane %v1916_v48, 2 }
0x2af3   :  { %v1923_v19 = vadd.f32 %v1921_v49, %v3568_v45 }
0x2af5   :  { %v2895_v11 = vmul.f32 -1.442695, %v1923_v19 }
0x2af7   :  { %3095 = vpow2.f32 %v2895_v11 }
0x2af8   :  { %v1918_v50 = vpop.f32.mrf.mxu1 }
0x2afd   :  { %v3096_v57 = vpop.eup %3095 }
0x2afe   :  { %v1927_v42 = vadd.f32 1.0, %v3096_v57 }
0x2b00   :  { %3097 = vrcp.f32 %v1927_v42  ;;  %v1939_v55 = vand.u32 2147483648, %v1927_v42  ;;  %v1937_v59 = vand.u32 2147483647, %v1927_v42  ;;  %vm1933_vm13 = vweird.f32 %v1927_v42 }
0x2b02   :  { %v1940_v37 = vor.u32 1.1754944e-38, %v1939_v55  ;;  %vm1938_vm5 = vcmp.eq.f32.partialorder %v1937_v59, 8.507059e+37 }
0x2b06   :  { %v3098_v52 = vpop.eup %3097 }
0x2b07   :  { %v1929_v53 = vmul.f32 %v3098_v52, %v1927_v42  ;;  %vm1934_vm12 = vweird.f32 %v3098_v52 }
0x2b08   :  { %vm1935_vm4 = vmor %vm1933_vm13, %vm1934_vm12 }
0x2b09   :  { %v1930_v54 = vsub.f32 1.0, %v1929_v53 }
0x2b0b   :  { %v1931_v56 = vmul.f32 %v3098_v52, %v1930_v54 }
0x2b0d   :  { %v1932_v43 = vadd.f32 %v3098_v52, %v1931_v56 }
0x2b0f   :  { %v1936_v36 = vsel %vm1935_vm4, %v3098_v52, %v1932_v43 }
0x2b10   :  { %v1941_v47 = vsel %vm1938_vm5, %v1940_v37, %v1936_v36 }
0x2b11   :  { %v1943_v0 = vmul.f32 2.0, %v1941_v47  ;;  %v1948_v6 = vmul.f32 %v1946_v40, %v1941_v47 }
0x2b13   :  { %v2896_v34 = vadd.f32 -1.0, %v1943_v0 }
0x2b15   :  { %1950 = vrot.lane.b32.xlu2 %v2896_v34, %s3200_s4  ;;  %v1482_v34 = vrot.slane %v3647_v58, 7 }
0x2b6f   :  { %v1951_v2 = vpop.permute.xlu2 %1950 }
0x2b70   :  { %v1953_v4 = vmul.f32 %v1951_v2, %v1941_v47 }
0x2b72   :  { %1955 = vrot.lane.b32.xlu0 %v1953_v4, %s3201_s8 }
0x2b7a   :  { %1465 = vrot.lane.b32.xlu0 %v1464_v5, %s3203_s22 }
0x2be4   :  { %v1956_v7 = vpop.permute.xlu0 %1955 }
0x2be5   :  { %v3715_v8 = vadd.f32 %v1956_v7, %v1948_v6 }
0x2be7   :  { %3099 = vtanh.f32 %v3715_v8  ;;  %v2012_v63 = vrot.slane %v3715_v8, 7 }
0x2be8   :  { %3101 = vpow2.f32 %v2875_v13 }
0x2bec   :  { %v1466_v31 = vpop.permute.xlu0 %1465 }
0x2bed   :  { %v3100_v60 = vpop.eup %3099 }
0x2bee   :  { %1961 = vrot.lane.b32.xlu1 %v3100_v60, %s3201_s8  ;;  %v3102_v14 = vpop.eup %3101 }
0x2bef   :  { %v1446_v15 = vadd.f32 1.0, %v3102_v14 }
0x2bf1   :  { %3103 = vrcp.f32 %v1446_v15  ;;  %v1458_v26 = vand.u32 2147483648, %v1446_v15  ;;  %vm1452_vm11 = vweird.f32 %v1446_v15  ;;  %v1456_v1 = vand.u32 2147483647, %v1446_v15 }
0x2bf3   :  { %v1459_v30 = vor.u32 1.1754944e-38, %v1458_v26  ;;  %vm1457_vm10 = vcmp.eq.f32.partialorder %v1456_v1, 8.507059e+37 }
0x2bf7   :  { %v3104_v16 = vpop.eup %3103 }
0x2bf8   :  { %v1448_v17 = vmul.f32 %v3104_v16, %v1446_v15  ;;  %vm1453_vm1 = vweird.f32 %v3104_v16 }
0x2bf9   :  { %vm1454_vm6 = vmor %vm1452_vm11, %vm1453_vm1  ;;  %vm3875_vm1 = vcmask 1046528  }
0x2bfa   :  { %v1449_v18 = vsub.f32 1.0, %v1448_v17  ;;  %vm3876_vm11 = vmmov %vm3875_vm1 }
0x2bfc   :  { %v1450_v21 = vmul.f32 %v3104_v16, %v1449_v18 }
0x2bfe   :  { %v1451_v25 = vadd.f32 %v3104_v16, %v1450_v21 }
0x2c00   :  { %v1455_v29 = vsel %vm1454_vm6, %v3104_v16, %v1451_v25  ;;  %vm3877_vm6 = vcmask 785408  }
0x2c01   :  { %v1460_v33 = vsel %vm1457_vm10, %v1459_v30, %v1455_v29 }
0x2c02   :  { %v1468_v39 = vmul.f32 %v1466_v31, %v1460_v33  ;;  %v1475_v0 = vsub.f32 1.0, %v1460_v33  ;;  %v1484_v4 = vmul.f32 %v1482_v34, %v1460_v33 }
0x2c60   :  { %v1962_v20 = vpop.permute.xlu1 %1961 }
0x2c61   :  { %v1964_v22 = vmul.f32 %v1962_v20, %v1941_v47 }
0x2c63   :  { %v1965_v23 = vpack.c.bf16 %v1964_v22, %v1964_v22  ;;  %v3722_v24 = vsel %vm900_vm15, %v3703_v44, %v1964_v22  ;;  %v2039_v22 = vld [vmem:[#allocation3 + $0x8] sm:$0xff] }
0x2c65   :  { %v1967_v61 = vrot.slane %v1965_v23, 3 }
0x2c67   :  { %1968 = vrot.lane.b32.xlu2 %v1967_v61, %s3202_s14 }
0x2c6f   :  { %1470 = vrot.lane.b32.xlu2 %v1468_v39, %s3203_s22 }
0x2cc1   :  { %v1969_v28 = vpop.permute.xlu2 %1968 }
0x2cc2   :  { %2897 = vmatmul.msk.bf16.vlgmr.msra.gmra.mxu2 %vm368_vm7, %v1969_v28 }
0x2cc3   :  { %2487 = vmatpush.bf16.msra.mxu2 %v3680_v35 }
0x2cc7   :  { %2488 = vmatpush.bf16.msra.mxu2 %v3686_v38 }
0x2cc9   :  { %v1471_v54 = vpop.permute.xlu2 %1470 }
0x2cca   :  { %v1473_v59 = vadd.f32 %v3172_v9, %v1471_v54 }
0x2d45   :  { %v1982_v41 = vpop.f32.mrf.mxu2 }
0x2d46   :  { %v1987_v27 = vrot.slane %v1982_v41, 1 }
0x2d48   :  { %v1989_v44 = vadd.f32 %v1987_v27, %v3568_v45 }
0x2d4a   :  { %v2898_v46 = vmul.f32 -1.442695, %v1989_v44 }
0x2d4c   :  { %3105 = vpow2.f32 %v2898_v46 }
0x2d4d   :  { %v1984_v62 = vpop.f32.mrf.mxu2 }
0x2d52   :  { %v3106_v32 = vpop.eup %3105 }
0x2d53   :  { %v1993_v48 = vadd.f32 1.0, %v3106_v32 }
0x2d55   :  { %3107 = vrcp.f32 %v1993_v48  ;;  %v2005_v50 = vand.u32 2147483648, %v1993_v48  ;;  %v2003_v42 = vand.u32 2147483647, %v1993_v48  ;;  %vm1999_vm13 = vweird.f32 %v1993_v48 }
0x2d56   :  { %3109 = vtanh.f32 %v1473_v59 }
0x2d57   :  { %v2006_v53 = vor.u32 1.1754944e-38, %v2005_v50  ;;  %vm2004_vm5 = vcmp.eq.f32.partialorder %v2003_v42, 8.507059e+37 }
0x2d5b   :  { %v3108_v49 = vpop.eup %3107 }
0x2d5c   :  { %v1995_v19 = vmul.f32 %v3108_v49, %v1993_v48  ;;  %vm2000_vm12 = vweird.f32 %v3108_v49  ;;  %v3110_v37 = vpop.eup %3109 }
0x2d5d   :  { %vm2001_vm4 = vmor %vm1999_vm13, %vm2000_vm12 }
0x2d5e   :  { %v1996_v11 = vsub.f32 1.0, %v1995_v19 }
0x2d60   :  { %v1997_v57 = vmul.f32 %v3108_v49, %v1996_v11 }
0x2d62   :  { %v1998_v52 = vadd.f32 %v3108_v49, %v1997_v57 }
0x2d64   :  { %v2002_v55 = vsel %vm2001_vm4, %v3108_v49, %v1998_v52 }
0x2d65   :  { %v2007_v45 = vsel %vm2004_vm5, %v2006_v53, %v2002_v55 }
0x2d66   :  { %v2009_v56 = vmul.f32 2.0, %v2007_v45  ;;  %v2014_v9 = vmul.f32 %v2012_v63, %v2007_v45 }
0x2d68   :  { %v2899_v43 = vadd.f32 -1.0, %v2009_v56 }
0x2d6a   :  { %2016 = vrot.lane.b32.xlu1 %v2899_v43, %s3200_s4 }
0x2d72   :  { %1477 = vrot.lane.b32.xlu1 %v3110_v37, %s3202_s14 }
0x2ddc   :  { %v2017_v36 = vpop.permute.xlu1 %2016 }
0x2ddd   :  { %v2019_v47 = vmul.f32 %v2017_v36, %v2007_v45 }
0x2ddf   :  { %2021 = vrot.lane.b32.xlu0 %v2019_v47, %s3201_s8 }
0x2de4   :  { %v1478_v2 = vpop.permute.xlu1 %1477 }
0x2de5   :  { %v1480_v12 = vmul.f32 %v1478_v2, %v1475_v0 }
0x2de7   :  { %v1485_v5 = vadd.f32 %v1484_v4, %v1480_v12 }
0x2de9   :  { %v2063_v40 = vpack.c.bf16 %v1485_v5, %v1485_v5  ;;  %v3736_v6 = vsel %vm3875_vm1, %v3654_v51, %v1485_v5  ;;  %v2125_v46 = vrot.slane %v1485_v5, 7 }
0x2deb   :  { %v2065_v7 = vshrl.u32 %v2063_v40, 16 }
0x2ded   :  { %v2067_v60 = vrot.slane %v2065_v7, 3 }
0x2def   :  { %2068 = vrot.lane.b32.xlu1 %v2067_v60, %s3202_s14 }
0x2e51   :  { %v2022_v10 = vpop.permute.xlu0 %2021 }
0x2e52   :  { %v2024_v13 = vadd.f32 %v2022_v10, %v2014_v9 }
0x2e54   :  { %3111 = vtanh.f32 %v2024_v13 }
0x2e5a   :  { %v3112_v58 = vpop.eup %3111 }
0x2e5b   :  { %2027 = vrot.lane.b32.xlu2 %v3112_v58, %s3201_s8 }
0x2e61   :  { %v2069_v14 = vpop.permute.xlu1 %2068 }
0x2e62   :  { %2901 = vmatmul.msk.bf16.vlgmr.msrb.gmra.mxu0 %vm331_vm0, %v2069_v14 }
0x2eb5   :  { %v2028_v15 = vpop.permute.xlu2 %2027 }
0x2eb6   :  { %v2030_v16 = vmul.f32 %v2028_v15, %v2007_v45 }
0x2eb8   :  { %v2037_v51 = vsel %vm3876_vm11, %v3722_v24, %v2030_v16 }
0x2eb9   :  { %v2040_v17 = vpack.c.bf16 %v2037_v51, %v2037_v51 }
0x2ebb   :  { %2042 = vrot.lane.b32.xlu0 %v2040_v17, %s3202_s14 }
0x2edf   :  { %v2082_v18 = vpop.f32.mrf.mxu0 }
0x2ee0   :  { %v2106_v8 = vadd.f32 %v2082_v18, %v3500_v3 }
0x2ee2   :  { %2108 = vrot.lane.b32.xlu2 %v2106_v8, %s3203_s22 }
0x2ee7   :  { %v2084_v20 = vpop.f32.mrf.mxu0 }
0x2f2d   :  { %v2043_v21 = vpop.permute.xlu0 %2042 }
0x2f2e   :  { %2900 = vmatmul.msk.bf16.vlgmr.msra.gmra.mxu3 %vm368_vm7, %v2043_v21 }
0x2f2f   :  { %2555 = vmatpush.bf16.msra.mxu3 %v3680_v35 }
0x2f33   :  { %2556 = vmatpush.bf16.msra.mxu3 %v3686_v38 }
0x2f3c   :  { %v2109_v62 = vpop.permute.xlu2 %2108 }
0x2fb1   :  { %v2056_v23 = vpop.f32.mrf.mxu3 }
0x2fb2   :  { %v2060_v25 = vadd.f32 %v2056_v23, %v2039_v22 }
0x2fb4   :  { %2061 = vst.msk [vmem:[#allocation3 + $0x8] sm:$0xff] %vm3877_vm6, %v2060_v25 }
0x2fb9   :  { %v2058_v24 = vpop.f32.mrf.mxu3 }
0x2fbb   :  { %v3751_v61 = vld [vmem:[#allocation3 + $0x8] sm:$0xff] }
0x2fbc   :  { %v2086_v26 = vadd.f32 %v2082_v18, %v3751_v61 }
0x2fbe   :  { %v2902_v1 = vmul.f32 -1.442695, %v2086_v26 }
0x2fc0   :  { %3113 = vpow2.f32 %v2902_v1 }
0x2fc6   :  { %v3114_v29 = vpop.eup %3113 }
0x2fc7   :  { %v2090_v30 = vadd.f32 1.0, %v3114_v29 }
0x2fc9   :  { %3115 = vrcp.f32 %v2090_v30  ;;  %v2102_v39 = vand.u32 2147483648, %v2090_v30  ;;  %v2100_v28 = vand.u32 2147483647, %v2090_v30  ;;  %vm2096_vm10 = vweird.f32 %v2090_v30 }
0x2fcb   :  { %v2103_v27 = vor.u32 1.1754944e-38, %v2102_v39  ;;  %vm2101_vm13 = vcmp.eq.f32.partialorder %v2100_v28, 8.507059e+37 }
0x2fcf   :  { %v3116_v31 = vpop.eup %3115 }
0x2fd0   :  { %v2092_v33 = vmul.f32 %v3116_v31, %v2090_v30  ;;  %vm2097_vm7 = vweird.f32 %v3116_v31 }
0x2fd1   :  { %vm2098_vm12 = vmor %vm2096_vm10, %vm2097_vm7 }
0x2fd2   :  { %v2093_v35 = vsub.f32 1.0, %v2092_v33 }
0x2fd4   :  { %v2094_v38 = vmul.f32 %v3116_v31, %v2093_v35 }
0x2fd6   :  { %v2095_v41 = vadd.f32 %v3116_v31, %v2094_v38 }
0x2fd8   :  { %v2099_v44 = vsel %vm2098_vm12, %v3116_v31, %v2095_v41 }
0x2fd9   :  { %v2104_v32 = vsel %vm2101_vm13, %v2103_v27, %v2099_v44 }
0x2fda   :  { %v2111_v48 = vmul.f32 %v2109_v62, %v2104_v32  ;;  %v2127_v49 = vmul.f32 %v2125_v46, %v2104_v32  ;;  %v2118_v57 = vsub.f32 1.0, %v2104_v32 }
0x2fdc   :  { %2113 = vrot.lane.b32.xlu0 %v2111_v48, %s3203_s22 }
0x304e   :  { %v2114_v19 = vpop.permute.xlu0 %2113 }
0x304f   :  { %v2116_v11 = vadd.f32 %v2114_v19, %v3751_v61 }
0x3051   :  { %3117 = vtanh.f32 %v2116_v11 }
0x3057   :  { %v3118_v50 = vpop.eup %3117 }
0x3058   :  { %2120 = vrot.lane.b32.xlu1 %v3118_v50, %s3202_s14 }
0x30ca   :  { %v2121_v42 = vpop.permute.xlu1 %2120 }
0x30cb   :  { %v2123_v52 = vmul.f32 %v2121_v42, %v2118_v57 }
0x30cd   :  { %v3757_v53 = vadd.f32 %v2127_v49, %v2123_v52 }
0x30cf   :  { %v2129_v54 = vpack.c.bf16 %v3757_v53, %v3757_v53  ;;  %v2192_v17 = vrot.slane %v3757_v53, 7 }
0x30d1   :  { %2131 = vrot.lane.b32.xlu2 %v2129_v54, %s3202_s14 }
0x312b   :  { %v2132_v55 = vpop.permute.xlu2 %2131 }
0x312c   :  { %2903 = vmatmul.msk.bf16.vlgmr.msrb.gmra.mxu1 %vm331_vm0, %v2132_v55 }
0x31a9   :  { %v2145_v45 = vpop.f32.mrf.mxu1 }
0x31aa   :  { %v2172_v56 = vadd.f32 %v2145_v45, %v3500_v3  ;;  %v2150_v37 = vrot.slane %v2145_v45, 7 }
0x31ac   :  { %v2174_v59 = vrot.slane %v2172_v56, 7  ;;  %v2152_v36 = vadd.f32 %v2150_v37, %v3751_v61 }
0x31ae   :  { %2175 = vrot.lane.b32.xlu0 %v2174_v59, %s3203_s22  ;;  %v2904_v47 = vmul.f32 -1.442695, %v2152_v36 }
0x31b0   :  { %3119 = vpow2.f32 %v2904_v47 }
0x31b1   :  { %v2147_v43 = vpop.f32.mrf.mxu1 }
0x31b6   :  { %v3120_v0 = vpop.eup %3119 }
0x31b7   :  { %v2156_v34 = vadd.f32 1.0, %v3120_v0 }
0x31b9   :  { %3121 = vrcp.f32 %v2156_v34  ;;  %v2168_v7 = vand.u32 2147483648, %v2156_v34  ;;  %vm2162_vm5 = vweird.f32 %v2156_v34  ;;  %v2166_v60 = vand.u32 2147483647, %v2156_v34 }
0x31bb   :  { %v2169_v9 = vor.u32 1.1754944e-38, %v2168_v7  ;;  %vm2167_vm11 = vcmp.eq.f32.partialorder %v2166_v60, 8.507059e+37 }
0x31bf   :  { %v3122_v2 = vpop.eup %3121 }
0x31c0   :  { %v2158_v4 = vmul.f32 %v3122_v2, %v2156_v34  ;;  %vm2163_vm4 = vweird.f32 %v3122_v2 }
0x31c1   :  { %vm2164_vm1 = vmor %vm2162_vm5, %vm2163_vm4 }
0x31c2   :  { %v2159_v12 = vsub.f32 1.0, %v2158_v4 }
0x31c4   :  { %v2160_v5 = vmul.f32 %v3122_v2, %v2159_v12 }
0x31c6   :  { %v2161_v40 = vadd.f32 %v3122_v2, %v2160_v5 }
0x31c8   :  { %v2165_v63 = vsel %vm2164_vm1, %v3122_v2, %v2161_v40 }
0x31c9   :  { %v2170_v13 = vsel %vm2167_vm11, %v2169_v9, %v2165_v63 }
0x31ca   :  { %v2185_v51 = vsub.f32 1.0, %v2170_v13  ;;  %v2194_v8 = vmul.f32 %v2192_v17, %v2170_v13 }
0x3220   :  { %v2176_v10 = vpop.permute.xlu0 %2175 }
0x3221   :  { %v2178_v58 = vmul.f32 %v2176_v10, %v2170_v13 }
0x3223   :  { %2180 = vrot.lane.b32.xlu1 %v2178_v58, %s3203_s22 }
0x3295   :  { %v2181_v14 = vpop.permute.xlu1 %2180 }
0x3296   :  { %v2183_v15 = vadd.f32 %v2181_v14, %v3751_v61 }
0x3298   :  { %3123 = vtanh.f32 %v2183_v15 }
0x329e   :  { %v3124_v16 = vpop.eup %3123 }
0x329f   :  { %2187 = vrot.lane.b32.xlu2 %v3124_v16, %s3202_s14 }
0x32f9   :  { %v2188_v18 = vpop.permute.xlu2 %2187 }
0x32fa   :  { %v2190_v20 = vmul.f32 %v2188_v18, %v2185_v51 }
0x32fc   :  { %v2195_v21 = vadd.f32 %v2194_v8, %v2190_v20 }
0x32fe   :  { %v2196_v22 = vpack.c.bf16 %v2195_v21, %v2195_v21  ;;  %v2261_v54 = vrot.slane %v2195_v21, 7  ;;  %v2609_v43 = vsel %vm890_vm2, %v3757_v53, %v2195_v21 }
0x3300   :  { %v2198_v23 = vshrl.u32 %v2196_v22, 16 }
0x3302   :  { %2200 = vrot.lane.b32.xlu0 %v2198_v23, %s3202_s14 }
0x3374   :  { %v2201_v25 = vpop.permute.xlu0 %2200 }
0x3375   :  { %2905 = vmatmul.msk.bf16.vlgmr.msrb.gmra.mxu2 %vm331_vm0, %v2201_v25 }
0x33f8   :  { %v2214_v24 = vpop.f32.mrf.mxu2 }
0x33f9   :  { %v2241_v26 = vadd.f32 %v2214_v24, %v3500_v3  ;;  %v2219_v30 = vrot.slane %v2214_v24, 6 }
0x33fb   :  { %v2243_v1 = vrot.slane %v2241_v26, 6  ;;  %v2221_v31 = vadd.f32 %v2219_v30, %v3751_v61 }
0x33fd   :  { %2244 = vrot.lane.b32.xlu1 %v2243_v1, %s3203_s22  ;;  %v2906_v33 = vmul.f32 -1.442695, %v2221_v31 }
0x33ff   :  { %3125 = vpow2.f32 %v2906_v33 }
0x3400   :  { %v2216_v29 = vpop.f32.mrf.mxu2 }
0x3405   :  { %v3126_v35 = vpop.eup %3125 }
0x3406   :  { %v2225_v39 = vadd.f32 1.0, %v3126_v35 }
0x3408   :  { %3127 = vrcp.f32 %v2225_v39  ;;  %v2237_v46 = vand.u32 2147483648, %v2225_v39  ;;  %vm2231_vm7 = vweird.f32 %v2225_v39  ;;  %v2235_v62 = vand.u32 2147483647, %v2225_v39 }
0x340a   :  { %v2238_v48 = vor.u32 1.1754944e-38, %v2237_v46  ;;  %vm2236_vm12 = vcmp.eq.f32.partialorder %v2235_v62, 8.507059e+37 }
0x340e   :  { %v3128_v38 = vpop.eup %3127 }
0x340f   :  { %v2227_v28 = vmul.f32 %v3128_v38, %v2225_v39  ;;  %vm2232_vm6 = vweird.f32 %v3128_v38 }
0x3410   :  { %vm2233_vm10 = vmor %vm2231_vm7, %vm2232_vm6 }
0x3411   :  { %v2228_v41 = vsub.f32 1.0, %v2227_v28 }
0x3413   :  { %v2229_v27 = vmul.f32 %v3128_v38, %v2228_v41 }
0x3415   :  { %v2230_v44 = vadd.f32 %v3128_v38, %v2229_v27 }
0x3417   :  { %v2234_v32 = vsel %vm2233_vm10, %v3128_v38, %v2230_v44 }
0x3418   :  { %v2239_v19 = vsel %vm2236_vm12, %v2238_v48, %v2234_v32 }
0x3419   :  { %v2254_v52 = vsub.f32 1.0, %v2239_v19  ;;  %v2263_v45 = vmul.f32 %v2261_v54, %v2239_v19 }
0x346f   :  { %v2245_v49 = vpop.permute.xlu1 %2244 }
0x3470   :  { %v2247_v11 = vmul.f32 %v2245_v49, %v2239_v19 }
0x3472   :  { %2249 = vrot.lane.b32.xlu2 %v2247_v11, %s3203_s22 }
0x34cc   :  { %v2250_v50 = vpop.permute.xlu2 %2249 }
0x34cd   :  { %v2252_v57 = vadd.f32 %v2250_v50, %v3751_v61 }
0x34cf   :  { %3129 = vtanh.f32 %v2252_v57 }
0x34d5   :  { %v3130_v42 = vpop.eup %3129 }
0x34d6   :  { %2256 = vrot.lane.b32.xlu0 %v3130_v42, %s3202_s14 }
0x3548   :  { %v2257_v55 = vpop.permute.xlu0 %2256 }
0x3549   :  { %v2259_v56 = vmul.f32 %v2257_v55, %v2254_v52 }
0x354b   :  { %v2264_v59 = vadd.f32 %v2263_v45, %v2259_v56 }
0x354d   :  { %v2610_v37 = vsel %vm892_vm3, %v2609_v43, %v2264_v59  ;;  %v2265_v36 = vpack.c.bf16 %v2264_v59, %v2264_v59  ;;  %v2329_v17 = vrot.slane %v2264_v59, 7 }
0x354f   :  { %v2267_v47 = vrot.slane %v2265_v36, 1 }
0x3551   :  { %2268 = vrot.lane.b32.xlu1 %v2267_v47, %s3202_s14 }
0x35c3   :  { %v2269_v0 = vpop.permute.xlu1 %2268 }
0x35c4   :  { %2907 = vmatmul.msk.bf16.vlgmr.msrb.gmra.mxu3 %vm331_vm0, %v2269_v0 }
0x3647   :  { %v2282_v34 = vpop.f32.mrf.mxu3 }
0x3648   :  { %v2287_v2 = vrot.slane %v2282_v34, 5  ;;  %v2309_v4 = vadd.f32 %v2282_v34, %v3500_v3 }
0x364a   :  { %v2289_v12 = vadd.f32 %v2287_v2, %v3751_v61  ;;  %v2311_v5 = vrot.slane %v2309_v4, 5 }
0x364c   :  { %v2908_v40 = vmul.f32 -1.442695, %v2289_v12  ;;  %2312 = vrot.lane.b32.xlu2 %v2311_v5, %s3203_s22 }
0x364e   :  { %3131 = vpow2.f32 %v2908_v40 }
0x364f   :  { %v2284_v53 = vpop.f32.mrf.mxu3 }
0x3654   :  { %v3132_v7 = vpop.eup %3131 }
0x3655   :  { %v2293_v60 = vadd.f32 1.0, %v3132_v7 }
0x3657   :  { %3133 = vrcp.f32 %v2293_v60  ;;  %v2305_v13 = vand.u32 2147483648, %v2293_v60  ;;  %v2303_v14 = vand.u32 2147483647, %v2293_v60  ;;  %vm2299_vm3 = vweird.f32 %v2293_v60 }
0x3659   :  { %v2306_v16 = vor.u32 1.1754944e-38, %v2305_v13  ;;  %vm2304_vm4 = vcmp.eq.f32.partialorder %v2303_v14, 8.507059e+37 }
0x365d   :  { %v3134_v63 = vpop.eup %3133 }
0x365e   :  { %v2295_v9 = vmul.f32 %v3134_v63, %v2293_v60  ;;  %vm2300_vm2 = vweird.f32 %v3134_v63 }
0x365f   :  { %vm2301_vm13 = vmor %vm2299_vm3, %vm2300_vm2 }
0x3660   :  { %v2296_v10 = vsub.f32 1.0, %v2295_v9 }
0x3662   :  { %v2297_v58 = vmul.f32 %v3134_v63, %v2296_v10 }
0x3664   :  { %v2298_v15 = vadd.f32 %v3134_v63, %v2297_v58 }
0x3666   :  { %v2302_v51 = vsel %vm2301_vm13, %v3134_v63, %v2298_v15 }
0x3667   :  { %v2307_v18 = vsel %vm2304_vm4, %v2306_v16, %v2302_v51 }
0x3668   :  { %v2331_v8 = vmul.f32 %v2329_v17, %v2307_v18  ;;  %v2322_v24 = vsub.f32 1.0, %v2307_v18 }
0x36a6   :  { %v2313_v20 = vpop.permute.xlu2 %2312 }
0x36a7   :  { %v2315_v21 = vmul.f32 %v2313_v20, %v2307_v18 }
0x36a9   :  { %2317 = vrot.lane.b32.xlu0 %v2315_v21, %s3203_s22 }
0x371b   :  { %v2318_v22 = vpop.permute.xlu0 %2317 }
0x371c   :  { %v2320_v23 = vadd.f32 %v2318_v22, %v3751_v61 }
0x371e   :  { %3135 = vtanh.f32 %v2320_v23 }
0x3724   :  { %v3136_v25 = vpop.eup %3135 }
0x3725   :  { %2324 = vrot.lane.b32.xlu1 %v3136_v25, %s3202_s14 }
0x3797   :  { %v2325_v26 = vpop.permute.xlu1 %2324 }
0x3798   :  { %v2327_v1 = vmul.f32 %v2325_v26, %v2322_v24 }
0x379a   :  { %v2332_v29 = vadd.f32 %v2331_v8, %v2327_v1 }
0x379c   :  { %v2611_v30 = vsel %vm894_vm9, %v2610_v37, %v2332_v29  ;;  %v2333_v31 = vpack.c.bf16 %v2332_v29, %v2332_v29  ;;  %v2399_v0 = vrot.slane %v2332_v29, 7 }
0x379e   :  { %v2335_v33 = vshrl.u32 %v2333_v31, 16 }
0x37a0   :  { %v2337_v35 = vrot.slane %v2335_v33, 1 }
0x37a2   :  { %2338 = vrot.lane.b32.xlu2 %v2337_v35, %s3202_s14 }
0x37fc   :  { %v2339_v39 = vpop.permute.xlu2 %2338 }
0x37fd   :  { %2909 = vmatmul.msk.bf16.vlgmr.msra.gmra.mxu0 %vm331_vm0, %v2339_v39 }
0x387a   :  { %v2352_v38 = vpop.f32.mrf.mxu0 }
0x387b   :  { %v2379_v28 = vadd.f32 %v2352_v38, %v3500_v3  ;;  %v2357_v44 = vrot.slane %v2352_v38, 4 }
0x387d   :  { %v2381_v41 = vrot.slane %v2379_v28, 4  ;;  %v2359_v46 = vadd.f32 %v2357_v44, %v3751_v61 }
0x387f   :  { %2382 = vrot.lane.b32.xlu0 %v2381_v41, %s3203_s22  ;;  %v2910_v62 = vmul.f32 -1.442695, %v2359_v46 }
0x3881   :  { %3137 = vpow2.f32 %v2910_v62 }
0x3882   :  { %v2354_v27 = vpop.f32.mrf.mxu0 }
0x3887   :  { %v3138_v32 = vpop.eup %3137 }
0x3888   :  { %v2363_v48 = vadd.f32 1.0, %v3138_v32 }
0x388a   :  { %3139 = vrcp.f32 %v2363_v48  ;;  %v2375_v42 = vand.u32 2147483648, %v2363_v48  ;;  %vm2369_vm5 = vweird.f32 %v2363_v48  ;;  %v2373_v52 = vand.u32 2147483647, %v2363_v48 }
0x388c   :  { %v2376_v55 = vor.u32 1.1754944e-38, %v2375_v42  ;;  %vm2374_vm11 = vcmp.eq.f32.partialorder %v2373_v52, 8.507059e+37 }
0x3890   :  { %v3140_v49 = vpop.eup %3139 }
0x3891   :  { %v2365_v19 = vmul.f32 %v3140_v49, %v2363_v48  ;;  %vm2370_vm9 = vweird.f32 %v3140_v49 }
0x3892   :  { %vm2371_vm1 = vmor %vm2369_vm5, %vm2370_vm9  ;;  %vm3878_vm5 = vcmask 1046528  }
0x3893   :  { %v2366_v11 = vsub.f32 1.0, %v2365_v19 }
0x3895   :  { %v2367_v50 = vmul.f32 %v3140_v49, %v2366_v11 }
0x3897   :  { %v2368_v57 = vadd.f32 %v3140_v49, %v2367_v50 }
0x3899   :  { %v2372_v54 = vsel %vm2371_vm1, %v3140_v49, %v2368_v57 }
0x389a   :  { %v2377_v56 = vsel %vm2374_vm11, %v2376_v55, %v2372_v54 }
0x389b   :  { %v2392_v47 = vsub.f32 1.0, %v2377_v56  ;;  %v2401_v2 = vmul.f32 %v2399_v0, %v2377_v56 }
0x38f1   :  { %v2383_v45 = vpop.permute.xlu0 %2382 }
0x38f2   :  { %v2385_v59 = vmul.f32 %v2383_v45, %v2377_v56 }
0x38f4   :  { %2387 = vrot.lane.b32.xlu1 %v2385_v59, %s3203_s22 }
0x3966   :  { %v2388_v43 = vpop.permute.xlu1 %2387 }
0x3967   :  { %v2390_v37 = vadd.f32 %v2388_v43, %v3751_v61 }
0x3969   :  { %3141 = vtanh.f32 %v2390_v37 }
0x396f   :  { %v3142_v36 = vpop.eup %3141 }
0x3970   :  { %2394 = vrot.lane.b32.xlu2 %v3142_v36, %s3202_s14 }
0x39ca   :  { %v2395_v34 = vpop.permute.xlu2 %2394 }
0x39cb   :  { %v2397_v4 = vmul.f32 %v2395_v34, %v2392_v47 }
0x39cd   :  { %v2402_v12 = vadd.f32 %v2401_v2, %v2397_v4 }
0x39cf   :  { %v2612_v5 = vsel %vm896_vm14, %v2611_v30, %v2402_v12  ;;  %v2403_v40 = vpack.c.bf16 %v2402_v12, %v2402_v12  ;;  %v2467_v35 = vrot.slane %v2402_v12, 7 }
0x39d1   :  { %v2405_v53 = vrot.slane %v2403_v40, 2 }
0x39d3   :  { %2406 = vrot.lane.b32.xlu0 %v2405_v53, %s3202_s14 }
0x3a45   :  { %v2407_v7 = vpop.permute.xlu0 %2406 }
0x3a46   :  { %2911 = vmatmul.msk.bf16.vlgmr.msra.gmra.mxu1 %vm331_vm0, %v2407_v7 }
0x3ac3   :  { %v2420_v60 = vpop.f32.mrf.mxu1 }
0x3ac4   :  { %v2447_v63 = vadd.f32 %v2420_v60, %v3500_v3  ;;  %v2425_v13 = vrot.slane %v2420_v60, 3 }
0x3ac6   :  { %v2449_v9 = vrot.slane %v2447_v63, 3  ;;  %v2427_v58 = vadd.f32 %v2425_v13, %v3751_v61 }
0x3ac8   :  { %2450 = vrot.lane.b32.xlu1 %v2449_v9, %s3203_s22  ;;  %v2912_v14 = vmul.f32 -1.442695, %v2427_v58 }
0x3aca   :  { %3143 = vpow2.f32 %v2912_v14 }
0x3acb   :  { %v2422_v10 = vpop.f32.mrf.mxu1 }
0x3ad0   :  { %v3144_v15 = vpop.eup %3143 }
0x3ad1   :  { %v2431_v16 = vadd.f32 1.0, %v3144_v15 }
0x3ad3   :  { %3145 = vrcp.f32 %v2431_v16  ;;  %v2443_v21 = vand.u32 2147483648, %v2431_v16  ;;  %vm2437_vm6 = vweird.f32 %v2431_v16  ;;  %v2441_v22 = vand.u32 2147483647, %v2431_v16 }
0x3ad5   :  { %v2444_v25 = vor.u32 1.1754944e-38, %v2443_v21  ;;  %vm2442_vm10 = vcmp.eq.f32.partialorder %v2441_v22, 8.507059e+37 }
0x3ad9   :  { %v3146_v51 = vpop.eup %3145 }
0x3ada   :  { %v2433_v17 = vmul.f32 %v3146_v51, %v2431_v16  ;;  %vm2438_vm14 = vweird.f32 %v3146_v51 }
0x3adb   :  { %vm2439_vm7 = vmor %vm2437_vm6, %vm2438_vm14 }
0x3adc   :  { %v2434_v18 = vsub.f32 1.0, %v2433_v17 }
0x3ade   :  { %v2435_v8 = vmul.f32 %v3146_v51, %v2434_v18 }
0x3ae0   :  { %v2436_v20 = vadd.f32 %v3146_v51, %v2435_v8 }
0x3ae2   :  { %v2440_v23 = vsel %vm2439_vm7, %v3146_v51, %v2436_v20 }
0x3ae3   :  { %v2445_v26 = vsel %vm2442_vm10, %v2444_v25, %v2440_v23  ;;  %v2626_v25 = vld [vmem:[%s3870_s10 + $0x18] sm:$0xff] }
0x3ae4   :  { %v2460_v33 = vsub.f32 1.0, %v2445_v26  ;;  %v2469_v38 = vmul.f32 %v2467_v35, %v2445_v26  ;;  %2649 = vmatpush.msrb.mxu0 %v2626_v25  ;;  %2953 = vmatpush.msrb.mxu1 %v2626_v25 }
0x3b3a   :  { %v2451_v24 = vpop.permute.xlu1 %2450 }
0x3b3b   :  { %v2453_v1 = vmul.f32 %v2451_v24, %v2445_v26 }
0x3b3d   :  { %2455 = vrot.lane.b32.xlu2 %v2453_v1, %s3203_s22  ;;  %v2623_v1 = vld [vmem:[%s3870_s10] sm:$0xff] }
0x3b97   :  { %v2456_v29 = vpop.permute.xlu2 %2455 }
0x3b98   :  { %v2458_v30 = vadd.f32 %v2456_v29, %v3751_v61 }
0x3b9a   :  { %3147 = vtanh.f32 %v2458_v30 }
0x3ba0   :  { %v3148_v31 = vpop.eup %3147 }
0x3ba1   :  { %2462 = vrot.lane.b32.xlu0 %v3148_v31, %s3202_s14 }
0x3c13   :  { %v2463_v39 = vpop.permute.xlu0 %2462 }
0x3c14   :  { %v2465_v28 = vmul.f32 %v2463_v39, %v2460_v33 }
0x3c16   :  { %v2470_v41 = vadd.f32 %v2469_v38, %v2465_v28 }
0x3c18   :  { %v2471_v27 = vpack.c.bf16 %v2470_v41, %v2470_v41  ;;  %v2613_v44 = vsel %vm898_vm8, %v2612_v5, %v2470_v41  ;;  %v2537_v34 = vrot.slane %v2470_v41, 7 }
0x3c1a   :  { %v2473_v46 = vshrl.u32 %v2471_v27, 16 }
0x3c1c   :  { %v2475_v62 = vrot.slane %v2473_v46, 2 }
0x3c1e   :  { %2476 = vrot.lane.b32.xlu1 %v2475_v62, %s3202_s14 }
0x3c90   :  { %v2477_v32 = vpop.permute.xlu1 %2476 }
0x3c91   :  { %2913 = vmatmul.msk.bf16.vlgmr.msra.gmra.mxu2 %vm331_vm0, %v2477_v32 }
0x3d14   :  { %v2490_v48 = vpop.f32.mrf.mxu2 }
0x3d15   :  { %v2495_v49 = vrot.slane %v2490_v48, 2  ;;  %v2517_v19 = vadd.f32 %v2490_v48, %v3500_v3 }
0x3d17   :  { %v2497_v11 = vadd.f32 %v2495_v49, %v3751_v61  ;;  %v2519_v50 = vrot.slane %v2517_v19, 2  ;;  %v2968_v49 = vld [vmem:[%s3871_s11] ss:$0 sm:$0xff]  ;;  %s3204_s11 = smov [#allocation5]  }
0x3d18   :  { %s2686_s13 = sshll.u32 %s3204_s11, 4  ;;  %s2687_s13 = int_to_ptr.vmem [resolvable:$true] %s2686_s13 }
0x3d19   :  { %v2914_v57 = vmul.f32 -1.442695, %v2497_v11  ;;  %2520 = vrot.lane.b32.xlu2 %v2519_v50, %s3203_s22 }
0x3d1b   :  { %3149 = vpow2.f32 %v2914_v57 }
0x3d1c   :  { %v2492_v42 = vpop.f32.mrf.mxu2 }
0x3d21   :  { %v3150_v52 = vpop.eup %3149 }
0x3d22   :  { %v2501_v54 = vadd.f32 1.0, %v3150_v52 }
0x3d24   :  { %3151 = vrcp.f32 %v2501_v54  ;;  %v2513_v59 = vand.u32 2147483648, %v2501_v54  ;;  %v2511_v37 = vand.u32 2147483647, %v2501_v54  ;;  %vm2507_vm12 = vweird.f32 %v2501_v54 }
0x3d26   :  { %v2514_v47 = vor.u32 1.1754944e-38, %v2513_v59  ;;  %vm2512_vm3 = vcmp.eq.f32.partialorder %v2511_v37, 8.507059e+37 }
0x3d2a   :  { %v3152_v55 = vpop.eup %3151 }
0x3d2b   :  { %v2503_v45 = vmul.f32 %v3152_v55, %v2501_v54  ;;  %vm2508_vm8 = vweird.f32 %v3152_v55 }
0x3d2c   :  { %vm2509_vm2 = vmor %vm2507_vm12, %vm2508_vm8 }
0x3d2d   :  { %v2504_v56 = vsub.f32 1.0, %v2503_v45 }
0x3d2f   :  { %v2505_v43 = vmul.f32 %v3152_v55, %v2504_v56 }
0x3d31   :  { %v2506_v36 = vadd.f32 %v3152_v55, %v2505_v43 }
0x3d33   :  { %v2510_v0 = vsel %vm2509_vm2, %v3152_v55, %v2506_v36 }
0x3d34   :  { %v2515_v2 = vsel %vm2512_vm3, %v2514_v47, %v2510_v0 }
0x3d35   :  { %v2539_v4 = vmul.f32 %v2537_v34, %v2515_v2  ;;  %v2530_v60 = vsub.f32 1.0, %v2515_v2 }
0x3d73   :  { %v2521_v12 = vpop.permute.xlu2 %2520 }
0x3d74   :  { %v2523_v5 = vmul.f32 %v2521_v12, %v2515_v2 }
0x3d76   :  { %2525 = vrot.lane.b32.xlu0 %v2523_v5, %s3203_s22 }
0x3de8   :  { %v2526_v40 = vpop.permute.xlu0 %2525 }
0x3de9   :  { %v2528_v53 = vadd.f32 %v2526_v40, %v3751_v61 }
0x3deb   :  { %3153 = vtanh.f32 %v2528_v53 }
0x3df1   :  { %v3154_v7 = vpop.eup %3153 }
0x3df2   :  { %2532 = vrot.lane.b32.xlu1 %v3154_v7, %s3202_s14 }
0x3e64   :  { %v2533_v63 = vpop.permute.xlu1 %2532 }
0x3e65   :  { %v2535_v9 = vmul.f32 %v2533_v63, %v2530_v60 }
0x3e67   :  { %v3816_v10 = vadd.f32 %v2539_v4, %v2535_v9 }
0x3e69   :  { %v2541_v13 = vpack.c.bf16 %v3816_v10, %v3816_v10  ;;  %v3822_v58 = vsel %vm900_vm15, %v2613_v44, %v3816_v10  ;;  %v2605_v57 = vrot.slane %v3816_v10, 7 }
0x3e6b   :  { %v2543_v14 = vrot.slane %v2541_v13, 3 }
0x3e6d   :  { %2544 = vrot.lane.b32.xlu2 %v2543_v14, %s3202_s14 }
0x3ec7   :  { %v2545_v15 = vpop.permute.xlu2 %2544 }
0x3ec8   :  { %2915 = vmatmul.msk.bf16.vlgmr.msra.gmra.mxu3 %vm331_vm0, %v2545_v15 }
0x3f4b   :  { %v2558_v16 = vpop.f32.mrf.mxu3 }
0x3f4c   :  { %v2585_v51 = vadd.f32 %v2558_v16, %v3500_v3  ;;  %v2563_v8 = vrot.slane %v2558_v16, 1  ;;  %v2625_v3 = vld [vmem:[%s3870_s10 + $0x10] sm:$0xff] }
0x3f4d   :  { %2650 = vmatpush.msrb.mxu0 %v2625_v3  ;;  %2954 = vmatpush.msrb.mxu1 %v2625_v3 }
0x3f4e   :  { %v2587_v17 = vrot.slane %v2585_v51, 1  ;;  %v2565_v20 = vadd.f32 %v2563_v8, %v3751_v61 }
0x3f50   :  { %2588 = vrot.lane.b32.xlu0 %v2587_v17, %s3203_s22  ;;  %v2916_v21 = vmul.f32 -1.442695, %v2565_v20 }
0x3f52   :  { %3155 = vpow2.f32 %v2916_v21 }
0x3f53   :  { %v2560_v18 = vpop.f32.mrf.mxu3 }
0x3f58   :  { %1494 = vrot.lane.b32.xlu0 %v3736_v6, %s3202_s14  ;;  %v3156_v22 = vpop.eup %3155  ;;  %v2624_v6 = vld [vmem:[%s3870_s10 + $0x8] sm:$0xff] }
0x3f59   :  { %v2569_v23 = vadd.f32 1.0, %v3156_v22  ;;  %2651 = vmatpush.msrb.mxu0 %v2624_v6  ;;  %2955 = vmatpush.msrb.mxu1 %v2624_v6 }
0x3f5b   :  { %3157 = vrcp.f32 %v2569_v23  ;;  %2652 = vmatpush.msrb.mxu0 %v2623_v1  ;;  %2956 = vmatpush.msrb.mxu1 %v2623_v1  ;;  %v2581_v33 = vand.u32 2147483648, %v2569_v23  ;;  %vm2575_vm13 = vweird.f32 %v2569_v23  ;;  %v2579_v35 = vand.u32 2147483647, %v2569_v23 }
0x3f5d   :  { %v2582_v38 = vor.u32 1.1754944e-38, %v2581_v33  ;;  %vm2580_vm9 = vcmp.eq.f32.partialorder %v2579_v35, 8.507059e+37 }
0x3f61   :  { %v3158_v24 = vpop.eup %3157 }
0x3f62   :  { %v2571_v26 = vmul.f32 %v3158_v24, %v2569_v23  ;;  %vm2576_vm15 = vweird.f32 %v3158_v24 }
0x3f63   :  { %vm2577_vm4 = vmor %vm2575_vm13, %vm2576_vm15 }
0x3f64   :  { %v2572_v29 = vsub.f32 1.0, %v2571_v26 }
0x3f66   :  { %v2573_v30 = vmul.f32 %v3158_v24, %v2572_v29 }
0x3f68   :  { %v2574_v31 = vadd.f32 %v3158_v24, %v2573_v30 }
0x3f6a   :  { %v2578_v39 = vsel %vm2577_vm4, %v3158_v24, %v2574_v31 }
0x3f6b   :  { %v2583_v41 = vsel %vm2580_vm9, %v2582_v38, %v2578_v39 }
0x3f6c   :  { %v2598_v50 = vsub.f32 1.0, %v2583_v41  ;;  %v2607_v52 = vmul.f32 %v2605_v57, %v2583_v41 }
0x3fc2   :  { %v2589_v28 = vpop.permute.xlu0 %2588 }
0x3fc3   :  { %v2591_v27 = vmul.f32 %v2589_v28, %v2583_v41 }
0x3fc5   :  { %2593 = vrot.lane.b32.xlu1 %v2591_v27, %s3203_s22 }
0x3fca   :  { %v1495_v44 = vpop.permute.xlu0 %1494 }
0x3fcb   :  { %1497 = vst.msk [vmem:[#allocation4] sm:$0xff] %vm331_vm0, %v1495_v44 }
0x3fd2   :  { %v2621_v46 = vld [vmem:[#allocation4] sm:$0xff] }
0x3fd3   :  { %2917 = vmatmul.msk.f32.vlgmr.msrb.gmra.mxu0 %vm331_vm0, %v2621_v46 }
0x4037   :  { %v2594_v62 = vpop.permute.xlu1 %2593 }
0x4038   :  { %v2596_v32 = vadd.f32 %v2594_v62, %v3751_v61 }
0x403a   :  { %3159 = vtanh.f32 %v2596_v32 }
0x4040   :  { %v3160_v48 = vpop.eup %3159 }
0x4041   :  { %2600 = vrot.lane.b32.xlu2 %v3160_v48, %s3202_s14 }
0x4050   :  { %v2654_v19 = vpop.f32.mrf.mxu0 }
0x4051   :  { %v2655_v11 = vadd.f32 %v2968_v49, %v2654_v19 }
0x406a   :  { %2660 = vmax.xlane.f32.xlu2 %v2655_v11 }
0x409b   :  { %v2601_v42 = vpop.permute.xlu2 %2600 }
0x409c   :  { %v2603_v54 = vmul.f32 %v2601_v42, %v2598_v50 }
0x409e   :  { %v2608_v55 = vadd.f32 %v2607_v52, %v2603_v54 }
0x40a0   :  { %v2615_v61 = vsel %vm3878_vm5, %v3822_v58, %v2608_v55 }
0x40a1   :  { %2617 = vrot.lane.b32.xlu1 %v2615_v61, %s3202_s14  ;;  %s2688_s14 = sshll.u32 %s3872_s12, 4  ;;  %s2689_s14 = int_to_ptr.hbm [resolvable:$true] %s2688_s14 }
0x40dd   :  { %v2661_v45 = vpop.xlane.xlu2 %2660 }
0x40de   :  { %v2664_v56 = vsub.f32 %v2655_v11, %v2661_v45 }
0x40e0   :  { %v2666_v59 = vmul.f32 1.442695, %v2664_v56 }
0x40e2   :  { %3161 = vpow2.f32 %v2666_v59 }
0x40e8   :  { %v3162_v43 = vpop.eup %3161 }
0x40e9   :  { %2670 = vadd.xlane.f32.xlu1 %v3162_v43 }
0x4113   :  { %v2618_v37 = vpop.permute.xlu1 %2617 }
0x4114   :  { %2620 = vst.msk [vmem:[#allocation4 + $0x8] sm:$0xff] %vm331_vm0, %v2618_v37 }
0x411b   :  { %v2622_v36 = vld [vmem:[#allocation4 + $0x8] sm:$0xff] }
0x411c   :  { %2918 = vmatmul.msk.f32.vlgmr.msrb.gmra.mxu1 %vm331_vm0, %v2622_v36 }
0x415c   :  { %v2671_v47 = vpop.xlane.xlu1 %2670 }
0x415d   :  { %3163 = vlog2.f32 %v2671_v47 }
0x4163   :  { %v3164_v0 = vpop.eup %3163 }
0x4164   :  { %v2675_v34 = vmul.f32 0.6931472, %v3164_v0 }
0x4166   :  { %v2678_v2 = vsub.f32 %v2664_v56, %v2675_v34 }
0x4168   :  { %2680 = vst [vmem:[#allocation5] sm:$0xff] %v2678_v2 }
0x4199   :  { %v2657_v4 = vpop.f32.mrf.mxu1 }
0x419a   :  { %v2658_v12 = vadd.f32 %v2968_v49, %v2657_v4 }
0x419c   :  { %2662 = vmax.xlane.f32.xlu0 %v2658_v12 }
0x420f   :  { %v2663_v5 = vpop.xlane.xlu0 %2662 }
0x4210   :  { %v2665_v40 = vsub.f32 %v2658_v12, %v2663_v5 }
0x4212   :  { %v2668_v53 = vmul.f32 1.442695, %v2665_v40 }
0x4214   :  { %3165 = vpow2.f32 %v2668_v53 }
0x421a   :  { %v3166_v7 = vpop.eup %3165 }
0x421b   :  { %2672 = vadd.xlane.f32.xlu2 %v3166_v7 }
0x428e   :  { %v2673_v60 = vpop.xlane.xlu2 %2672 }
0x428f   :  { %3167 = vlog2.f32 %v2673_v60 }
0x4295   :  { %v3168_v63 = vpop.eup %3167 }
0x4296   :  { %v2677_v9 = vmul.f32 0.6931472, %v3168_v63 }
0x4298   :  { %v2679_v10 = vsub.f32 %v2665_v40, %v2677_v9 }
0x429a   :  { %2681 = vst [vmem:[#allocation5 + $0x8] sm:$0xff] %v2679_v10 }
0x429b   :  { %2694 = dma.vmem_to_hbm [thread:$0]  %s2687_s13, 256, %s2689_s14, [#allocation6], %s3205_s1, %s3205_s1, %s3206_s15  }
0x429c   :  { %3197 = dma.done.wait [#allocation6], 256  }
0x429d   :  { %3198 = vsyncadd [#allocation6], 4294967040 }
0x429e   :  { %2699 = vsyncpa [#allocation6], 1 }

</bundles_post_ra>
